<compile_context>
chip_gen: v6e
topology: v6e:2x2x1
jax: 0.10.0
libtpu: 0.0.40
codegen_flags: <defaults>
</compile_context>

<pallas_src>
import jax
import jax.numpy as jnp
from jax import lax
from jax.experimental import pallas as pl
from jax.experimental.pallas import tpu as pltpu

CAT_SIZES = (11, 2, 7, 2, 2)          # client == 1
N_CONT = 5
RAW_DIM = N_CONT + len(CAT_SIZES)     # 10 raw input columns
IN_DIM = N_CONT + sum(CAT_SIZES)      # 29 expanded feature columns
PAD_IN = 32                           # feature dim padded (zero W rows / zero feats)
HIDDEN = 1024
TB_MAX = 256                          # batch tile (rows per grid step)


def fused_onehot_linear_tanh_kernel(x_ref, w_ref, b_ref, o_ref):
    """out = tanh(onehot_expand(x) @ W + b), fully fused in-kernel.

    x_ref: [TB, 32] f32  (cols 0..4 continuous, 5..9 categorical codes, 10..31 zero)
    w_ref: [32, 1024] bf16 (rows 29..31 zero)
    b_ref: [1, 1024] f32
    o_ref: [TB, 1024] f32
    """
    x = x_ref[...]                                              # [TB, 32] f32
    tb = x.shape[0]

    # Column-index iota over the (padded) expanded feature axis.
    col = lax.broadcasted_iota(jnp.int32, (tb, PAD_IN), 1)      # [TB, 32]

    # Continuous features: lanes 0..4 of x already line up with feats lanes
    # 0..4 -> one masked copy (no per-column cross-lane broadcasts).
    feats = jnp.where(col < N_CONT, x, 0.0)                     # [TB, 32] f32

    # Categorical one-hots -> disjoint column ranges after the continuous block.
    # (Out-of-range codes yield an all-zero row, same as before.)
    off = N_CONT
    for i, csize in enumerate(CAT_SIZES):
        code = x[:, N_CONT + i:N_CONT + i + 1].astype(jnp.int32) - 1   # [TB, 1]
        hit = ((col - off) == code) & (col >= off) & (col < off + csize)
        feats = jnp.where(hit, 1.0, feats)                      # disjoint -> select ok
        off += csize
    # Columns [IN_DIM, PAD_IN) stay zero and meet zero-padded W rows -> no-op.

    # Single MXU matmul (bf16 inputs, f32 accumulate) + f32 bias/tanh epilogue.
    acc = jnp.dot(feats.astype(jnp.bfloat16), w_ref[...],
                  preferred_element_type=jnp.float32)
    o_ref[...] = jnp.tanh(acc + b_ref[...])


def pad_weight(w):
    """One-time (outside-jit) pad+cast of W [29,1024] f32 -> [32,1024] bf16."""
    wp = jnp.zeros((PAD_IN, HIDDEN), jnp.bfloat16)
    return wp.at[:IN_DIM, :].set(w.astype(jnp.bfloat16))


def _batch_tiling(batch):
    """Pick a batch tile (multiple of 8) and the padded batch it divides."""
    if batch <= TB_MAX:
        tb = max(8, pl.cdiv(batch, 8) * 8)
        return tb, tb
    return TB_MAX, pl.cdiv(batch, TB_MAX) * TB_MAX


@jax.jit
def client_leakyrelu_net_1_bm(x, w_padded, b):
    # TODO(synk): the torch forward's host-side np.isnan check / ValueError has
    # no in-graph equivalent; inputs here are assumed finite.
    batch = x.shape[0]
    tb, bp = _batch_tiling(batch)

    # Tiny per-call pad of x only: rows -> bp (multiple of tb), lanes 10 -> 32
    # so continuous features line up with feats lanes inside the kernel.
    xp = jnp.pad(x.astype(jnp.float32), ((0, bp - batch), (0, PAD_IN - RAW_DIM)))
    b2 = b.reshape(1, HIDDEN).astype(jnp.float32)

    out = pl.pallas_call(
        fused_onehot_linear_tanh_kernel,
        out_shape=jax.ShapeDtypeStruct((bp, HIDDEN), jnp.float32),
        grid=(bp // tb,),
        in_specs=[
            pl.BlockSpec((tb, PAD_IN), lambda i: (i, 0)),        # raw x tile
            pl.BlockSpec((PAD_IN, HIDDEN), lambda i: (0, 0)),    # W (bf16, resident)
            pl.BlockSpec((1, HIDDEN), lambda i: (0, 0)),         # bias (resident)
        ],
        out_specs=pl.BlockSpec((tb, HIDDEN), lambda i: (i, 0)),  # lane-dense 1024
        compiler_params=pltpu.CompilerParams(
            dimension_semantics=("parallel",)),
        cost_estimate=pl.CostEstimate(
            flops=2 * bp * PAD_IN * HIDDEN,
            transcendentals=bp * HIDDEN,
            bytes_accessed=bp * PAD_IN * 4 + PAD_IN * HIDDEN * 2
                           + HIDDEN * 4 + bp * HIDDEN * 4),
    )(xp, w_padded, b2)
    return out[:batch]


def one_hot_encode_ref(x):
    # Plain-JAX reference of the torch scatter_-based one-hot construction.
    cont = x[:, :N_CONT]
    z = (x[:, N_CONT:] - 1.0).astype(jnp.int32)
    pieces = [cont]
    for i, c in enumerate(CAT_SIZES):
        pieces.append(jax.nn.one_hot(z[:, i], c, dtype=x.dtype))
    return jnp.concatenate(pieces, axis=1)                       # [B, 29]


if __name__ == "__main__":
    key = jax.random.PRNGKey(0)
    k_w, k_b, k_cont, k_cat = jax.random.split(key, 4)

    # Deterministic parameter init (PyTorch nn.Linear default: U(-1/sqrt(fan_in), ..)).
    bound = 1.0 / (IN_DIM ** 0.5)
    w = jax.random.uniform(k_w, (IN_DIM, HIDDEN), jnp.float32, -bound, bound)
    b = jax.random.uniform(k_b, (HIDDEN,), jnp.float32, -bound, bound)
    w_p = pad_weight(w)                                          # once, outside jit

    # Small example input: batch=300 (exercises row padding -> 512 and a
    # 2-step "parallel" grid), 5 continuous + 5 categorical (1-based codes).
    B = 300
    cont = jax.random.normal(k_cont, (B, N_CONT), jnp.float32)
    cat_cols = []
    for kk, c in zip(jax.random.split(k_cat, len(CAT_SIZES)), CAT_SIZES):
        cat_cols.append(jax.random.randint(kk, (B, 1), 1, c + 1).astype(jnp.float32))
    x = jnp.concatenate([cont] + cat_cols, axis=1)               # [300, 10]

    out = jax.block_until_ready(client_leakyrelu_net_1_bm(x, w_p, b))

    # Cross-check against a plain-JAX reference using the same bf16 matmul path.
    feats_ref = one_hot_encode_ref(x)
    ref = jnp.tanh(
        jnp.dot(feats_ref.astype(jnp.bfloat16), w.astype(jnp.bfloat16),
                preferred_element_type=jnp.float32) + b)
    assert out.shape == (B, HIDDEN)
    assert jnp.allclose(out, ref, atol=2e-3, rtol=1e-3), \
        float(jnp.max(jnp.abs(out - ref)))

    print("KERNEL_OK")
</pallas_src>

<mosaic_0001>
module attributes {stable_mosaic.version = 11 : i64} {
  func.func @fused_onehot_linear_tanh_kernel(%arg0: i32, %arg1: memref<256x32xf32, #tpu.memory_space<vmem>>, %arg2: memref<32x1024xbf16, #tpu.memory_space<vmem>>, %arg3: memref<1x1024xf32, #tpu.memory_space<vmem>>, %arg4: memref<256x1024xf32, #tpu.memory_space<vmem>>) attributes {dimension_semantics = [#tpu.dimension_semantics<parallel>], iteration_bounds = array<i64: 2>, scalar_prefetch = 0 : i64, scratch_operands = 0 : i64, tpu.core_type = #tpu.core_type<tc>, window_params = [{transform_indices = @transform_0, window_bounds = array<i64: 256, 32>}, {pipeline_mode = #tpu.pipeline_mode<synchronous>, transform_indices = @transform_1, window_bounds = array<i64: 32, 1024>}, {pipeline_mode = #tpu.pipeline_mode<synchronous>, transform_indices = @transform_2, window_bounds = array<i64: 1, 1024>}, {transform_indices = @transform_3, window_bounds = array<i64: 256, 1024>}]} {
    %c0 = arith.constant 0 : index
    %c0_0 = arith.constant 0 : index
    %0 = vector.load %arg1[%c0, %c0_0] : memref<256x32xf32, #tpu.memory_space<vmem>>, vector<256x32xf32>
    %1 = tpu.iota {dimensions = array<i32: 1>} : vector<256x32xi32>
    %c5_i32 = arith.constant 5 : i32
    %2 = vector.broadcast %c5_i32 : i32 to vector<256x32xi32>
    %3 = arith.cmpi slt, %1, %2 : vector<256x32xi32>
    %cst = arith.constant 0.000000e+00 : f32
    %4 = vector.broadcast %cst : f32 to vector<256x32xf32>
    %5 = arith.select %3, %0, %4 : vector<256x32xi1>, vector<256x32xf32>
    %6 = vector.extract_strided_slice %0 {offsets = [0, 5], sizes = [256, 1], strides = [1, 1]} : vector<256x32xf32> to vector<256x1xf32>
    %7 = arith.fptosi %6 : vector<256x1xf32> to vector<256x1xi32>
    %c1_i32 = arith.constant 1 : i32
    %8 = vector.broadcast %c1_i32 : i32 to vector<256x1xi32>
    %9 = arith.subi %7, %8 : vector<256x1xi32>
    %c5_i32_1 = arith.constant 5 : i32
    %10 = vector.broadcast %c5_i32_1 : i32 to vector<256x32xi32>
    %11 = arith.subi %1, %10 : vector<256x32xi32>
    %12 = vector.broadcast %9 : vector<256x1xi32> to vector<256x32xi32>
    %13 = arith.cmpi eq, %11, %12 : vector<256x32xi32>
    %c5_i32_2 = arith.constant 5 : i32
    %14 = vector.broadcast %c5_i32_2 : i32 to vector<256x32xi32>
    %15 = arith.cmpi sge, %1, %14 : vector<256x32xi32>
    %16 = arith.andi %13, %15 : vector<256x32xi1>
    %c16_i32 = arith.constant 16 : i32
    %17 = vector.broadcast %c16_i32 : i32 to vector<256x32xi32>
    %18 = arith.cmpi slt, %1, %17 : vector<256x32xi32>
    %19 = arith.andi %16, %18 : vector<256x32xi1>
    %cst_3 = arith.constant 1.000000e+00 : f32
    %20 = vector.broadcast %cst_3 : f32 to vector<256x32xf32>
    %21 = arith.select %19, %20, %5 : vector<256x32xi1>, vector<256x32xf32>
    %22 = vector.extract_strided_slice %0 {offsets = [0, 6], sizes = [256, 1], strides = [1, 1]} : vector<256x32xf32> to vector<256x1xf32>
    %23 = arith.fptosi %22 : vector<256x1xf32> to vector<256x1xi32>
    %c1_i32_4 = arith.constant 1 : i32
    %24 = vector.broadcast %c1_i32_4 : i32 to vector<256x1xi32>
    %25 = arith.subi %23, %24 : vector<256x1xi32>
    %c16_i32_5 = arith.constant 16 : i32
    %26 = vector.broadcast %c16_i32_5 : i32 to vector<256x32xi32>
    %27 = arith.subi %1, %26 : vector<256x32xi32>
    %28 = vector.broadcast %25 : vector<256x1xi32> to vector<256x32xi32>
    %29 = arith.cmpi eq, %27, %28 : vector<256x32xi32>
    %c16_i32_6 = arith.constant 16 : i32
    %30 = vector.broadcast %c16_i32_6 : i32 to vector<256x32xi32>
    %31 = arith.cmpi sge, %1, %30 : vector<256x32xi32>
    %32 = arith.andi %29, %31 : vector<256x32xi1>
    %c18_i32 = arith.constant 18 : i32
    %33 = vector.broadcast %c18_i32 : i32 to vector<256x32xi32>
    %34 = arith.cmpi slt, %1, %33 : vector<256x32xi32>
    %35 = arith.andi %32, %34 : vector<256x32xi1>
    %cst_7 = arith.constant 1.000000e+00 : f32
    %36 = vector.broadcast %cst_7 : f32 to vector<256x32xf32>
    %37 = arith.select %35, %36, %21 : vector<256x32xi1>, vector<256x32xf32>
    %38 = vector.extract_strided_slice %0 {offsets = [0, 7], sizes = [256, 1], strides = [1, 1]} : vector<256x32xf32> to vector<256x1xf32>
    %39 = arith.fptosi %38 : vector<256x1xf32> to vector<256x1xi32>
    %c1_i32_8 = arith.constant 1 : i32
    %40 = vector.broadcast %c1_i32_8 : i32 to vector<256x1xi32>
    %41 = arith.subi %39, %40 : vector<256x1xi32>
    %c18_i32_9 = arith.constant 18 : i32
    %42 = vector.broadcast %c18_i32_9 : i32 to vector<256x32xi32>
    %43 = arith.subi %1, %42 : vector<256x32xi32>
    %44 = vector.broadcast %41 : vector<256x1xi32> to vector<256x32xi32>
    %45 = arith.cmpi eq, %43, %44 : vector<256x32xi32>
    %c18_i32_10 = arith.constant 18 : i32
    %46 = vector.broadcast %c18_i32_10 : i32 to vector<256x32xi32>
    %47 = arith.cmpi sge, %1, %46 : vector<256x32xi32>
    %48 = arith.andi %45, %47 : vector<256x32xi1>
    %c25_i32 = arith.constant 25 : i32
    %49 = vector.broadcast %c25_i32 : i32 to vector<256x32xi32>
    %50 = arith.cmpi slt, %1, %49 : vector<256x32xi32>
    %51 = arith.andi %48, %50 : vector<256x32xi1>
    %cst_11 = arith.constant 1.000000e+00 : f32
    %52 = vector.broadcast %cst_11 : f32 to vector<256x32xf32>
    %53 = arith.select %51, %52, %37 : vector<256x32xi1>, vector<256x32xf32>
    %54 = vector.extract_strided_slice %0 {offsets = [0, 8], sizes = [256, 1], strides = [1, 1]} : vector<256x32xf32> to vector<256x1xf32>
    %55 = arith.fptosi %54 : vector<256x1xf32> to vector<256x1xi32>
    %c1_i32_12 = arith.constant 1 : i32
    %56 = vector.broadcast %c1_i32_12 : i32 to vector<256x1xi32>
    %57 = arith.subi %55, %56 : vector<256x1xi32>
    %c25_i32_13 = arith.constant 25 : i32
    %58 = vector.broadcast %c25_i32_13 : i32 to vector<256x32xi32>
    %59 = arith.subi %1, %58 : vector<256x32xi32>
    %60 = vector.broadcast %57 : vector<256x1xi32> to vector<256x32xi32>
    %61 = arith.cmpi eq, %59, %60 : vector<256x32xi32>
    %c25_i32_14 = arith.constant 25 : i32
    %62 = vector.broadcast %c25_i32_14 : i32 to vector<256x32xi32>
    %63 = arith.cmpi sge, %1, %62 : vector<256x32xi32>
    %64 = arith.andi %61, %63 : vector<256x32xi1>
    %c27_i32 = arith.constant 27 : i32
    %65 = vector.broadcast %c27_i32 : i32 to vector<256x32xi32>
    %66 = arith.cmpi slt, %1, %65 : vector<256x32xi32>
    %67 = arith.andi %64, %66 : vector<256x32xi1>
    %cst_15 = arith.constant 1.000000e+00 : f32
    %68 = vector.broadcast %cst_15 : f32 to vector<256x32xf32>
    %69 = arith.select %67, %68, %53 : vector<256x32xi1>, vector<256x32xf32>
    %70 = vector.extract_strided_slice %0 {offsets = [0, 9], sizes = [256, 1], strides = [1, 1]} : vector<256x32xf32> to vector<256x1xf32>
    %71 = arith.fptosi %70 : vector<256x1xf32> to vector<256x1xi32>
    %c1_i32_16 = arith.constant 1 : i32
    %72 = vector.broadcast %c1_i32_16 : i32 to vector<256x1xi32>
    %73 = arith.subi %71, %72 : vector<256x1xi32>
    %c27_i32_17 = arith.constant 27 : i32
    %74 = vector.broadcast %c27_i32_17 : i32 to vector<256x32xi32>
    %75 = arith.subi %1, %74 : vector<256x32xi32>
    %76 = vector.broadcast %73 : vector<256x1xi32> to vector<256x32xi32>
    %77 = arith.cmpi eq, %75, %76 : vector<256x32xi32>
    %c27_i32_18 = arith.constant 27 : i32
    %78 = vector.broadcast %c27_i32_18 : i32 to vector<256x32xi32>
    %79 = arith.cmpi sge, %1, %78 : vector<256x32xi32>
    %80 = arith.andi %77, %79 : vector<256x32xi1>
    %c29_i32 = arith.constant 29 : i32
    %81 = vector.broadcast %c29_i32 : i32 to vector<256x32xi32>
    %82 = arith.cmpi slt, %1, %81 : vector<256x32xi32>
    %83 = arith.andi %80, %82 : vector<256x32xi1>
    %cst_19 = arith.constant 1.000000e+00 : f32
    %84 = vector.broadcast %cst_19 : f32 to vector<256x32xf32>
    %85 = arith.select %83, %84, %69 : vector<256x32xi1>, vector<256x32xf32>
    %86 = arith.truncf %85 : vector<256x32xf32> to vector<256x32xbf16>
    %c0_20 = arith.constant 0 : index
    %c0_21 = arith.constant 0 : index
    %87 = vector.load %arg2[%c0_20, %c0_21] : memref<32x1024xbf16, #tpu.memory_space<vmem>>, vector<32x1024xbf16>
    %cst_22 = arith.constant dense<0.000000e+00> : vector<256x1024xf32>
    %88 = tpu.matmul %86, %87, %cst_22 {dimension_numbers = #tpu.dot_dimension_numbers<[1], [0], [0], [1], [0, 0, 1, 1], [], []>} : vector<256x32xbf16>, vector<32x1024xbf16>, vector<256x1024xf32> -> vector<256x1024xf32>
    %c0_23 = arith.constant 0 : index
    %c0_24 = arith.constant 0 : index
    %89 = vector.load %arg3[%c0_23, %c0_24] : memref<1x1024xf32, #tpu.memory_space<vmem>>, vector<1x1024xf32>
    %90 = vector.broadcast %89 : vector<1x1024xf32> to vector<256x1024xf32>
    %91 = arith.addf %88, %90 : vector<256x1024xf32>
    %92 = math.tanh %91 : vector<256x1024xf32>
    %c0_25 = arith.constant 0 : index
    %c0_26 = arith.constant 0 : index
    %93 = vector.load %arg4[%c0_25, %c0_26] : memref<256x1024xf32, #tpu.memory_space<vmem>>, vector<256x1024xf32>
    tpu.vector_store %arg4[%c0_25, %c0_26], %92 {strides = array<i32>} : memref<256x1024xf32, #tpu.memory_space<vmem>>, vector<256x1024xf32>,
    return
  }
  func.func @transform_0(%arg0: i32) -> (i32, i32) {
    %c0_i32 = arith.constant 0 : i32
    %c0_i32_0 = arith.constant 0 : i32
    return %arg0, %c0_i32 : i32, i32
  }
  func.func @transform_1(%arg0: i32) -> (i32, i32) {
    %c0_i32 = arith.constant 0 : i32
    %c0_i32_0 = arith.constant 0 : i32
    %c0_i32_1 = arith.constant 0 : i32
    return %c0_i32, %c0_i32_0 : i32, i32
  }
  func.func @transform_2(%arg0: i32) -> (i32, i32) {
    %c0_i32 = arith.constant 0 : i32
    %c0_i32_0 = arith.constant 0 : i32
    %c0_i32_1 = arith.constant 0 : i32
    return %c0_i32, %c0_i32_0 : i32, i32
  }
  func.func @transform_3(%arg0: i32) -> (i32, i32) {
    %c0_i32 = arith.constant 0 : i32
    %c0_i32_0 = arith.constant 0 : i32
    return %arg0, %c0_i32 : i32, i32
  }
}

</mosaic_0001>

<bundles_post_ra>
// kernel: client_leakyrelu_net_1_bm.1
= control target key start
LH: loop header
LB: loop body
LE: loop exit
PB: predicated region body
PF: predicated region fallthrough
CT: control target
= control target key end

     0   :  { %8 = vsyncpa [#allocation3], 0  ;;  %s7247_s0 = inlined_call_operand.vmem [shape: f32[512,32], index: 0, kind: input, shape index: {}]   ;;  %s7248_s1 = inlined_call_operand.hbm [shape: bf16[32,1024], index: 1, kind: input, shape index: {}]   ;;  %s7249_s2 = inlined_call_operand.hbm [shape: f32[1,1024], index: 2, kind: input, shape index: {}]   ;;  %s7250_s3 = inlined_call_operand.vmem [shape: f32[512,1024], index: 3, kind: output, shape index: {}]  }
   0x1   :  { %9 = vsyncpa [#allocation5], 0  ;;  %s3985_s12 = smov 0  }
   0x2 LB: > { %s3038_s13 = sadd.s32 4294967295, %s3953_s12   ;;  %p3040_p0 = scmp.ge.s32.totalorder %s3953_s12, 1  ;;  %s3953_s12 = sphi %s3985_s12, %s15_s12  }
   0x3   : > { %p114_p1 = scmp.lt.s32.totalorder %s3953_s12, 3  ;;  %s3955_s14 = smov [#allocation2]  }
   0x4   : > { %s126_s15 = sshll.u32 %s3955_s14, 4  ;;  %p3999_p3 = scmp.eq.s32.totalorder %s3038_s13, 0  ;;  %s127_s15 = int_to_ptr.vmem [resolvable:$true] %s126_s15 }
   0x5   : > { %p3993_p2 = pnand %p3040_p0, %p114_p1  ;;  %s3956_s18 = smov [#allocation4]  }
   0x6   : > { %s140_s19 = sshll.u32 %s3956_s18, 4  ;;  %s3898_s21 = scalar_lea.vmem %s127_s15, 2048  ;;  %s141_s19 = int_to_ptr.vmem [resolvable:$true] %s140_s19 }
   0x7   : > { %p3244_p4 = pneg %p3993_p2  ;;  %p3899_p7 = scmp.ne.s32.totalorder %s127_s15, %s3898_s21 }
   0x8   : > { %p3906_p10 = scmp.lt.s32.totalorder %s127_s15, %s127_s15  ;;  %p3907_p11 = scmp.lt.s32.totalorder %s3898_s21, %s3898_s21 }
   0x9   : > { %p4007_p5 = pnand %p3999_p3, %p3244_p4 }
   0xa   : > { %p3908_p12 = por %p3907_p11, %p3906_p10 }
   0xb   : > { %p3889_p6 = pneg %p4007_p5 }
   0xd   : > { %p3901_p8 = pnand %p3899_p7, %p3889_p6 }
   0xf   : > { %p3902_p9 = pneg %p3901_p8 }
  0x11   : > { %p3909_p13 = pnand %p3908_p12, %p3902_p9 }
  0x13   : > { %3912 = shalt.err (!%p3909_p13)
}
  0x14   : > { %s3957_s22 = smov 512   ;;  %s3958_s23 = smov 32  }
  0x15   : > { %3247 = dma.hbm_to_vmem [thread:$0]  (!%p4007_p5), %s7248_s1, 2048, %s127_s15, [#allocation3], %s3957_s22, %s3957_s22, %s3958_s23  }
  0x16   : > { %s3924_s26 = scalar_lea.vmem %s141_s19, 128  ;;  %p3932_p7 = scmp.lt.s32.totalorder %s141_s19, %s141_s19 }
  0x17   : > { %p3925_p0 = scmp.ne.s32.totalorder %s141_s19, %s3924_s26  ;;  %p3933_p8 = scmp.lt.s32.totalorder %s3924_s26, %s3924_s26 }
  0x19   : > { %p3927_p1 = pnand %p3925_p0, %p3889_p6  ;;  %p3934_p10 = por %p3933_p8, %p3932_p7 }
  0x1b   : > { %p3928_p4 = pneg %p3927_p1 }
  0x1d   : > { %p3935_p9 = pnand %p3934_p10, %p3928_p4 }
  0x1f   : > { %3938 = shalt.err (!%p3935_p9)
}
  0x20   : > { %3250 = dma.hbm_to_vmem [thread:$0]  (!%p4007_p5), %s7249_s2, 128, %s141_s19, [#allocation5]  }
  0x21   : > { %162 = sbr.rel (%p3993_p2) target bundleno = 1017 (0x3f9), region = 32 }
  0x26   : > { %3944 = dma.done.wait (%p3999_p3), [#allocation3], 2048  }
  0x27   : > { %3946 = vsyncadd (%p3999_p3), [#allocation3], 4294965248 }
  0x28   : > { %3948 = dma.done.wait (%p3999_p3), [#allocation5], 128  }
  0x29   : > { %3950 = vsyncadd (%p3999_p3), [#allocation5], 4294967168  ;;  %s3047_s29 = sshll.u32 %s3038_s13, 5  ;;  %v7254_v0 = vmov 5  }
  0x2a   : > { %3274 = vset.pattern.permute.xlu1 %v7254_v0  ;;  %3273 = vset.pattern.permute.xlu0 %v7254_v0  ;;  %p192_p2 = scmp.lt.s32.totalorder %s3047_s29, 63 }
  0x2c   : > { %s8046_s29 = smov (!%p192_p2, %s3047_s29), 63 }
  0x2d   : > { %s3048_s30 = sshll.u32 %s8046_s29, 3  ;;  %s3171_s7 = sshll.u32 %s8046_s29, 6 }
  0x2e   : > { %s4049_s6 = scalar_lea.vmem %s7247_s0, %s3048_s30  ;;  %s6014_s10 = scalar_lea.vmem %s7250_s3, %s3171_s7 }
  0x2f   : > { %v4052_v1 = vld [vmem:[%s4049_s6 + $0x10] sm:$0xff]  ;;  %v4055_v2 = vld [vmem:[%s4049_s6] sm:$0xff]  ;;  %v4058_v3 = vld [vmem:[%s4049_s6 + $0x18] sm:$0xff] }
  0x30   : > { %v3176_v4 = vtrunc.f32 %v4052_v1  ;;  %v3172_v5 = vtrunc.f32 %v4055_v2  ;;  %v3178_v6 = vtrunc.f32 %v4058_v3  ;;  %v4064_v7 = vld [vmem:[%s4049_s6 + $0x8] sm:$0xff]  ;;  %v4070_v9 = vld [vmem:[%s4049_s6 + $0x20] sm:$0xff]  ;;  %v4076_v16 = vld [vmem:[%s4049_s6 + $0x38] sm:$0xff] }
  0x31   : > { %v4067_v8 = vld [vmem:[%s4049_s6 + $0x28] sm:$0xff]  ;;  %v3174_v10 = vtrunc.f32 %v4064_v7  ;;  %v3180_v15 = vtrunc.f32 %v4070_v9  ;;  %v211_v18 = vld [vmem:[%s4049_s6 + $0x30] sm:$0xff]  ;;  %v3186_v22 = vtrunc.f32 %v4076_v16  ;;  %v213_v28 = vld [vmem:[%s4049_s6 + $0x40] sm:$0xff] }
  0x32   : > { %v3182_v11 = vtrunc.f32 %v4067_v8  ;;  %v3177_v12 = vcvt.f32.s32 %v3176_v4  ;;  %v3173_v13 = vcvt.f32.s32 %v3172_v5  ;;  %v3179_v14 = vcvt.f32.s32 %v3178_v6  ;;  %v214_v27 = vld [vmem:[%s4049_s6 + $0x48] sm:$0xff]  ;;  %v216_v35 = vld [vmem:[%s4049_s6 + $0x58] sm:$0xff]  ;;  %v215_v36 = vld [vmem:[%s4049_s6 + $0x50] sm:$0xff] }
  0x33   : > { %v3175_v17 = vcvt.f32.s32 %v3174_v10  ;;  %v3181_v25 = vcvt.f32.s32 %v3180_v15  ;;  %v3184_v26 = vtrunc.f32 %v211_v18  ;;  %v3187_v30 = vcvt.f32.s32 %v3186_v22  ;;  %v218_v43 = vld [vmem:[%s4049_s6 + $0x68] sm:$0xff]  ;;  %v217_v44 = vld [vmem:[%s4049_s6 + $0x60] sm:$0xff]  ;;  %v220_v51 = vld [vmem:[%s4049_s6 + $0x78] sm:$0xff] }
  0x34   : > { %v4079_v19 = vadd.s32 4294967295, %v3177_v12  ;;  %v4081_v20 = vadd.s32 4294967295, %v3173_v13  ;;  %v3183_v21 = vcvt.f32.s32 %v3182_v11  ;;  %v4086_v23 = vadd.s32 4294967295, %v3179_v14  ;;  %v219_v52 = vld [vmem:[%s4049_s6 + $0x70] sm:$0xff]  ;;  %v222_v59 = vld [vmem:[%s4049_s6 + $0x88] sm:$0xff]  ;;  %v221_v60 = vld [vmem:[%s4049_s6 + $0x80] sm:$0xff] }
  0x35   : > { %v4088_v24 = vadd.s32 4294967295, %v3175_v17  ;;  %v4096_v31 = vadd.s32 4294967295, %v3181_v25  ;;  %v3185_v32 = vcvt.f32.s32 %v3184_v26  ;;  %v3190_v33 = vtrunc.f32 %v214_v27  ;;  %v224_v10 = vld [vmem:[%s4049_s6 + $0x98] sm:$0xff]  ;;  %v4132_v11 = vld [vmem:[%s4049_s6 + $0x90] sm:$0xff]  ;;  %v4143_v22 = vld [vmem:[%s4049_s6 + $0xa0] sm:$0xff] }
  0x36   : > { %344 = vperm.xlu1 %3274, %v4079_v19   ;;  %338 = vperm.xlu0 %3273, %v4081_v20   ;;  %v4092_v29 = vadd.s32 4294967295, %v3183_v21  ;;  %v3188_v34 = vtrunc.f32 %v213_v28  ;;  %v4100_v37 = vadd.s32 4294967295, %v3187_v30  ;;  %v3194_v38 = vtrunc.f32 %v216_v35  ;;  %v226_v21 = vld [vmem:[%s4049_s6 + $0xa8] sm:$0xff] }
  0x37   : > { %v4104_v39 = vadd.s32 4294967295, %v3185_v32  ;;  %v3191_v40 = vcvt.f32.s32 %v3190_v33  ;;  %v3192_v42 = vtrunc.f32 %v215_v36  ;;  %v3198_v45 = vtrunc.f32 %v218_v43  ;;  %v228_v33 = vld [vmem:[%s4049_s6 + $0xb8] sm:$0xff]  ;;  %v230_v43 = vld [vmem:[%s4049_s6 + $0xc8] sm:$0xff] }
  0x38   : > { %v3189_v41 = vcvt.f32.s32 %v3188_v34  ;;  %v3196_v46 = vtrunc.f32 %v217_v44  ;;  %v3195_v49 = vcvt.f32.s32 %v3194_v38  ;;  %v3202_v54 = vtrunc.f32 %v220_v51  ;;  %v4154_v34 = vld [vmem:[%s4049_s6 + $0xb0] sm:$0xff] }
  0x39   : > { %v4110_v47 = vadd.s32 4294967295, %v3191_v40  ;;  %v3193_v50 = vcvt.f32.s32 %v3192_v42  ;;  %v3199_v53 = vcvt.f32.s32 %v3198_v45  ;;  %v3200_v58 = vtrunc.f32 %v219_v52 }
  0x3a   : > { %347 = vperm.xlu1 %3274, %v4086_v23   ;;  %341 = vperm.xlu0 %3273, %v4088_v24   ;;  %v4112_v48 = vadd.s32 4294967295, %v3189_v41  ;;  %v4118_v55 = vadd.s32 4294967295, %v3195_v49  ;;  %v3197_v57 = vcvt.f32.s32 %v3196_v46  ;;  %v3203_v62 = vcvt.f32.s32 %v3202_v54 }
  0x3b   : > { %v4120_v56 = vadd.s32 4294967295, %v3193_v50  ;;  %v4124_v61 = vadd.s32 4294967295, %v3199_v53  ;;  %v3201_v4 = vcvt.f32.s32 %v3200_v58  ;;  %v3206_v5 = vtrunc.f32 %v222_v59 }
  0x3c   : > { %v4128_v63 = vadd.s32 4294967295, %v3197_v57  ;;  %v3204_v6 = vtrunc.f32 %v221_v60  ;;  %v4134_v12 = vadd.s32 4294967295, %v3203_v62  ;;  %v3210_v13 = vtrunc.f32 %v224_v10  ;;  %v1499_v62 = vld [vmem:[#allocation2 + $0x60] sm:$0xff] }
  0x3d   : > { %v4138_v14 = vadd.s32 4294967295, %v3201_v4  ;;  %v3207_v15 = vcvt.f32.s32 %v3206_v5  ;;  %v3208_v18 = vtrunc.f32 %v4132_v11  ;;  %v3214_v25 = vtrunc.f32 %v226_v21  ;;  %v1496_v4 = vld [vmem:[#allocation2 + $0x48] sm:$0xff] }
  0x3e   : > { %353 = vperm.xlu1 %3274, %v4092_v29   ;;  %350 = vperm.xlu0 %3273, %v4096_v31   ;;  %v3205_v17 = vcvt.f32.s32 %v3204_v6  ;;  %v3212_v26 = vtrunc.f32 %v4143_v22  ;;  %v3211_v30 = vcvt.f32.s32 %v3210_v13  ;;  %v3218_v36 = vtrunc.f32 %v228_v33  ;;  %v1500_v5 = vld [vmem:[#allocation2 + $0x68] sm:$0xff] }
  0x3f   : > { %v4148_v27 = vadd.s32 4294967295, %v3207_v15  ;;  %v3209_v32 = vcvt.f32.s32 %v3208_v18  ;;  %v3215_v35 = vcvt.f32.s32 %v3214_v25  ;;  %v3216_v42 = vtrunc.f32 %v4154_v34  ;;  %v1487_v15 = vld [vmem:[#allocation2] sm:$0xff]  ;;  %v1488_v18 = vld [vmem:[#allocation2 + $0x8] sm:$0xff] }
  0x40   : > { %v4150_v28 = vadd.s32 4294967295, %v3205_v17  ;;  %v4158_v38 = vadd.s32 4294967295, %v3211_v30  ;;  %v3213_v41 = vcvt.f32.s32 %v3212_v26  ;;  %v3219_v44 = vcvt.f32.s32 %v3218_v36  ;;  %v1491_v17 = vld [vmem:[#allocation2 + $0x20] sm:$0xff]  ;;  %v1492_v25 = vld [vmem:[#allocation2 + $0x28] sm:$0xff] }
  0x41   : > { %v4160_v40 = vadd.s32 4294967295, %v3209_v32  ;;  %v4166_v45 = vadd.s32 4294967295, %v3215_v35  ;;  %v3217_v49 = vcvt.f32.s32 %v3216_v42  ;;  %v3222_v50 = vtrunc.f32 %v230_v43 }
  0x42   : > { %359 = vperm.xlu1 %3274, %v4100_v37   ;;  %356 = vperm.xlu0 %3273, %v4104_v39   ;;  %v4168_v46 = vadd.s32 4294967295, %v3213_v41  ;;  %v4172_v51 = vadd.s32 4294967295, %v3219_v44  ;;  %v7262_v57 = vmov 6   ;;  %v7260_v58 = vmov 7  }
  0x43   : > { %v4174_v52 = vadd.s32 4294967295, %v3217_v49  ;;  %v3223_v53 = vcvt.f32.s32 %v3222_v50  ;;  %v7258_v59 = vmov 9   ;;  %v7256_v60 = vmov 8   ;;  %v231_v49 = vld [vmem:[%s4049_s6 + $0xd0] sm:$0xff] }
  0x44   : > { %7297 = vst [vmem:[#allocation8_spill] sm:$0xff] %v4172_v51  ;;  %v3100_v6 = vcombine.high %v1496_v4, %v1500_v5  ;;  %v3099_v13 = vcombine.low %v1496_v4, %v1500_v5  ;;  %v3090_v21 = vcombine.high %v1487_v15, %v1491_v17  ;;  %v3092_v26 = vcombine.high %v1488_v18, %v1492_v25 }
  0x45   : > { %7298 = vst [vmem:[#allocation9_spill] sm:$0xff] %v4174_v52  ;;  %v4178_v54 = vadd.s32 4294967295, %v3223_v53  ;;  %v3089_v30 = vcombine.low %v1487_v15, %v1491_v17  ;;  %v3091_v32 = vcombine.low %v1488_v18, %v1492_v25  ;;  %v7252_v33 = vmov 0  }
  0x46   : > { %365 = vperm.xlu1 %3274, %v4110_v47   ;;  %362 = vperm.xlu0 %3273, %v4112_v48  }
  0x47   : > { %7299 = vst [vmem:[#allocation10_spill] sm:$0xff] %v4178_v54  ;;  %1879 = vmatprep.subr.bf16.mxu1 %v3100_v6  ;;  %1706 = vmatprep.mubr.bf16.mxu0 %v7252_v33 }
  0x48   : > { %1880 = vmatpush1.bf16.msra.mxu1 %v3099_v13  ;;  %1899 = vmatprep.mubr.bf16.mxu1 %v7252_v33  ;;  %v233_v33 = vld [vmem:[%s4049_s6 + $0xe0] sm:$0xff] }
  0x49   : > { %1881 = vmatprep.subr.bf16.mxu1 %v3092_v26 }
  0x4a   : > { %371 = vperm.xlu1 %3274, %v4118_v55   ;;  %368 = vperm.xlu0 %3273, %v4120_v56  }
  0x4c   : > { %1882 = vmatpush1.bf16.msra.mxu1 %v3091_v32 }
  0x4e   : > { %377 = vperm.xlu1 %3274, %v4124_v61   ;;  %374 = vperm.xlu0 %3273, %v4128_v63  }
  0x52   : > { %383 = vperm.xlu1 %3274, %v4134_v12   ;;  %380 = vperm.xlu0 %3273, %v4138_v14  }
  0x56   : > { %389 = vperm.xlu1 %3274, %v4148_v27   ;;  %386 = vperm.xlu0 %3273, %v4150_v28  }
  0x5a   : > { %395 = vperm.xlu1 %3274, %v4158_v38   ;;  %392 = vperm.xlu0 %3273, %v4160_v40  }
  0x5e   : > { %401 = vperm.xlu1 %3274, %v4166_v45   ;;  %398 = vperm.xlu0 %3273, %v4168_v46  }
  0x62   : > { %407 = vperm.xlu1 %3274, %v4172_v51   ;;  %404 = vperm.xlu0 %3273, %v4174_v52  }
  0x66   : > { %413 = vperm.xlu1 %3274, %v4178_v54   ;;  %3276 = vset.pattern.permute.xlu0 %v7262_v57 }
  0x67   : > { %568 = vperm.xlu0 %3276, %v4088_v24  }
  0x6a   : > { %3275 = vset.pattern.permute.xlu1 %v7262_v57 }
  0x6b   : > { %565 = vperm.xlu1 %3275, %v4081_v20   ;;  %577 = vperm.xlu0 %3276, %v4096_v31  }
  0x6f   : > { %3277 = vset.pattern.permute.xlu1 %v7260_v58  ;;  %586 = vperm.xlu0 %3276, %v4100_v37  }
  0x70   : > { %792 = vperm.xlu1 %3277, %v4081_v20  }
  0x73   : > { %3289 = vset.pattern.permute.xlu0 %v7258_v59 }
  0x74   : > { %795 = vperm.xlu1 %3277, %v4088_v24   ;;  %1249 = vperm.xlu0 %3289, %v4088_v24  }
  0x78   : > { %3278 = vset.pattern.permute.xlu1 %v7256_v60  ;;  %1258 = vperm.xlu0 %3289, %v4096_v31  }
  0x79   : > { %1022 = vperm.xlu1 %3278, %v4088_v24   ;;  %v1495_v24 = vld [vmem:[#allocation2 + $0x40] sm:$0xff] }
  0x7a   : > { %v3097_v10 = vcombine.low %v1495_v24, %v1499_v62 }
  0x7c   : > { %1267 = vperm.xlu0 %3289, %v4100_v37  }
  0x7d   : > { %3279 = vset.pattern.permute.xlu1 %v7258_v59 }
  0x7e   : > { %1246 = vperm.xlu1 %3279, %v4081_v20  }
  0x80   : > { %1276 = vperm.xlu0 %3289, %v4120_v56  }
  0x82   : > { %3280 = vset.pattern.permute.xlu1 %v7262_v57 }
  0x83   : > { %571 = vperm.xlu1 %3280, %v4079_v19  }
  0x84   : > { %1285 = vperm.xlu0 %3289, %v4124_v61  }
  0x87   : > { %574 = vperm.xlu1 %3280, %v4086_v23  }
  0x88   : > { %3305 = vset.pattern.permute.xlu0 %v7260_v58 }
  0x89   : > { %798 = vperm.xlu0 %3305, %v4079_v19  }
  0x8b   : > { %3281 = vset.pattern.permute.xlu1 %v7260_v58 }
  0x8c   : > { %801 = vperm.xlu1 %3281, %v4086_v23  }
  0x8d   : > { %807 = vperm.xlu0 %3305, %v4092_v29  }
  0x90   : > { %3282 = vset.pattern.permute.xlu1 %v7256_v60 }
  0x91   : > { %1025 = vperm.xlu1 %3282, %v4079_v19   ;;  %816 = vperm.xlu0 %3305, %v4112_v48  }
  0x95   : > { %3283 = vset.pattern.permute.xlu1 %v7258_v59  ;;  %825 = vperm.xlu0 %3305, %v4118_v55  }
  0x96   : > { %1252 = vperm.xlu1 %3283, %v4079_v19   ;;  %v3098_v19 = vcombine.high %v1495_v24, %v1499_v62  ;;  %v3224_v62 = vtrunc.f32 %v231_v49 }
  0x98   : > { %1686 = vmatprep.subr.bf16.mxu0 %v3098_v19  ;;  %v3225_v6 = vcvt.f32.s32 %v3224_v62 }
  0x99   : > { %834 = vperm.xlu0 %3305, %v4138_v14   ;;  %1687 = vmatpush1.bf16.msra.mxu0 %v3097_v10 }
  0x9a   : > { %1255 = vperm.xlu1 %3283, %v4086_v23   ;;  %1688 = vmatprep.subr.bf16.mxu0 %v3090_v21  ;;  %v4281_v15 = vadd.s32 4294967295, %v3225_v6  ;;  %v232_v6 = vld [vmem:[%s4049_s6 + $0xd8] sm:$0xff] }
  0x9c   : > { %7302 = vst [vmem:[#allocation13_spill] sm:$0xff] %v4281_v15 }
  0x9d   : > { %843 = vperm.xlu0 %3305, %v4148_v27   ;;  %1689 = vmatpush1.bf16.msra.mxu0 %v3089_v30 }
  0x9e   : > { %3284 = vset.pattern.permute.xlu1 %v7262_v57 }
  0x9f   : > { %580 = vperm.xlu1 %3284, %v4092_v29  }
  0xa1   : > { %852 = vperm.xlu0 %3305, %v4168_v46  }
  0xa3   : > { %3285 = vset.pattern.permute.xlu1 %v7260_v58 }
  0xa4   : > { %804 = vperm.xlu1 %3285, %v4096_v31  }
  0xa5   : > { %861 = vperm.xlu0 %3305, %v4172_v51   ;;  %v7419_v51 = vmov 0 }
  0xa8   : > { %3286 = vset.pattern.permute.xlu1 %v7256_v60 }
  0xa9   : > { %1031 = vperm.xlu1 %3286, %v4096_v31   ;;  %3324 = vset.pattern.permute.xlu0 %v7256_v60 }
  0xaa   : > { %1019 = vperm.xlu0 %3324, %v4081_v20  }
  0xad   : > { %1034 = vperm.xlu1 %3286, %v4092_v29  }
  0xae   : > { %1028 = vperm.xlu0 %3324, %v4086_v23  }
  0xb1   : > { %v4231_v31 = vpop.permute.xlu1 %344  ;;  %3287 = vset.pattern.permute.xlu1 %v7258_v59  ;;  %v4234_v35 = vpop.permute.xlu0 %338 }
  0xb2   : > { %1261 = vperm.xlu1 %3287, %v4092_v29   ;;  %1037 = vperm.xlu0 %3324, %v4104_v39   ;;  %v229_v29 = vld [vmem:[%s4049_s6 + $0xc0] sm:$0xff] }
  0xb3   : > { %v3220_v44 = vtrunc.f32 %v229_v29 }
  0xb5   : > { %v4238_v20 = vpop.permute.xlu1 %347  ;;  %v4240_v36 = vpop.permute.xlu0 %341  ;;  %v3221_v24 = vcvt.f32.s32 %v3220_v44 }
  0xb6   : > { %3288 = vset.pattern.permute.xlu1 %v7262_v57  ;;  %1046 = vperm.xlu0 %3324, %v4110_v47  }
  0xb7   : > { %583 = vperm.xlu1 %3288, %v4104_v39   ;;  %v4272_v5 = vadd.s32 4294967295, %v3221_v24  ;;  %v7310_v24 = vmov 0 }
  0xb9   : > { %v4245_v23 = vpop.permute.xlu1 %353  ;;  %v4247_v41 = vpop.permute.xlu0 %350  ;;  %7300 = vst [vmem:[#allocation11_spill] sm:$0xff] %v4272_v5 }
  0xba   : > { %1055 = vperm.xlu0 %3324, %v4128_v63  }
  0xbb   : > { %3290 = vset.pattern.permute.xlu1 %v7260_v58 }
  0xbc   : > { %810 = vperm.xlu1 %3290, %v4104_v39  }
  0xbd   : > { %v4253_v42 = vpop.permute.xlu1 %359  ;;  %v4255_v43 = vpop.permute.xlu0 %356 }
  0xbe   : > { %1064 = vperm.xlu0 %3324, %v4134_v12  }
  0xc0   : > { %813 = vperm.xlu1 %3290, %v4100_v37  }
  0xc1   : > { %v4260_v50 = vpop.permute.xlu1 %365  ;;  %v4262_v53 = vpop.permute.xlu0 %362 }
  0xc2   : > { %1073 = vperm.xlu0 %3324, %v4160_v40  }
  0xc4   : > { %3291 = vset.pattern.permute.xlu1 %v7256_v60 }
  0xc5   : > { %v4266_v4 = vpop.permute.xlu1 %371  ;;  %1040 = vperm.xlu1 %3291, %v4100_v37   ;;  %v4269_v19 = vpop.permute.xlu0 %368  ;;  %v7251_v37 = vlaneseq }
  0xc6   : > { %1082 = vperm.xlu0 %3324, %v4166_v45  }
  0xc7   : > { %v4291_v21 = vand.u32 127, %v7251_v37  ;;  %v7315_v37 = vmov 0 }
  0xc9   : > { %v4274_v10 = vpop.permute.xlu1 %377  ;;  %3292 = vset.pattern.permute.xlu1 %v7258_v59  ;;  %v4277_v13 = vpop.permute.xlu0 %374  ;;  %v4301_v26 = vadd.s32 4294967291, %v4291_v21  ;;  %vm7279_vm1 = vcmp.lt.s32.totalorder %v4291_v21, 5  ;;  %vm7288_vm2 = vcmp.ge.s32.totalorder %v4291_v21, 5  ;;  %vm7281_vm3 = vcmp.lt.s32.totalorder %v4291_v21, 16 }
  0xca   : > { %7301 = vst [vmem:[#allocation12_spill] sm:$0xff] %v4277_v13  ;;  %1264 = vperm.xlu1 %3292, %v4104_v39   ;;  %1091 = vperm.xlu0 %3324, %v4272_v5   ;;  %v4313_v29 = vsel %vm7279_vm1, %v4132_v11, 0.0  ;;  %v4335_v62 = vsel %vm7279_vm1, %v4143_v22, 0.0  ;;  %v4362_v11 = vsel %vm7279_vm1, %v4154_v34, 0.0 }
  0xcb   : > { %7308 = vst [vmem:[#allocation19_spill] sm:$0xff] %v4313_v29  ;;  %7313 = vst [vmem:[#allocation22_spill] sm:$0xff] %v4335_v62  ;;  %vm437_vm7 = vcmp.eq.s32.totalorder %v4301_v26, %v4247_v41  ;;  %v3226_v41 = vtrunc.f32 %v232_v6  ;;  %v7318_v6 = vmov 0  ;;  %vm440_vm14 = vcmp.eq.s32.totalorder %v4301_v26, %v4253_v42 }
  0xcc   : > { %vm470_vm11 = vmand %vm437_vm7, %vm7288_vm2  ;;  %vm7285_vm7 = vcmp.ge.s32.totalorder %v4291_v21, 16 }
  0xcd   : > { %v4283_v17 = vpop.permute.xlu1 %383  ;;  %v4285_v18 = vpop.permute.xlu0 %380  ;;  %v3227_v0 = vcvt.f32.s32 %v3226_v41  ;;  %vm4387_vm15 = vmand %vm470_vm11, %vm7281_vm3 }
  0xce   : > { %7303 = vst [vmem:[#allocation14_spill] sm:$0xff] %v4283_v17  ;;  %7304 = vst [vmem:[#allocation15_spill] sm:$0xff] %v4285_v18  ;;  %3293 = vset.pattern.permute.xlu1 %v7262_v57  ;;  %1097 = vperm.xlu0 %3324, %v4281_v15   ;;  %v7331_v18 = vmov 5  }
  0xcf   : > { %589 = vperm.xlu1 %3293, %v4112_v48   ;;  %v4404_v34 = vadd.s32 4294967295, %v3227_v0  ;;  %v247_v0 = vsel %vm7279_vm1, %v4076_v16, 0.0 }
  0xd1   : > { %v4293_v25 = vpop.permute.xlu1 %389  ;;  %v4295_v39 = vpop.permute.xlu0 %386  ;;  %7322 = vst [vmem:[#allocation25_spill] sm:$0xff] %v4404_v34 }
  0xd2   : > { %7305 = vst [vmem:[#allocation16_spill] sm:$0xff] %v4293_v25  ;;  %7306 = vst [vmem:[#allocation17_spill] sm:$0xff] %v4295_v39  ;;  %3334 = vset.pattern.permute.xlu0 %v7262_v57  ;;  %v7329_v57 = vmov 8  }
  0xd3   : > { %592 = vperm.xlu1 %3293, %v4110_v47   ;;  %595 = vperm.xlu0 %3334, %v4120_v56  }
  0xd5   : > { %v4303_v30 = vpop.permute.xlu1 %395  ;;  %v393_v32 = vpop.permute.xlu0 %392 }
  0xd6   : > { %7307 = vst [vmem:[#allocation18_spill] sm:$0xff] %v4303_v30  ;;  %vm451_vm0 = vcmp.eq.s32.totalorder %v4301_v26, %v393_v32 }
  0xd7   : > { %3294 = vset.pattern.permute.xlu1 %v7260_v58  ;;  %604 = vperm.xlu0 %3334, %v4124_v61   ;;  %vm484_vm4 = vmand %vm451_vm0, %vm7288_vm2 }
  0xd8   : > { %819 = vperm.xlu1 %3294, %v4110_v47   ;;  %vm4323_vm5 = vmand %vm484_vm4, %vm7281_vm3 }
  0xd9   : > { %v4319_v44 = vpop.permute.xlu1 %401  ;;  %v399_v49 = vpop.permute.xlu0 %398  ;;  %v7311_v24 = vsel %vm4323_vm5, 4294967295, %v7310_v24  ;;  %vm473_vm0 = vmand %vm440_vm14, %vm7288_vm2 }
  0xda   : > { %7309 = vst [vmem:[#allocation20_spill] sm:$0xff] %v4319_v44  ;;  %7312 = vst [vmem:[#allocation21_spill] sm:$0xff] %v7311_v24  ;;  %vm453_vm6 = vcmp.eq.s32.totalorder %v4301_v26, %v399_v49 }
  0xdb   : > { %613 = vperm.xlu0 %3334, %v4150_v28   ;;  %vm486_vm8 = vmand %vm453_vm6, %vm7288_vm2 }
  0xdc   : > { %3295 = vset.pattern.permute.xlu1 %v7256_v60  ;;  %vm4348_vm9 = vmand %vm486_vm8, %vm7281_vm3  ;;  %v3228_v60 = vtrunc.f32 %v233_v33  ;;  %v244_v33 = vsel %vm7279_vm1, %v4070_v9, 0.0  ;;  %vm7280_vm8 = vcmp.lt.s32.totalorder %v4291_v21, 18  ;;  %v7325_v9 = vmov 6  }
  0xdd   : > { %v4343_v32 = vpop.permute.xlu1 %407  ;;  %1043 = vperm.xlu1 %3295, %v4112_v48   ;;  %v405_v49 = vpop.permute.xlu0 %404  ;;  %v7316_v37 = vsel %vm4348_vm9, 4294967295, %v7315_v37  ;;  %vm4408_vm6 = vmand %vm473_vm0, %vm7281_vm3  ;;  %vm433_vm0 = vcmp.eq.s32.totalorder %v4301_v26, %v4234_v35  ;;  %vm438_vm1 = vcmp.eq.s32.totalorder %v4301_v26, %v4245_v23  ;;  %vm7340_vm9 = vcmp.eq.s32.totalorder %v4301_v26, %v4231_v31 }
  0xde   : > { %7314 = vst [vmem:[#allocation23_spill] sm:$0xff] %v4343_v32  ;;  %7317 = vst [vmem:[#allocation24_spill] sm:$0xff] %v7316_v37  ;;  %vm455_vm10 = vcmp.eq.s32.totalorder %v4301_v26, %v405_v49  ;;  %v3229_v58 = vcvt.f32.s32 %v3228_v60  ;;  %v538_v16 = vsel %vm4408_vm6, 1.0, %v247_v0  ;;  %v7327_v32 = vmov 7  }
  0xdf   : > { %622 = vperm.xlu0 %3334, %v4158_v38   ;;  %vm488_vm12 = vmand %vm455_vm10, %vm7288_vm2  ;;  %v7349_v31 = vmov 0 }
  0xe0   : > { %vm4372_vm13 = vmand %vm488_vm12, %vm7281_vm3 }
  0xe1   : > { %v4367_v49 = vpop.permute.xlu1 %413  ;;  %3296 = vset.pattern.permute.xlu1 %v7258_v59  ;;  %v7319_v6 = vsel %vm4372_vm13, 4294967295, %v7318_v6  ;;  %vm4566_vm5 = vmand %vm7340_vm9, %vm7288_vm2  ;;  %vm7343_vm13 = vcmp.ge.s32.totalorder %v4291_v21, 18 }
  0xe2   : > { %1270 = vperm.xlu1 %3296, %v4112_v48   ;;  %v4377_v22 = vpop.permute.xlu0 %568  ;;  %v4392_v48 = vadd.s32 4294967280, %v4291_v21  ;;  %vm4588_vm9 = vmand %vm438_vm1, %vm7288_vm2 }
  0xe3   : > { %631 = vperm.xlu0 %3334, %v4174_v52   ;;  %v7350_v31 = vsel %vm4588_vm9, 4294967295, %v7349_v31 }
  0xe4   : > { %vm661_vm6 = vcmp.eq.s32.totalorder %v4392_v48, %v4377_v22  ;;  %v7388_v22 = vmov 0 }
  0xe6   : > { %1273 = vperm.xlu1 %3296, %v4110_v47   ;;  %v4397_v42 = vpop.permute.xlu1 %565  ;;  %v578_v41 = vpop.permute.xlu0 %577  ;;  %v535_v47 = vsel %vm4387_vm15, 1.0, %v244_v33  ;;  %v4429_v33 = vadd.s32 4294967295, %v3229_v58 }
  0xe7   : > { %vm664_vm4 = vcmp.eq.s32.totalorder %v4392_v48, %v578_v41  ;;  %640 = vperm.xlu0 %3334, %v4178_v54  }
  0xe8   : > { %vm697_vm10 = vmand %vm664_vm4, %vm7285_vm7  ;;  %7326 = vst [vmem:[#allocation26_spill] sm:$0xff] %v4429_v33  ;;  %vm434_vm4 = vcmp.eq.s32.totalorder %v4301_v26, %v4240_v36  ;;  %v7398_v36 = vmov 0 }
  0xe9   : > { %vm730_vm11 = vmand %vm697_vm10, %vm7280_vm8 }
  0xea   : > { %3297 = vset.pattern.permute.xlu1 %v7325_v9  ;;  %v587_v60 = vpop.permute.xlu0 %586  ;;  %v4431_v41 = vsel %vm730_vm11, 1.0, %v535_v47  ;;  %v7328_v47 = vmov 9   ;;  %vm4507_vm10 = vmand %vm433_vm0, %vm7288_vm2  ;;  %vm660_vm11 = vcmp.eq.s32.totalorder %v4392_v48, %v4397_v42 }
  0xeb   : > { %vm667_vm12 = vcmp.eq.s32.totalorder %v4392_v48, %v587_v60  ;;  %598 = vperm.xlu1 %3297, %v4118_v55   ;;  %v4426_v59 = vpop.permute.xlu1 %792  ;;  %646 = vperm.xlu0 %3334, %v4404_v34  }
  0xec   : > { %vm700_vm14 = vmand %vm667_vm12, %vm7285_vm7 }
  0xed   : > { %vm733_vm15 = vmand %vm700_vm14, %vm7280_vm8 }
  0xee   : > { %v4439_v60 = vsel %vm733_vm15, 1.0, %v538_v16  ;;  %vm4520_vm14 = vmand %vm434_vm4, %vm7288_vm2  ;;  %vm436_vm4 = vcmp.eq.s32.totalorder %v4301_v26, %v4238_v20  ;;  %v7341_v20 = vmov 0 }
  0xef   : > { %3298 = vset.pattern.permute.xlu1 %v7327_v32  ;;  %v4442_v62 = vpop.permute.xlu1 %795  ;;  %v4444_v37 = vpop.permute.xlu0 %1249  ;;  %649 = vperm.xlu0 %3334, %v4429_v33   ;;  %vm4543_vm8 = vmand %vm661_vm6, %vm7285_vm7  ;;  %v7342_v20 = vsel %vm4566_vm5, 4294967295, %v7341_v20 }
  0xf0   : > { %822 = vperm.xlu1 %3298, %v4120_v56   ;;  %vm4554_vm15 = vmand %vm660_vm11, %vm7285_vm7 }
  0xf1   : > { %vm4582_vm12 = vmand %vm436_vm4, %vm7288_vm2 }
  0xf3   : > { %v4448_v58 = vpop.permute.xlu0 %1258  ;;  %3338 = vset.pattern.permute.xlu0 %v7328_v47 }
  0xf4   : > { %3299 = vset.pattern.permute.xlu1 %v7329_v57  ;;  %v4452_v0 = vpop.permute.xlu1 %1022  ;;  %1294 = vperm.xlu0 %3338, %v4150_v28  }
  0xf5   : > { %1049 = vperm.xlu1 %3299, %v4120_v56  }
  0xf7   : > { %v4456_v16 = vpop.permute.xlu0 %1267 }
  0xf8   : > { %1303 = vperm.xlu0 %3338, %v4158_v38  }
  0xf9   : > { %1052 = vperm.xlu1 %3299, %v4118_v55   ;;  %v4460_v44 = vpop.permute.xlu1 %1246 }
  0xfb   : > { %v4462_v29 = vpop.permute.xlu0 %1276 }
  0xfc   : > { %1312 = vperm.xlu0 %3338, %v4174_v52  }
  0xfd   : > { %3300 = vset.pattern.permute.xlu1 %v7328_v47 }
  0xfe   : > { %1279 = vperm.xlu1 %3300, %v4118_v55   ;;  %v4467_v24 = vpop.permute.xlu1 %571 }
  0xff   : > { %v4469_v30 = vpop.permute.xlu0 %1285 }
 0x100   : > { %7330 = vst [vmem:[#allocation27_spill] sm:$0xff] %v4469_v30  ;;  %1321 = vperm.xlu0 %3338, %v4178_v54   ;;  %v7423_v30 = vmov 0 }
 0x102   : > { %3301 = vset.pattern.permute.xlu1 %v7325_v9  ;;  %v4473_v56 = vpop.permute.xlu1 %574 }
 0x103   : > { %601 = vperm.xlu1 %3301, %v4128_v63  }
 0x104   : > { %v4476_v39 = vpop.permute.xlu0 %798  ;;  %1327 = vperm.xlu0 %3338, %v4404_v34   ;;  %v4495_v34 = vadd.s32 4294967278, %v4291_v21 }
 0x106   : > { %vm887_vm0 = vcmp.eq.s32.totalorder %v4495_v34, %v4426_v59  ;;  %vm888_vm3 = vcmp.eq.s32.totalorder %v4495_v34, %v4442_v62 }
 0x107   : > { %3302 = vset.pattern.permute.xlu1 %v7327_v32  ;;  %v4480_v25 = vpop.permute.xlu1 %801  ;;  %vm4572_vm11 = vmand %vm887_vm0, %vm7343_vm13 }
 0x108   : > { %828 = vperm.xlu1 %3302, %v4128_v63   ;;  %v4483_v55 = vpop.permute.xlu0 %807  ;;  %1330 = vperm.xlu0 %3338, %v4429_v33   ;;  %v4503_v33 = vadd.s32 4294967269, %v4291_v21  ;;  %vm4594_vm0 = vmand %vm888_vm3, %vm7343_vm13  ;;  %vm7356_vm3 = vcmp.ge.s32.totalorder %v4291_v21, 27 }
 0x109   : > { %vm7359_vm5 = vmmov %vm7356_vm3 }
 0x10a   : > { %vm1342_vm6 = vcmp.eq.s32.totalorder %v4503_v33, %v4444_v37  ;;  %vm1345_vm7 = vcmp.eq.s32.totalorder %v4503_v33, %v4448_v58  ;;  %v7347_v37 = vmov 0  ;;  %v7354_v58 = vmov 0 }
 0x10b   : > { %v7348_v37 = vsel %vm4582_vm12, 4294967295, %v7347_v37  ;;  %vm7353_vm12 = vcmp.lt.s32.totalorder %v4291_v21, 16  ;;  %vm4612_vm13 = vmand %vm1342_vm6, %vm7356_vm3  ;;  %vm1341_vm2 = vcmp.eq.s32.totalorder %v4503_v33, %v4460_v44  ;;  %vm663_vm3 = vcmp.eq.s32.totalorder %v4392_v48, %v4473_v56 }
 0x10c   : > { %831 = vperm.xlu1 %3302, %v4124_v61   ;;  %v4487_v54 = vpop.permute.xlu1 %1025  ;;  %v4489_v17 = vpop.permute.xlu0 %816  ;;  %3342 = vset.pattern.permute.xlu0 %v7331_v18  ;;  %vm4606_vm1 = vmand %vm4520_vm14, %vm7353_vm12  ;;  %vm662_vm12 = vcmp.eq.s32.totalorder %v4392_v48, %v4467_v24  ;;  %vm7362_vm14 = vcmp.ge.s32.totalorder %v4291_v21, 25  ;;  %v7370_v24 = vmov 0  ;;  %v7373_v56 = vmov 0 }
 0x10d   : > { %410 = vperm.xlu0 %3342, %v4272_v5   ;;  %v4528_v5 = vadd.s32 4294967271, %v4291_v21  ;;  %v7355_v58 = vsel %vm4606_vm1, 4294967295, %v7354_v58  ;;  %vm4621_vm9 = vmand %vm1345_vm7, %vm7359_vm5  ;;  %vm7366_vm1 = vcmp.lt.s32.totalorder %v4291_v21, 18  ;;  %vm7369_vm7 = vcmp.ge.s32.totalorder %v4291_v21, 27 }
 0x10e   : > { %vm4641_vm5 = vmand %vm4543_vm8, %vm7366_vm1  ;;  %vm7375_vm1 = vcmp.ge.s32.totalorder %v4291_v21, 16  ;;  %vm7383_vm8 = vcmp.ge.s32.totalorder %v4291_v21, 18  ;;  %v7443_v18 = vmov 0 }
 0x10f   : > { %vm1115_vm4 = vcmp.eq.s32.totalorder %v4528_v5, %v4452_v0  ;;  %v7360_v0 = vmov 0 }
 0x110   : > { %3303 = vset.pattern.permute.xlu1 %v7329_v57  ;;  %v4514_v35 = vpop.permute.xlu0 %825  ;;  %v7361_v0 = vsel %vm4621_vm9, 4294967295, %v7360_v0  ;;  %vm4629_vm6 = vmand %vm1115_vm4, %vm7362_vm14  ;;  %vm889_vm4 = vcmp.eq.s32.totalorder %v4495_v34, %v4476_v39  ;;  %vm7372_vm14 = vcmp.lt.s32.totalorder %v4291_v21, 16 }
 0x111   : > { %1058 = vperm.xlu1 %3303, %v4124_v61   ;;  %v4531_v52 = vpop.permute.xlu1 %1252  ;;  %416 = vperm.xlu0 %3342, %v4281_v15   ;;  %v7357_v15 = vmov 0  ;;  %vm4657_vm9 = vmand %vm4507_vm10, %vm7372_vm14 }
 0x112   : > { %v7358_v15 = vsel %vm4612_vm13, 4294967295, %v7357_v15  ;;  %vm4647_vm13 = vmand %vm1341_vm2, %vm7369_vm7  ;;  %v7374_v56 = vsel %vm4657_vm9, 4294967295, %v7373_v56  ;;  %vm890_vm2 = vcmp.eq.s32.totalorder %v4495_v34, %v4480_v25  ;;  %vm7289_vm7 = vcmp.lt.s32.totalorder %v4291_v21, 25 }
 0x113   : > { %v7371_v24 = vsel %vm4647_vm13, 4294967295, %v7370_v24  ;;  %vm7378_vm10 = vmmov %vm7375_vm1  ;;  %v7381_v25 = vmov 0 }
 0x114   : > { %v4578_v62 = vpop.permute.xlu0 %834  ;;  %vm4674_vm14 = vmand %vm663_vm3, %vm7378_vm10  ;;  %vm1116_vm3 = vcmp.eq.s32.totalorder %v4528_v5, %v4487_v54  ;;  %vm7387_vm10 = vcmp.lt.s32.totalorder %v4291_v21, 18  ;;  %v7457_v54 = vmov 0 }
 0x115   : > { %7346 = vst [vmem:[#allocation28_spill] sm:$0xff] %v4578_v62  ;;  %3304 = vset.pattern.permute.xlu1 %v7328_v47  ;;  %v1256_v42 = vpop.permute.xlu1 %1255  ;;  %vm4691_vm9 = vmand %vm889_vm4, %vm7383_vm8  ;;  %vm7390_vm4 = vcmp.lt.s32.totalorder %v4291_v21, 27  ;;  %v7391_v62 = vmov 0 }
 0x116   : > { %1282 = vperm.xlu1 %3304, %v4128_v63   ;;  %v7367_v63 = vmov 0  ;;  %vm4703_vm13 = vmand %vm4554_vm15, %vm7387_vm10  ;;  %vm1343_vm15 = vcmp.eq.s32.totalorder %v4503_v33, %v4531_v52  ;;  %vm7396_vm10 = vcmp.lt.s32.totalorder %v4291_v21, 5  ;;  %v7409_v52 = vmov 0 }
 0x117   : > { %v7368_v63 = vsel %vm4641_vm5, 4294967295, %v7367_v63  ;;  %vm4664_vm5 = vmand %vm662_vm12, %vm7375_vm1  ;;  %vm892_vm12 = vcmp.eq.s32.totalorder %v4495_v34, %v4483_v55  ;;  %v7389_v22 = vsel %vm4703_vm13, 4294967295, %v7388_v22  ;;  %v241_v61 = vsel %vm7396_vm10, %v4064_v7, 0.0 }
 0x118   : > { %v4635_v44 = vpop.permute.xlu0 %843  ;;  %vm4685_vm1 = vmand %vm4594_vm0, %vm7289_vm7  ;;  %vm7393_vm7 = vcmp.ge.s32.totalorder %v4291_v21, 18  ;;  %vm7397_vm0 = vcmp.lt.s32.totalorder %v4291_v21, 25  ;;  %vm7407_vm10 = vcmp.lt.s32.totalorder %v4291_v21, 16 }
 0x119   : > { %7365 = vst [vmem:[#allocation29_spill] sm:$0xff] %v4635_v44  ;;  %v7382_v25 = vsel %vm4685_vm1, 4294967295, %v7381_v25  ;;  %vm4712_vm8 = vmand %vm4629_vm6, %vm7390_vm4 }
 0x11a   : > { %3306 = vset.pattern.permute.xlu1 %v7325_v9  ;;  %v581_v39 = vpop.permute.xlu1 %580  ;;  %v7392_v62 = vsel %vm4712_vm8, 4294967295, %v7391_v62  ;;  %vm4718_vm1 = vmand %vm890_vm2, %vm7393_vm7  ;;  %vm7400_vm2 = vcmp.lt.s32.totalorder %v4291_v21, 29  ;;  %vm7401_vm7 = vnez %v7361_v0  ;;  %vm7404_vm8 = vcmp.ge.s32.totalorder %v4291_v21, 18 }
 0x11b   : > { %607 = vperm.xlu1 %3306, %v4138_v14   ;;  %vm4731_vm6 = vmand %vm4572_vm11, %vm7397_vm0  ;;  %vm7408_vm11 = vnez %v7342_v20  ;;  %v7416_v20 = vmov 0 }
 0x11c   : > { %v4697_v55 = vpop.permute.xlu0 %852  ;;  %v7399_v36 = vsel %vm4731_vm6, 4294967295, %v7398_v36  ;;  %vm4739_vm4 = vmand %vm7401_vm7, %vm7400_vm2  ;;  %vm7411_vm6 = vcmp.ge.s32.totalorder %v4291_v21, 25  ;;  %vm7422_vm7 = vnez %v7358_v15  ;;  %v7431_v15 = vmov 0 }
 0x11d   : > { %7386 = vst [vmem:[#allocation30_spill] sm:$0xff] %v4697_v55  ;;  %v7402_v55 = vmov 0  ;;  %vm4745_vm13 = vmand %vm892_vm12, %vm7404_vm8  ;;  %vm7415_vm8 = vnez %v7348_v37 }
 0x11e   : > { %v7403_v55 = vsel %vm4739_vm4, 4294967295, %v7402_v55  ;;  %vm4753_vm0 = vmand %vm7408_vm11, %vm7407_vm10  ;;  %vm7421_vm11 = vcmp.lt.s32.totalorder %v4291_v21, 29 }
 0x11f   : > { %v7410_v52 = vsel %vm4753_vm0, 4294967295, %v7409_v52  ;;  %vm4759_vm2 = vmand %vm1116_vm3, %vm7411_vm6  ;;  %610 = vperm.xlu1 %3306, %v4134_v12   ;;  %v805_v0 = vpop.permute.xlu1 %804  ;;  %vm7418_vm3 = vnez %v7350_v31 }
 0x120   : > { %vm7414_vm12 = vmmov %vm7407_vm10  ;;  %v4797_v31 = vpop.permute.xlu0 %861 }
 0x121   : > { %vm4769_vm4 = vmand %vm7415_vm8, %vm7414_vm12  ;;  %vm7425_vm12 = vcmp.ge.s32.totalorder %v4291_v21, 27  ;;  %7428 = vst [vmem:[#allocation31_spill] sm:$0xff] %v4797_v31 }
 0x122   : > { %v7417_v20 = vsel %vm4769_vm4, 4294967295, %v7416_v20  ;;  %vm4777_vm6 = vmand %vm7418_vm3, %vm7407_vm10  ;;  %vm1344_vm4 = vcmp.eq.s32.totalorder %v4503_v33, %v1256_v42  ;;  %vm891_vm10 = vcmp.eq.s32.totalorder %v4495_v34, %v805_v0  ;;  %vm7429_vm3 = vnez %v7355_v58 }
 0x123   : > { %v7420_v51 = vsel %vm4777_vm6, 4294967295, %v7419_v51  ;;  %vm4785_vm0 = vmand %vm7422_vm7, %vm7421_vm11  ;;  %v532_v13 = vsel %vm7429_vm3, 1.0, %v241_v61  ;;  %vm7430_vm7 = vcmp.lt.s32.totalorder %v4291_v21, 18  ;;  %v7434_v42 = vmov 0  ;;  %3307 = vset.pattern.permute.xlu1 %v7327_v32 }
 0x124   : > { %v7424_v30 = vsel %vm4785_vm0, 4294967295, %v7423_v30  ;;  %vm4791_vm8 = vmand %vm1343_vm15, %vm7425_vm12  ;;  %vm7436_vm0 = vcmp.ge.s32.totalorder %v4291_v21, 18  ;;  %vm7437_vm3 = vcmp.lt.s32.totalorder %v4291_v21, 5  ;;  %837 = vperm.xlu1 %3307, %v4134_v12  }
 0x125   : > { %vm4805_vm11 = vmand %vm4664_vm5, %vm7430_vm7  ;;  %v240_v58 = vsel %vm7437_vm3, %v4055_v2, 0.0  ;;  %vm7438_vm5 = vcmp.lt.s32.totalorder %v4291_v21, 29  ;;  %vm7448_vm3 = vcmp.ge.s32.totalorder %v4291_v21, 16  ;;  %v1020_v0 = vpop.permute.xlu0 %1019 }
 0x126   : > { %v7432_v15 = vsel %vm4805_vm11, 4294967295, %v7431_v15  ;;  %vm7433_vm15 = vmmov %vm7430_vm7  ;;  %vm7439_vm7 = vnez %v7371_v24  ;;  %v7496_v24 = vmov 0  }
 0x127   : > { %vm4813_vm12 = vmand %vm4674_vm14, %vm7433_vm15  ;;  %vm7442_vm14 = vcmp.lt.s32.totalorder %v4291_v21, 25 }
 0x128   : > { %v7435_v42 = vsel %vm4813_vm12, 4294967295, %v7434_v42  ;;  %vm924_vm6 = vmand %vm891_vm10, %vm7436_vm0  ;;  %vm7450_vm12 = vcmp.lt.s32.totalorder %v4291_v21, 27  ;;  %3308 = vset.pattern.permute.xlu1 %v7329_v57 }
 0x129   : > { %vm4826_vm11 = vmand %vm7439_vm7, %vm7438_vm5  ;;  %vm7449_vm5 = vcmp.eq.s32.totalorder %v4392_v48, %v581_v39  ;;  %1061 = vperm.xlu1 %3308, %v4138_v14  }
 0x12a   : > { %vm4834_vm15 = vmand %vm4691_vm9, %vm7442_vm14 }
 0x12b   : > { %v7444_v18 = vsel %vm4834_vm15, 4294967295, %v7443_v18  ;;  %vm7445_vm0 = vmmov %vm7442_vm14  ;;  %vm7453_vm14 = vcmp.ge.s32.totalorder %v4291_v21, 27 }
 0x12c   : > { %vm4842_vm10 = vmand %vm4718_vm1, %vm7445_vm0  ;;  %vm7456_vm1 = vnez %v7368_v63  ;;  %v1032_v63 = vpop.permute.xlu1 %1031 }
 0x12d   : > { %vm698_vm7 = vmand %vm7449_vm5, %vm7448_vm3  ;;  %v759_v39 = vsel %vm7456_vm1, 1.0, %v532_v13  ;;  %3309 = vset.pattern.permute.xlu1 %v7328_v47 }
 0x12e   : > { %vm4854_vm9 = vmand %vm4759_vm2, %vm7450_vm12  ;;  %vm7459_vm2 = vcmp.lt.s32.totalorder %v4291_v21, 29  ;;  %1288 = vperm.xlu1 %3309, %v4138_v14  }
 0x12f   : > { %vm4860_vm15 = vmand %vm1344_vm4, %vm7453_vm14  ;;  %vm7466_vm14 = vcmp.lt.s32.totalorder %v4291_v21, 18 }
 0x130   : > { %vm4871_vm3 = vmand %vm4745_vm13, %vm7445_vm0  ;;  %vm7465_vm13 = vnez %v7374_v56 }
 0x131   : > { %v7458_v54 = vsel %vm4871_vm3, 4294967295, %v7457_v54  ;;  %vm4879_vm4 = vmand %vm4791_vm8, %vm7459_vm2  ;;  %v531_v7 = vsel %vm7465_vm13, 1.0, %v240_v58  ;;  %vm1118_vm8 = vcmp.eq.s32.totalorder %v4528_v5, %v1032_v63  ;;  %vm1114_vm2 = vcmp.eq.s32.totalorder %v4528_v5, %v1020_v0 }
 0x132   : > { %vm7462_vm12 = vmmov %vm7445_vm0  ;;  %vm7476_vm3 = vnez %v7392_v62  ;;  %1291 = vperm.xlu1 %3309, %v4134_v12  }
 0x133   : > { %vm4885_vm5 = vmand %vm924_vm6, %vm7462_vm12  ;;  %vm7469_vm6 = vcmp.ge.s32.totalorder %v4291_v21, 25  ;;  %vm7470_vm12 = vcmp.lt.s32.totalorder %v4291_v21, 5 }
 0x134   : > { %vm4894_vm1 = vmand %vm698_vm7, %vm7466_vm14  ;;  %v242_v37 = vsel %vm7470_vm12, %v4052_v1, 0.0  ;;  %vm7472_vm7 = vnez %v7382_v25  ;;  %v989_v63 = vsel %vm4885_vm5, 1.0, %v4431_v41  ;;  %vm7473_vm14 = vcmp.lt.s32.totalorder %v4291_v21, 27  ;;  %v1035_v41 = vpop.permute.xlu1 %1034 }
 0x135   : > { %vm1151_vm0 = vmand %vm1118_vm8, %vm7469_vm6  ;;  %v986_v58 = vsel %vm7472_vm7, 1.0, %v759_v39  ;;  %vm7478_vm5 = vnez %v7403_v55 }
 0x136   : > { %vm7471_vm13 = vmmov %vm7470_vm12  ;;  %3310 = vset.pattern.permute.xlu1 %v7325_v9 }
 0x137   : > { %v243_v56 = vsel %vm7471_vm13, %v4058_v3, 0.0  ;;  %vm1184_vm8 = vmand %vm1151_vm0, %vm7473_vm14  ;;  %v1213_v3 = vsel %vm7476_vm3, 1.0, %v986_v58  ;;  %vm7477_vm13 = vcmp.ge.s32.totalorder %v4291_v21, 25  ;;  %vm7479_vm0 = vnez %v7399_v36  ;;  %616 = vperm.xlu1 %3310, %v4148_v27  }
 0x138   : > { %vm7474_vm6 = vmmov %vm7470_vm12  ;;  %vm7475_vm12 = vnez %v7389_v22  ;;  %v1216_v31 = vsel %vm1184_vm8, 1.0, %v989_v63  ;;  %vm7480_vm3 = vnez %v7410_v52 }
 0x139   : > { %v245_v0 = vsel %vm7474_vm6, %v4067_v8, 0.0  ;;  %v758_v1 = vsel %vm7475_vm12, 1.0, %v531_v7  ;;  %vm1147_vm7 = vmand %vm1114_vm2, %vm7477_vm13  ;;  %v1443_v25 = vsel %vm7478_vm5, 1.0, %v1216_v31  ;;  %vm1119_vm12 = vcmp.eq.s32.totalorder %v4528_v5, %v1035_v41  ;;  %v1029_v8 = vpop.permute.xlu0 %1028 }
 0x13a   : > { %v985_v39 = vsel %vm7479_vm0, 1.0, %v758_v1  ;;  %vm1180_vm6 = vmand %vm1147_vm7, %vm7473_vm14  ;;  %v533_v62 = vsel %vm7480_vm3, 1.0, %v242_v37  ;;  %vm7293_vm5 = vcmask 261120   ;;  %vm7482_vm0 = vnez %v7417_v20 }
 0x13b   : > { %v1212_v22 = vsel %vm1180_vm6, 1.0, %v985_v39  ;;  %vm7481_vm2 = vmmov %vm7477_vm13  ;;  %vm1117_vm13 = vcmp.eq.s32.totalorder %v4528_v5, %v1029_v8  ;;  %v534_v55 = vsel %vm7482_vm0, 1.0, %v243_v56  ;;  %vm7483_vm7 = vnez %v7420_v51  ;;  %3311 = vset.pattern.permute.xlu1 %v7327_v32  ;;  %v3864_v8 = vld [vmem:[%s4049_s6 + $0x30] sm:$0xff] }
 0x13c   : > { %vm1152_vm8 = vmand %vm1119_vm12, %vm7481_vm2  ;;  %v536_v36 = vsel %vm7483_vm7, 1.0, %v245_v0  ;;  %vm7484_vm14 = vnez %v7424_v30  ;;  %v1439_v52 = vsel %vm4826_vm11, 1.0, %v1212_v22  ;;  %vm7485_vm6 = vcmp.lt.s32.totalorder %v4291_v21, 27  ;;  %840 = vperm.xlu1 %3311, %v4150_v28  }
 0x13d   : > { %v1440_v31 = vsel %vm7484_vm14, 1.0, %v1213_v3  ;;  %vm4948_vm3 = vmand %vm1152_vm8, %vm7485_vm6  ;;  %vm7488_vm12 = vnez %v7435_v42  ;;  %vm7489_vm2 = vnez %v7432_v15  ;;  %v763_v51 = vsel %vm4894_vm1, 1.0, %v536_v36  ;;  %v1262_v15 = vpop.permute.xlu1 %1261  ;;  %v1038_v42 = vpop.permute.xlu0 %1037 }
 0x13e   : > { %v761_v7 = vsel %vm7488_vm12, 1.0, %v534_v55  ;;  %v760_v20 = vsel %vm7489_vm2, 1.0, %v533_v62  ;;  %v4958_v30 = vpack.c.bf16 %v1440_v31, %v1439_v52  ;;  %vm7490_vm0 = vcmp.ge.s32.totalorder %v4291_v21, 25  ;;  %vm7492_vm8 = vmmov %vm7485_vm6 }
 0x13f   : > { %vm1150_vm11 = vmand %vm1117_vm13, %vm7490_vm0  ;;  %vm7491_vm7 = vnez %v7444_v18  ;;  %v988_v37 = vsel %vm4842_vm10, 1.0, %v761_v7  ;;  %vm7493_vm1 = vcmp.lt.s32.totalorder %v4291_v21, 29  ;;  %vm1346_vm6 = vcmp.eq.s32.totalorder %v4503_v33, %v1262_v15  ;;  %v3866_v7 = vld [vmem:[%s4049_s6 + $0x48] sm:$0xff] }
 0x140   : > { %v987_v59 = vsel %vm7491_vm7, 1.0, %v760_v20  ;;  %vm1183_vm14 = vmand %vm1150_vm11, %vm7492_vm8  ;;  %3105 = vmatmul.mubr.msk.bf16.vlgmr.msra.gmra.mxu0 %vm7293_vm5, %v4958_v30  ;;  %3121 = vmatmul.mubr.msk.bf16.vlgmr.msra.gmra.mxu1 %vm7293_vm5, %v4958_v30  ;;  %vm7494_vm10 = vnez %v7458_v54  ;;  %vm7498_vm0 = vcmp.ge.s32.totalorder %v4291_v21, 5  ;;  %vm441_vm7 = vcmp.eq.s32.totalorder %v4301_v26, %v4262_v53  ;;  %v236_v53 = vld [vmem:[%s4049_s6 + $0xf8] sm:$0xff] }
 0x141   : > { %v1214_v23 = vsel %vm4854_vm9, 1.0, %v987_v59  ;;  %vm1410_vm13 = vmand %vm4860_vm15, %vm7493_vm1  ;;  %v1215_v18 = vsel %vm1183_vm14, 1.0, %v988_v37  ;;  %v990_v44 = vsel %vm7494_vm10, 1.0, %v763_v51  ;;  %vm7495_vm9 = vcmp.ge.s32.totalorder %v4291_v21, 27  ;;  %1716 = vmatprep.mubr.bf16.mxu0 %v7496_v24  ;;  %1909 = vmatprep.mubr.bf16.mxu1 %v7496_v24  ;;  %v4995_v61 = vpop.permute.xlu0 %1046  ;;  %v584_v14 = vpop.permute.xlu1 %583  ;;  %v3865_v37 = vld [vmem:[%s4049_s6 + $0x40] sm:$0xff] }
 0x142   : > { %v1441_v2 = vsel %vm4879_vm4, 1.0, %v1214_v23  ;;  %v1442_v56 = vsel %vm1410_vm13, 1.0, %v1215_v18  ;;  %vm1379_vm12 = vmand %vm1346_vm6, %vm7495_vm9  ;;  %v1217_v58 = vsel %vm4948_vm3, 1.0, %v990_v44  ;;  %vm439_vm4 = vcmp.eq.s32.totalorder %v4301_v26, %v4255_v43  ;;  %3312 = vset.pattern.permute.xlu1 %v7329_v57 }
 0x143   : > { %v4990_v63 = vpack.c.bf16 %v1442_v56, %v1441_v2  ;;  %vm7497_vm15 = vmmov %vm7493_vm1  ;;  %vm1348_vm3 = vcmp.eq.s32.totalorder %v4503_v33, %v4456_v16  ;;  %vm7500_vm1 = vcmp.lt.s32.totalorder %v4291_v21, 16  ;;  %vm1120_vm6 = vcmp.eq.s32.totalorder %v4528_v5, %v1038_v42  ;;  %1067 = vperm.xlu1 %3312, %v4150_v28  }
 0x144   : > { %vm1412_vm2 = vmand %vm1379_vm12, %vm7497_vm15  ;;  %vm666_vm12 = vcmp.eq.s32.totalorder %v4392_v48, %v584_v14  ;;  %v3234_v3 = vtrunc.f32 %v236_v53 }
 0x145   : > { %v1444_v54 = vsel %vm1412_vm2, 1.0, %v1217_v58  ;;  %vm472_vm11 = vmand %vm439_vm4, %vm7498_vm0  ;;  %v5006_v1 = vpop.permute.xlu0 %1055  ;;  %v811_v12 = vpop.permute.xlu1 %810  ;;  %vm7508_vm4 = vcmp.ge.s32.totalorder %v4291_v21, 25 }
 0x146   : > { %v4999_v0 = vpack.c.bf16 %v1444_v54, %v1443_v25  ;;  %vm7499_vm8 = vmmov %vm7495_vm9 }
 0x147   : > { %vm1381_vm14 = vmand %vm1348_vm3, %vm7499_vm8  ;;  %1070 = vperm.xlu1 %3312, %v4148_v27  }
 0x148   : > { %3106 = vmatmul.mubr.msk.bf16.gmra.mxu0 %vm7293_vm5, %v4990_v63  ;;  %3122 = vmatmul.mubr.msk.bf16.gmra.mxu1 %vm7293_vm5, %v4990_v63  ;;  %vm5020_vm13 = vmand %vm472_vm11, %vm7500_vm1  ;;  %vm7511_vm11 = vcmp.ge.s32.totalorder %v4291_v21, 16 }
 0x149   : > { %1726 = vmatprep.mubr.bf16.mxu0 %v7496_v24  ;;  %1919 = vmatprep.mubr.bf16.mxu1 %v7496_v24  ;;  %vm7503_vm10 = vmmov %vm7498_vm0  ;;  %v5034_v16 = vpop.permute.xlu0 %1064  ;;  %vm893_vm0 = vcmp.eq.s32.totalorder %v4495_v34, %v811_v12  ;;  %v814_v25 = vpop.permute.xlu1 %813  ;;  %v234_v12 = vld [vmem:[%s4049_s6 + $0xe8] sm:$0xff] }
 0x14a   : > { %vm5029_vm9 = vmand %vm441_vm7, %vm7503_vm10  ;;  %vm894_vm8 = vcmp.eq.s32.totalorder %v4495_v34, %v814_v25  ;;  %v3230_v41 = vtrunc.f32 %v234_v12 }
 0x14b   : > { %vm5038_vm2 = vmand %vm1381_vm14, %vm7497_vm15  ;;  %vm7512_vm14 = vcmp.ge.s32.totalorder %v4291_v21, 18  ;;  %3313 = vset.pattern.permute.xlu1 %v7328_v47 }
 0x14c   : > { %vm5044_vm3 = vmand %vm1120_vm6, %vm7508_vm4  ;;  %vm7513_vm6 = vcmp.lt.s32.totalorder %v4291_v21, 5  ;;  %1297 = vperm.xlu1 %3313, %v4148_v27  }
 0x14d   : > { %vm699_vm7 = vmand %vm666_vm12, %vm7511_vm11  ;;  %v5056_v39 = vpop.permute.xlu0 %1073  ;;  %v246_v62 = vsel %vm7513_vm6, %v3864_v8, 0.0  ;;  %vm7515_vm12 = vcmp.lt.s32.totalorder %v4291_v21, 18  ;;  %vm7518_vm11 = vcmp.lt.s32.totalorder %v4291_v21, 25  ;;  %v1041_v55 = vpop.permute.xlu1 %1040  ;;  %vm7522_vm6 = vcmp.ge.s32.totalorder %v4291_v21, 25 }
 0x14e   : > { %vm927_vm1 = vmand %vm894_vm8, %vm7512_vm14  ;;  %v537_v36 = vsel %vm5020_vm13, 1.0, %v246_v62  ;;  %vm895_vm13 = vcmp.eq.s32.totalorder %v4495_v34, %v4489_v17  ;;  %v3235_v8 = vcvt.f32.s32 %v3234_v3  ;;  %v3867_v3 = vld [vmem:[%s4049_s6 + $0xc8] sm:$0xff] }
 0x14f   : > { %vm7514_vm10 = vmmov %vm7512_vm14 }
 0x150   : > { %vm926_vm15 = vmand %vm893_vm0, %vm7514_vm10  ;;  %3107 = vmatmul.mubr.msk.bf16.gmra.mxu0 %vm7293_vm5, %v4999_v0  ;;  %3123 = vmatmul.mubr.msk.bf16.gmra.mxu1 %vm7293_vm5, %v4999_v0  ;;  %v5175_v62 = vadd.s32 4294967295, %v3235_v8 }
 0x151   : > { %vm5069_vm4 = vmand %vm699_vm7, %vm7515_vm12  ;;  %1736 = vmatprep.mubr.bf16.mxu0 %v7496_v24  ;;  %1929 = vmatprep.mubr.bf16.mxu1 %v7496_v24  ;;  %vm1121_vm7 = vcmp.eq.s32.totalorder %v4528_v5, %v1041_v55  ;;  %v5087_v52 = vpop.permute.xlu0 %1082  ;;  %vm7524_vm12 = vcmp.lt.s32.totalorder %v4291_v21, 16  ;;  %v1265_v51 = vpop.permute.xlu1 %1264 }
 0x152   : > { %vm960_vm8 = vmand %vm927_vm1, %vm7518_vm11  ;;  %vm7523_vm1 = vcmp.lt.s32.totalorder %v4291_v21, 27  ;;  %v764_v28 = vsel %vm5069_vm4, 1.0, %v537_v36  ;;  %vm1347_vm4 = vcmp.eq.s32.totalorder %v4503_v33, %v1265_v51  ;;  %3314 = vset.pattern.permute.xlu1 %v7325_v9  ;;  %431 = vperm.xlu0 %3342, %v5175_v62   ;;  %v7547_v36 = vmov 0 }
 0x153   : > { %vm7519_vm0 = vmmov %vm7518_vm11  ;;  %v992_v13 = vsel %vm960_vm8, 1.0, %v4439_v60  ;;  %619 = vperm.xlu1 %3314, %v4160_v40  }
 0x154   : > { %vm5081_vm14 = vmand %vm926_vm15, %vm7519_vm0 }
 0x155   : > { %vm1154_vm10 = vmand %vm1121_vm7, %vm7522_vm6  ;;  %v991_v17 = vsel %vm5081_vm14, 1.0, %v764_v28  ;;  %v5115_v59 = vpop.permute.xlu0 %1091  ;;  %vm7529_vm6 = vcmp.ge.s32.totalorder %v4291_v21, 27  ;;  %v590_v44 = vpop.permute.xlu1 %589 }
 0x156   : > { %vm1187_vm15 = vmand %vm1154_vm10, %vm7523_vm1  ;;  %3345 = vset.pattern.permute.xlu0 %v7327_v32 }
 0x157   : > { %vm5101_vm11 = vmand %vm5029_vm9, %vm7524_vm12  ;;  %v1219_v20 = vsel %vm1187_vm15, 1.0, %v992_v13  ;;  %vm7528_vm9 = vcmp.ge.s32.totalorder %v4291_v21, 18  ;;  %vm668_vm15 = vcmp.eq.s32.totalorder %v4392_v48, %v590_v44  ;;  %vm7535_vm12 = vcmp.ge.s32.totalorder %v4291_v21, 16  ;;  %3315 = vset.pattern.permute.xlu1 %v7327_v32 }
 0x158   : > { %vm7527_vm0 = vmmov %vm7523_vm1  ;;  %v1446_v60 = vsel %vm5038_vm2, 1.0, %v1219_v20  ;;  %vm7531_vm2 = vcmp.lt.s32.totalorder %v4291_v21, 29  ;;  %846 = vperm.xlu1 %3315, %v4160_v40   ;;  %v7645_v20 = vld [vmem:[#allocation15_spill] sm:$0xff] }
 0x159   : > { %vm1186_vm8 = vmand %vm5044_vm3, %vm7527_vm0  ;;  %vm7530_vm3 = vcmp.lt.s32.totalorder %v4291_v21, 5  ;;  %v5128_v18 = vpop.permute.xlu0 %1097  ;;  %v593_v27 = vpop.permute.xlu1 %592 }
 0x15a   : > { %vm928_vm7 = vmand %vm895_vm13, %vm7528_vm9  ;;  %v248_v15 = vsel %vm7530_vm3, %v3865_v37, 0.0  ;;  %v1218_v42 = vsel %vm1186_vm8, 1.0, %v991_v17  ;;  %vm7532_vm13 = vcmp.lt.s32.totalorder %v4291_v21, 25  ;;  %vm442_vm9 = vcmp.eq.s32.totalorder %v4301_v26, %v4260_v50 }
 0x15b   : > { %vm1380_vm10 = vmand %vm1347_vm4, %vm7529_vm6  ;;  %v539_v56 = vsel %vm5101_vm11, 1.0, %v248_v15  ;;  %vm7536_vm11 = vcmp.lt.s32.totalorder %v4291_v21, 18  ;;  %vm1123_vm6 = vcmp.eq.s32.totalorder %v4528_v5, %v4995_v61  ;;  %vm7538_vm3 = vcmp.lt.s32.totalorder %v4291_v21, 16 }
 0x15c   : > { %vm1413_vm14 = vmand %vm1380_vm10, %vm7531_vm2  ;;  %vm444_vm10 = vcmp.eq.s32.totalorder %v4301_v26, %v4266_v4  ;;  %v3231_v61 = vcvt.f32.s32 %v3230_v41  ;;  %849 = vperm.xlu1 %3315, %v4158_v38  }
 0x15d   : > { %v1445_v23 = vsel %vm1413_vm14, 1.0, %v1218_v42  ;;  %vm5137_vm1 = vmand %vm928_vm7, %vm7532_vm13  ;;  %v5155_v14 = vpop.permute.xlu0 %595  ;;  %vm7537_vm7 = vcmp.ge.s32.totalorder %v4291_v21, 5  ;;  %v820_v50 = vpop.permute.xlu1 %819  ;;  %vm458_vm14 = vcmp.eq.s32.totalorder %v4301_v26, %v4367_v49  ;;  %vm7541_vm13 = vcmp.ge.s32.totalorder %v4291_v21, 25 }
 0x15e   : > { %v5130_v2 = vpack.c.bf16 %v1446_v60, %v1445_v23  ;;  %vm701_vm0 = vmand %vm668_vm15, %vm7535_vm12  ;;  %vm669_vm12 = vcmp.eq.s32.totalorder %v4392_v48, %v593_v27  ;;  %v5213_v31 = vadd.s32 4294967295, %v3231_v61 }
 0x15f   : > { %vm734_vm8 = vmand %vm701_vm0, %vm7536_vm11 }
 0x160   : > { %3108 = vmatmul.mubr.msk.bf16.gmra.mxu0 %vm7293_vm5, %v5130_v2  ;;  %3124 = vmatmul.mubr.msk.bf16.gmra.mxu1 %vm7293_vm5, %v5130_v2  ;;  %v5153_v54 = vsel %vm734_vm8, 1.0, %v539_v56  ;;  %vm475_vm4 = vmand %vm442_vm9, %vm7537_vm7  ;;  %vm896_vm8 = vcmp.eq.s32.totalorder %v4495_v34, %v820_v50  ;;  %vm7555_vm5 = vcmp.lt.s32.totalorder %v4291_v21, 5  ;;  %v3868_v50 = vld [vmem:[%s4049_s6 + $0x58] sm:$0xff] }
 0x161   : > { %1746 = vmatprep.mubr.bf16.mxu0 %v7496_v24  ;;  %1939 = vmatprep.mubr.bf16.mxu1 %v7496_v24  ;;  %v993_v43 = vsel %vm5137_vm1, 1.0, %v5153_v54  ;;  %v5168_v25 = vpop.permute.xlu0 %604  ;;  %vm5179_vm2 = vmand %vm475_vm4, %vm7538_vm3  ;;  %v1044_v49 = vpop.permute.xlu1 %1043  ;;  %vm898_vm4 = vcmp.eq.s32.totalorder %v4495_v34, %v4514_v35  ;;  %v7552_v35 = vmov 0  ;;  %v249_v28 = vsel %vm7555_vm5, %v3866_v7, 0.0 }
 0x162   : > { %vm1156_vm15 = vmand %vm1123_vm6, %vm7541_vm13  ;;  %vm7546_vm6 = vcmp.lt.s32.totalorder %v4291_v21, 27  ;;  %879 = vperm.xlu0 %3345, %v5213_v31   ;;  %3316 = vset.pattern.permute.xlu1 %v7329_v57  ;;  %vm7563_vm5 = vcmp.lt.s32.totalorder %v4291_v21, 16  ;;  %v540_v42 = vsel %vm5179_vm2, 1.0, %v249_v28  ;;  %vm7574_vm2 = vcmp.lt.s32.totalorder %v4291_v21, 18 }
 0x163   : > { %vm7542_vm0 = vmmov %vm7537_vm7  ;;  %1076 = vperm.xlu1 %3316, %v4158_v38  }
 0x164   : > { %vm5194_vm11 = vmand %vm444_vm10, %vm7542_vm0  ;;  %vm7549_vm10 = vcmp.ge.s32.totalorder %v4291_v21, 16 }
 0x165   : > { %v5189_v4 = vpop.permute.xlu0 %613  ;;  %vm7545_vm9 = vmmov %vm7542_vm0  ;;  %vm1122_vm0 = vcmp.eq.s32.totalorder %v4528_v5, %v1044_v49  ;;  %v1271_v60 = vpop.permute.xlu1 %1270 }
 0x166   : > { %vm491_vm7 = vmand %vm458_vm14, %vm7545_vm9  ;;  %vm7550_vm14 = vcmp.ge.s32.totalorder %v4291_v21, 18 }
 0x167   : > { %vm5205_vm3 = vmand %vm1156_vm15, %vm7546_vm6  ;;  %vm7551_vm15 = vcmp.lt.s32.totalorder %v4291_v21, 16  ;;  %3317 = vset.pattern.permute.xlu1 %v7328_v47 }
 0x168   : > { %v7548_v36 = vsel %vm5205_vm3, 4294967295, %v7547_v36  ;;  %vm702_vm13 = vmand %vm669_vm12, %vm7549_vm10  ;;  %vm7554_vm12 = vcmp.ge.s32.totalorder %v4291_v21, 25  ;;  %1300 = vperm.xlu1 %3317, %v4160_v40  }
 0x169   : > { %vm929_vm9 = vmand %vm896_vm8, %vm7550_vm14  ;;  %v5217_v13 = vpop.permute.xlu0 %622  ;;  %v1274_v56 = vpop.permute.xlu1 %1273 }
 0x16a   : > { %vm5222_vm6 = vmand %vm491_vm7, %vm7551_vm15  ;;  %vm7559_vm7 = vcmp.lt.s32.totalorder %v4291_v21, 18 }
 0x16b   : > { %v7553_v35 = vsel %vm5222_vm6, 4294967295, %v7552_v35  ;;  %vm1155_vm10 = vmand %vm1122_vm0, %vm7554_vm12  ;;  %vm7560_vm6 = vcmp.lt.s32.totalorder %v4291_v21, 25  ;;  %vm7566_vm0 = vcmp.lt.s32.totalorder %v4291_v21, 27 }
 0x16c   : > { %vm7556_vm8 = vmmov %vm7550_vm14  ;;  %vm7583_vm1 = vnez %v7553_v35  ;;  %3318 = vset.pattern.permute.xlu1 %v7325_v9 }
 0x16d   : > { %vm5234_vm14 = vmand %vm898_vm4, %vm7556_vm8  ;;  %v632_v15 = vpop.permute.xlu0 %631  ;;  %v599_v22 = vpop.permute.xlu1 %598  ;;  %625 = vperm.xlu1 %3318, %v4168_v46  }
 0x16e   : > { %vm735_vm15 = vmand %vm702_vm13, %vm7559_vm7  ;;  %vm682_vm12 = vcmp.eq.s32.totalorder %v4392_v48, %v632_v15  ;;  %vm7573_vm7 = vcmp.ge.s32.totalorder %v4291_v21, 16 }
 0x16f   : > { %vm5242_vm3 = vmand %vm929_vm9, %vm7560_vm6  ;;  %vm1349_vm9 = vcmp.eq.s32.totalorder %v4503_v33, %v1271_v60  ;;  %v767_v23 = vsel %vm735_vm15, 1.0, %v540_v42  ;;  %vm1350_vm15 = vcmp.eq.s32.totalorder %v4503_v33, %v1274_v56  ;;  %v3869_v60 = vld [vmem:[%s4049_s6 + $0x50] sm:$0xff] }
 0x170   : > { %vm5251_vm4 = vmand %vm5194_vm11, %vm7563_vm5  ;;  %vm7569_vm11 = vcmp.ge.s32.totalorder %v4291_v21, 27  ;;  %v994_v38 = vsel %vm5242_vm3, 1.0, %v767_v23 }
 0x171   : > { %vm5257_vm13 = vmand %vm1155_vm10, %vm7566_vm0  ;;  %vm7570_vm10 = vcmp.lt.s32.totalorder %v4291_v21, 29  ;;  %v641_v27 = vpop.permute.xlu0 %640  ;;  %v823_v35 = vpop.permute.xlu1 %822  ;;  %628 = vperm.xlu1 %3318, %v4166_v45  }
 0x172   : > { %vm1382_vm6 = vmand %vm1349_vm9, %vm7569_vm11  ;;  %vm7575_vm9 = vnez %v7319_v6 }
 0x173   : > { %vm5270_vm8 = vmand %vm1382_vm6, %vm7570_vm10  ;;  %v7576_v12 = vsel %vm7575_vm9, 1.0, %v4362_v11  ;;  %vm7578_vm6 = vcmp.lt.s32.totalorder %v4291_v21, 5  ;;  %v1220_v11 = vsel %vm5257_vm13, 1.0, %v993_v43  ;;  %vm7579_vm10 = vnez %v7548_v36 }
 0x174   : > { %vm715_vm5 = vmand %vm682_vm12, %vm7573_vm7  ;;  %v265_v41 = vsel %vm7578_vm6, %v3867_v3, 0.0  ;;  %vm685_vm12 = vcmp.eq.s32.totalorder %v4392_v48, %v641_v27  ;;  %v1221_v6 = vsel %vm7579_vm10, 1.0, %v994_v38  ;;  %vm7580_vm7 = vcmp.lt.s32.totalorder %v4291_v21, 29 }
 0x175   : > { %vm748_vm0 = vmand %vm715_vm5, %vm7574_vm2  ;;  %v1447_v40 = vsel %vm5270_vm8, 1.0, %v1220_v11  ;;  %vm7581_vm2 = vcmp.ge.s32.totalorder %v4291_v21, 16  ;;  %v556_v43 = vsel %vm7583_vm1, 1.0, %v265_v41  ;;  %vm7584_vm13 = vcmp.lt.s32.totalorder %v4291_v21, 18  ;;  %3319 = vset.pattern.permute.xlu1 %v7327_v32 }
 0x176   : > { %v5286_v53 = vsel %vm748_vm0, 1.0, %v7576_v12  ;;  %vm7577_vm3 = vmmov %vm7569_vm11  ;;  %vm7589_vm10 = vcmask 261120   ;;  %vm1351_vm1 = vcmp.eq.s32.totalorder %v4503_v33, %v4462_v29  ;;  %855 = vperm.xlu1 %3319, %v4166_v45  }
 0x177   : > { %vm1383_vm11 = vmand %vm1350_vm15, %vm7577_vm3  ;;  %vm7585_vm3 = vcmp.lt.s32.totalorder %v4291_v21, 25 }
 0x178   : > { %vm1416_vm5 = vmand %vm1383_vm11, %vm7580_vm7  ;;  %vm671_vm11 = vcmp.eq.s32.totalorder %v4392_v48, %v599_v22  ;;  %v3870_v22 = vld [vmem:[%s4049_s6 + $0x60] sm:$0xff] }
 0x179   : > { %v1448_v8 = vsel %vm1416_vm5, 1.0, %v1221_v6  ;;  %vm718_vm0 = vmand %vm685_vm12, %vm7581_vm2  ;;  %v7612_v6 = vld [vmem:[#allocation12_spill] sm:$0xff] }
 0x17a   : > { %vm7582_vm15 = vmmov %vm7578_vm6  ;;  %v5312_v54 = vpack.c.bf16 %v1448_v8, %v1447_v40  ;;  %3320 = vset.pattern.permute.xlu1 %v7329_v57  ;;  %v7666_v40 = vld [vmem:[#allocation14_spill] sm:$0xff] }
 0x17b   : > { %v251_v58 = vsel %vm7582_vm15, %v3868_v50, 0.0  ;;  %vm751_vm9 = vmand %vm718_vm0, %vm7584_vm13  ;;  %vm670_vm15 = vcmp.eq.s32.totalorder %v4392_v48, %v5155_v14  ;;  %v1050_v14 = vpop.permute.xlu1 %1049  ;;  %1079 = vperm.xlu1 %3320, %v4168_v46  }
 0x17c   : > { %vm5322_vm8 = vmand %vm5234_vm14, %vm7585_vm3  ;;  %v5326_v55 = vsel %vm751_vm9, 1.0, %v556_v43  ;;  %3109 = vmatmul.mubr.msk.bf16.gmra.mxu0 %vm7589_vm10, %v5312_v54  ;;  %v542_v49 = vsel %vm5251_vm4, 1.0, %v251_v58  ;;  %vm443_vm14 = vcmp.eq.s32.totalorder %v4301_v26, %v4269_v19  ;;  %vm7592_vm4 = vcmp.ge.s32.totalorder %v4291_v21, 5  ;;  %v235_v19 = vld [vmem:[%s4049_s6 + $0xf0] sm:$0xff] }
 0x17d   : > { %vm7588_vm6 = vmmov %vm7581_vm2  ;;  %1756 = vmatprep.mubr.bf16.mxu0 %v7496_v24  ;;  %v3232_v28 = vtrunc.f32 %v235_v19  ;;  %vm897_vm3 = vcmp.eq.s32.totalorder %v4495_v34, %v823_v35  ;;  %v7636_v43 = vld [vmem:[#allocation9_spill] sm:$0xff] }
 0x17e   : > { %vm704_vm12 = vmand %vm671_vm11, %vm7588_vm6 }
 0x17f   : > { %vm7590_vm7 = vmmov %vm7584_vm13  ;;  %vm7593_vm13 = vcmp.lt.s32.totalorder %v4291_v21, 16  ;;  %v3233_v17 = vcvt.f32.s32 %v3232_v28  ;;  %v1053_v42 = vpop.permute.xlu1 %1052  ;;  %3321 = vset.pattern.permute.xlu1 %v7328_v47 }
 0x180   : > { %vm737_vm5 = vmand %vm704_vm12, %vm7590_vm7  ;;  %vm7598_vm12 = vcmp.ge.s32.totalorder %v4291_v21, 27  ;;  %vm7601_vm7 = vcmp.ge.s32.totalorder %v4291_v21, 18  ;;  %1306 = vperm.xlu1 %3321, %v4168_v46   ;;  %v7613_v46 = vld [vmem:[#allocation27_spill] sm:$0xff] }
 0x181   : > { %vm7591_vm2 = vmmov %vm7589_vm10  ;;  %v769_v36 = vsel %vm737_vm5, 1.0, %v542_v49  ;;  %v5376_v37 = vadd.s32 4294967295, %v3233_v17  ;;  %v3871_v49 = vld [vmem:[%s4049_s6 + $0x68] sm:$0xff] }
 0x182   : > { %3125 = vmatmul.mubr.msk.bf16.gmra.mxu1 %vm7591_vm2, %v5312_v54  ;;  %v996_v7 = vsel %vm5322_vm8, 1.0, %v769_v36  ;;  %vm476_vm0 = vmand %vm443_vm14, %vm7592_vm4  ;;  %vm7596_vm8 = vcmp.lt.s32.totalorder %v4291_v21, 5  ;;  %vm1124_vm14 = vcmp.eq.s32.totalorder %v4528_v5, %v1050_v14  ;;  %vm7602_vm2 = vcmp.lt.s32.totalorder %v4291_v21, 18  ;;  %v7650_v14 = vld [vmem:[#allocation28_spill] sm:$0xff] }
 0x183   : > { %1949 = vmatprep.mubr.bf16.mxu1 %v7496_v24  ;;  %vm5357_vm9 = vmand %vm476_vm0, %vm7593_vm13  ;;  %v250_v51 = vsel %vm7596_vm8, %v3869_v60, 0.0  ;;  %882 = vperm.xlu0 %3345, %v5376_v37   ;;  %vm7603_vm0 = vcmp.ge.s32.totalorder %v4291_v21, 25  ;;  %vm1125_vm8 = vcmp.eq.s32.totalorder %v4528_v5, %v1053_v42  ;;  %v1280_v38 = vpop.permute.xlu1 %1279 }
 0x184   : > { %vm7597_vm11 = vmmov %vm7588_vm6  ;;  %v541_v15 = vsel %vm5357_vm9, 1.0, %v250_v51  ;;  %1309 = vperm.xlu1 %3321, %v4166_v45  }
 0x185   : > { %vm703_vm6 = vmand %vm670_vm15, %vm7597_vm11  ;;  %vm7606_vm11 = vcmp.lt.s32.totalorder %v4291_v21, 27 }
 0x186   : > { %vm5370_vm10 = vmand %vm1351_vm1, %vm7598_vm12  ;;  %vm7604_vm1 = vcmp.lt.s32.totalorder %v4291_v21, 25 }
 0x187   : > { %vm930_vm5 = vmand %vm897_vm3, %vm7601_vm7  ;;  %3349 = vset.pattern.permute.xlu0 %v7329_v57  ;;  %vm7608_vm7 = vcmp.lt.s32.totalorder %v4291_v21, 29  ;;  %v602_v11 = vpop.permute.xlu1 %601 }
 0x188   : > { %vm736_vm4 = vmand %vm703_vm6, %vm7602_vm2  ;;  %1112 = vperm.xlu0 %3349, %v5175_v62   ;;  %vm1352_vm2 = vcmp.eq.s32.totalorder %v4503_v33, %v1280_v38  ;;  %3322 = vset.pattern.permute.xlu1 %v7325_v9 }
 0x189   : > { %vm1157_vm15 = vmand %vm1124_vm14, %vm7603_vm0  ;;  %v768_v23 = vsel %vm736_vm4, 1.0, %v541_v15  ;;  %vm7609_vm4 = vcmp.ge.s32.totalorder %v4291_v21, 27 }
 0x18a   : > { %vm963_vm13 = vmand %vm930_vm5, %vm7604_vm1 }
 0x18b   : > { %vm7605_vm3 = vmmov %vm7603_vm0  ;;  %v995_v44 = vsel %vm963_vm13, 1.0, %v768_v23 }
 0x18c   : > { %vm1158_vm9 = vmand %vm1125_vm8, %vm7605_vm3  ;;  %3351 = vset.pattern.permute.xlu0 %v7328_v47  ;;  %vm445_vm3 = vcmp.eq.s32.totalorder %v4301_v26, %v7612_v6 }
 0x18d   : > { %vm1190_vm6 = vmand %vm1157_vm15, %vm7606_vm11  ;;  %vm446_vm15 = vcmp.eq.s32.totalorder %v4301_v26, %v4274_v10  ;;  %v829_v10 = vpop.permute.xlu1 %828 }
 0x18e   : > { %vm7607_vm12 = vmmov %vm7606_vm11  ;;  %v1222_v56 = vsel %vm1190_vm6, 1.0, %v995_v44  ;;  %vm7614_vm11 = vcmask 261120  }
 0x18f   : > { %vm1191_vm14 = vmand %vm1158_vm9, %vm7607_vm12  ;;  %vm1354_vm9 = vcmp.eq.s32.totalorder %v4503_v33, %v7613_v46  ;;  %vm673_vm12 = vcmp.eq.s32.totalorder %v4392_v48, %v5168_v25  ;;  %v7621_v25 = vld [vmem:[#allocation8_spill] sm:$0xff] }
 0x190   : > { %vm1417_vm5 = vmand %vm5370_vm10, %vm7608_vm7  ;;  %v1223_v27 = vsel %vm1191_vm14, 1.0, %v996_v7  ;;  %vm7611_vm10 = vcmp.ge.s32.totalorder %v4291_v21, 5  ;;  %vm7616_vm14 = vcmp.lt.s32.totalorder %v4291_v21, 16  ;;  %634 = vperm.xlu1 %3322, %v7621_v25  }
 0x191   : > { %vm1385_vm0 = vmand %vm1352_vm2, %vm7609_vm4  ;;  %v1449_v12 = vsel %vm1417_vm5, 1.0, %v1222_v56  ;;  %v832_v58 = vpop.permute.xlu1 %831 }
 0x192   : > { %vm7610_vm1 = vmmov %vm7608_vm7 }
 0x193   : > { %vm1418_vm13 = vmand %vm1385_vm0, %vm7610_vm1  ;;  %vm7620_vm1 = vcmp.ge.s32.totalorder %v4291_v21, 16 }
 0x194   : > { %v1450_v3 = vsel %vm1418_vm13, 1.0, %v1223_v27  ;;  %vm479_vm8 = vmand %vm446_vm15, %vm7611_vm10  ;;  %vm1126_vm15 = vcmp.eq.s32.totalorder %v4528_v5, %v5006_v1  ;;  %3323 = vset.pattern.permute.xlu1 %v7327_v32 }
 0x195   : > { %v5414_v41 = vpack.c.bf16 %v1450_v3, %v1449_v12  ;;  %vm7615_vm6 = vmmov %vm7614_vm11  ;;  %858 = vperm.xlu1 %3323, %v7636_v43   ;;  %v1059_v19 = vpop.permute.xlu1 %1058  ;;  %v3872_v3 = vld [vmem:[%s4049_s6 + $0x70] sm:$0xff] }
 0x196   : > { %vm5433_vm7 = vmand %vm479_vm8, %vm7616_vm14 }
 0x197   : > { %3110 = vmatmul.mubr.msk.bf16.gmra.mxu0 %vm7614_vm11, %v5414_v41  ;;  %3126 = vmatmul.mubr.msk.bf16.gmra.mxu1 %vm7615_vm6, %v5414_v41  ;;  %vm7619_vm5 = vmmov %vm7611_vm10  ;;  %vm7628_vm6 = vcmp.ge.s32.totalorder %v4291_v21, 25 }
 0x198   : > { %1766 = vmatprep.mubr.bf16.mxu0 %v7496_v24  ;;  %1959 = vmatprep.mubr.bf16.mxu1 %v7496_v24  ;;  %vm478_vm2 = vmand %vm445_vm3, %vm7619_vm5  ;;  %vm672_vm3 = vcmp.eq.s32.totalorder %v4392_v48, %v602_v11 }
 0x199   : > { %vm1387_vm0 = vmand %vm1354_vm9, %vm7609_vm4  ;;  %vm7625_vm9 = vcmp.lt.s32.totalorder %v4291_v21, 29  ;;  %3325 = vset.pattern.permute.xlu1 %v7329_v57  ;;  %v1283_v56 = vpop.permute.xlu1 %1282 }
 0x19a   : > { %vm706_vm13 = vmand %vm673_vm12, %vm7620_vm1  ;;  %1085 = vperm.xlu1 %3325, %v7636_v43  }
 0x19b   : > { %vm7622_vm10 = vmmov %vm7616_vm14  ;;  %vm7631_vm14 = vcmp.lt.s32.totalorder %v4291_v21, 18 }
 0x19c   : > { %vm5449_vm8 = vmand %vm478_vm2, %vm7622_vm10  ;;  %vm899_vm2 = vcmp.eq.s32.totalorder %v4495_v34, %v829_v10 }
 0x19d   : > { %vm5456_vm11 = vmand %vm1387_vm0, %vm7625_vm9  ;;  %v608_v45 = vpop.permute.xlu1 %607 }
 0x19e   : > { %vm5462_vm12 = vmand %vm1126_vm15, %vm7628_vm6  ;;  %vm7635_vm15 = vcmp.ge.s32.totalorder %v4291_v21, 18  ;;  %1088 = vperm.xlu1 %3325, %v7621_v25  }
 0x19f   : > { %vm5468_vm5 = vmand %vm706_vm13, %vm7631_vm14  ;;  %vm7637_vm13 = vcmp.lt.s32.totalorder %v4291_v21, 5 }
 0x1a0   : > { %vm7634_vm4 = vmmov %vm7620_vm1  ;;  %vm900_vm1 = vcmp.eq.s32.totalorder %v4495_v34, %v832_v58  ;;  %v252_v61 = vsel %vm7637_vm13, %v3870_v22, 0.0  ;;  %v7673_v58 = vld [vmem:[#allocation11_spill] sm:$0xff] }
 0x1a1   : > { %vm705_vm0 = vmand %vm672_vm3, %vm7634_vm4  ;;  %v543_v28 = vsel %vm5449_vm8, 1.0, %v252_v61  ;;  %vm7649_vm8 = vcmp.ge.s32.totalorder %v4291_v21, 25  ;;  %v611_v8 = vpop.permute.xlu1 %610 }
 0x1a2   : > { %vm933_vm10 = vmand %vm900_vm1, %vm7635_vm15  ;;  %vm7642_vm1 = vcmp.lt.s32.totalorder %v4291_v21, 25  ;;  %3326 = vset.pattern.permute.xlu1 %v7328_v47 }
 0x1a3   : > { %vm7638_vm9 = vmmov %vm7637_vm13  ;;  %vm447_vm13 = vcmp.eq.s32.totalorder %v4301_v26, %v7645_v20  ;;  %1315 = vperm.xlu1 %3326, %v7621_v25   ;;  %v7681_v20 = vld [vmem:[#allocation10_spill] sm:$0xff] }
 0x1a4   : > { %v253_v36 = vsel %vm7638_vm9, %v3871_v49, 0.0  ;;  %vm7639_vm6 = vmmov %vm7635_vm15 }
 0x1a5   : > { %vm932_vm3 = vmand %vm899_vm2, %vm7639_vm6  ;;  %v544_v17 = vsel %vm5433_vm7, 1.0, %v253_v36  ;;  %vm901_vm7 = vcmp.eq.s32.totalorder %v4495_v34, %v7650_v14  ;;  %vm7651_vm6 = vcmp.lt.s32.totalorder %v4291_v21, 27  ;;  %v838_v22 = vpop.permute.xlu1 %837  ;;  %v1502_v14 = vld [vmem:[#allocation2 + $0x78] sm:$0xff] }
 0x1a6   : > { %vm5490_vm4 = vmand %vm705_vm0, %vm7631_vm14  ;;  %v771_v51 = vsel %vm5468_vm5, 1.0, %v544_v17  ;;  %vm7652_vm14 = vcmp.ge.s32.totalorder %v4291_v21, 5 }
 0x1a7   : > { %vm5496_vm15 = vmand %vm933_vm10, %vm7642_vm1  ;;  %vm1127_vm10 = vcmp.eq.s32.totalorder %v4528_v5, %v1059_v19  ;;  %v770_v42 = vsel %vm5490_vm4, 1.0, %v543_v28  ;;  %vm1353_vm4 = vcmp.eq.s32.totalorder %v4503_v33, %v1283_v56  ;;  %3327 = vset.pattern.permute.xlu1 %v7325_v9  ;;  %v1497_v19 = vld [vmem:[#allocation2 + $0x50] sm:$0xff] }
 0x1a8   : > { %vm7646_vm2 = vmmov %vm7642_vm1  ;;  %v998_v29 = vsel %vm5496_vm15, 1.0, %v771_v51  ;;  %vm7656_vm15 = vcmp.ge.s32.totalorder %v4291_v21, 18  ;;  %637 = vperm.xlu1 %3327, %v7673_v58   ;;  %v1501_v28 = vld [vmem:[#allocation2 + $0x70] sm:$0xff]  ;;  %v1498_v51 = vld [vmem:[#allocation2 + $0x58] sm:$0xff] }
 0x1a9   : > { %vm5508_vm0 = vmand %vm932_vm3, %vm7646_vm2  ;;  %v1062_v35 = vpop.permute.xlu1 %1061  ;;  %v3101_v17 = vcombine.low %v1497_v19, %v1501_v28  ;;  %v3102_v60 = vcombine.high %v1497_v19, %v1501_v28  ;;  %v3104_v15 = vcombine.high %v1498_v51, %v1502_v14  ;;  %v1489_v28 = vld [vmem:[#allocation2 + $0x10] sm:$0xff] }
 0x1aa   : > { %vm1160_vm9 = vmand %vm1127_vm10, %vm7649_vm8  ;;  %v997_v44 = vsel %vm5508_vm0, 1.0, %v770_v42  ;;  %vm7657_vm10 = vcmp.ge.s32.totalorder %v4291_v21, 27  ;;  %vm7659_vm0 = vcmp.lt.s32.totalorder %v4291_v21, 5  ;;  %v7682_v42 = vld [vmem:[#allocation16_spill] sm:$0xff] }
 0x1ab   : > { %vm1193_vm3 = vmand %vm1160_vm9, %vm7651_vm6  ;;  %v254_v11 = vsel %vm7659_vm0, %v3872_v3, 0.0  ;;  %vm675_vm0 = vcmp.eq.s32.totalorder %v4392_v48, %v611_v8  ;;  %2072 = vmatprep.subr.bf16.mxu0 %v3102_v60  ;;  %2265 = vmatprep.subr.bf16.mxu1 %v3104_v15 }
 0x1ac   : > { %vm5527_vm1 = vmand %vm447_vm13, %vm7652_vm14  ;;  %v1225_v23 = vsel %vm1193_vm3, 1.0, %v998_v29  ;;  %vm674_vm14 = vcmp.eq.s32.totalorder %v4392_v48, %v608_v45  ;;  %3328 = vset.pattern.permute.xlu1 %v7327_v32  ;;  %v3103_v29 = vcombine.low %v1498_v51, %v1502_v14  ;;  %2073 = vmatpush1.bf16.msra.mxu0 %v3101_v17  ;;  %v7742_v45 = vld [vmem:[#allocation26_spill] sm:$0xff] }
 0x1ad   : > { %vm7655_vm5 = vmmov %vm7651_vm6  ;;  %v1452_v38 = vsel %vm5456_vm11, 1.0, %v1225_v23  ;;  %vm7660_vm11 = vcmp.lt.s32.totalorder %v4291_v21, 16  ;;  %vm7663_vm6 = vcmp.lt.s32.totalorder %v4291_v21, 25  ;;  %864 = vperm.xlu1 %3328, %v7673_v58  }
 0x1ae   : > { %vm1192_vm2 = vmand %vm5462_vm12, %vm7655_vm5  ;;  %vm7658_vm12 = vcmp.lt.s32.totalorder %v4291_v21, 29  ;;  %vm7667_vm5 = vcmp.ge.s32.totalorder %v4291_v21, 16  ;;  %2266 = vmatpush1.bf16.msra.mxu1 %v3103_v29 }
 0x1af   : > { %vm934_vm13 = vmand %vm901_vm7, %vm7656_vm15  ;;  %v1224_v27 = vsel %vm1192_vm2, 1.0, %v997_v44  ;;  %vm7668_vm15 = vcmask 261120   ;;  %v7686_v44 = vld [vmem:[#allocation29_spill] sm:$0xff] }
 0x1b0   : > { %vm1386_vm8 = vmand %vm1353_vm4, %vm7657_vm10 }
 0x1b1   : > { %vm1419_vm9 = vmand %vm1386_vm8, %vm7658_vm12  ;;  %vm1129_vm8 = vcmp.eq.s32.totalorder %v4528_v5, %v5034_v16  ;;  %vm7671_vm12 = vcmp.ge.s32.totalorder %v4291_v21, 5  ;;  %v3873_v16 = vld [vmem:[%s4049_s6 + $0x78] sm:$0xff]  ;;  %867 = vperm.xlu1 %3328, %v7681_v20  }
 0x1b2   : > { %v1451_v12 = vsel %vm1419_vm9, 1.0, %v1224_v27  ;;  %vm5556_vm7 = vmand %vm5527_vm1, %vm7660_vm11  ;;  %vm448_vm1 = vcmp.eq.s32.totalorder %v4301_v26, %v7666_v40  ;;  %v7699_v40 = vmov 5  }
 0x1b3   : > { %v5560_v46 = vpack.c.bf16 %v1452_v38, %v1451_v12  ;;  %vm5565_vm3 = vmand %vm934_vm13, %vm7663_vm6  ;;  %v545_v1 = vsel %vm5556_vm7, 1.0, %v254_v11  ;;  %vm7670_vm13 = vcmp.lt.s32.totalorder %v4291_v21, 18  ;;  %vm7674_vm6 = vcmp.ge.s32.totalorder %v4291_v21, 25  ;;  %v1289_v38 = vpop.permute.xlu1 %1288  ;;  %v5642_v12 = vpop.permute.xlu0 %646 }
 0x1b4   : > { %vm707_vm2 = vmand %vm674_vm14, %vm7667_vm5 }
 0x1b5   : > { %3111 = vmatmul.mubr.msk.bf16.gmra.mxu0 %vm7668_vm15, %v5560_v46  ;;  %vm7669_vm4 = vmmov %vm7668_vm15  ;;  %3329 = vset.pattern.permute.xlu1 %v7329_v57 }
 0x1b6   : > { %3127 = vmatmul.mubr.msk.bf16.gmra.mxu1 %vm7669_vm4, %v5560_v46  ;;  %vm740_vm10 = vmand %vm707_vm2, %vm7670_vm13  ;;  %1776 = vmatprep.mubr.bf16.mxu0 %v7496_v24 }
 0x1b7   : > { %1969 = vmatprep.mubr.bf16.mxu1 %v7496_v24  ;;  %v772_v25 = vsel %vm740_vm10, 1.0, %v545_v1  ;;  %vm481_vm9 = vmand %vm448_vm1, %vm7671_vm12  ;;  %vm7676_vm1 = vcmp.lt.s32.totalorder %v4291_v21, 16  ;;  %vm902_vm10 = vcmp.eq.s32.totalorder %v4495_v34, %v838_v22  ;;  %1094 = vperm.xlu1 %3329, %v7681_v20   ;;  %v1292_v27 = vpop.permute.xlu1 %1291  ;;  %v3874_v1 = vld [vmem:[%s4049_s6 + $0x88] sm:$0xff]  ;;  %v7709_v22 = vld [vmem:[#allocation17_spill] sm:$0xff] }
 0x1b8   : > { %v999_v50 = vsel %vm5565_vm3, 1.0, %v772_v25  ;;  %vm7672_vm11 = vmmov %vm7667_vm5  ;;  %vm7675_vm5 = vcmp.lt.s32.totalorder %v4291_v21, 5  ;;  %vm7678_vm3 = vcmp.lt.s32.totalorder %v4291_v21, 27  ;;  %v3875_v20 = vld [vmem:[%s4049_s6 + $0x80] sm:$0xff] }
 0x1b9   : > { %vm708_vm7 = vmand %vm675_vm0, %vm7672_vm11  ;;  %v255_v43 = vsel %vm7675_vm5, %v3873_v16, 0.0  ;;  %vm450_vm11 = vcmp.eq.s32.totalorder %v4301_v26, %v7682_v42  ;;  %vm904_vm5 = vcmp.eq.s32.totalorder %v4495_v34, %v7686_v44  ;;  %v5676_v16 = vpop.permute.xlu0 %649 }
 0x1ba   : > { %vm1162_vm14 = vmand %vm1129_vm8, %vm7674_vm6  ;;  %vm7679_vm8 = vcmp.ge.s32.totalorder %v4291_v21, 18  ;;  %vm7683_vm6 = vcmp.ge.s32.totalorder %v4291_v21, 5 }
 0x1bb   : > { %vm514_vm2 = vmand %vm481_vm9, %vm7676_vm1  ;;  %vm7680_vm9 = vcmp.lt.s32.totalorder %v4291_v21, 25  ;;  %vm7687_vm1 = vcmp.ge.s32.totalorder %v4291_v21, 25  ;;  %3330 = vset.pattern.permute.xlu1 %v7328_v47  ;;  %v617_v8 = vpop.permute.xlu1 %616 }
 0x1bc   : > { %vm7677_vm15 = vmmov %vm7670_vm13  ;;  %v546_v61 = vsel %vm514_vm2, 1.0, %v255_v43  ;;  %1318 = vperm.xlu1 %3330, %v7673_v58   ;;  %v7704_v58 = vld [vmem:[#allocation25_spill] sm:$0xff] }
 0x1bd   : > { %vm741_vm4 = vmand %vm708_vm7, %vm7677_vm15  ;;  %vm1128_vm7 = vcmp.eq.s32.totalorder %v4528_v5, %v1062_v35  ;;  %vm1355_vm15 = vcmp.eq.s32.totalorder %v4503_v33, %v1289_v38  ;;  %v7710_v35 = vld [vmem:[#allocation13_spill] sm:$0xff] }
 0x1be   : > { %vm1195_vm13 = vmand %vm1162_vm14, %vm7678_vm3  ;;  %v773_v49 = vsel %vm741_vm4, 1.0, %v546_v61  ;;  %vm7688_vm4 = vcmp.ge.s32.totalorder %v4291_v21, 27 }
 0x1bf   : > { %vm935_vm12 = vmand %vm902_vm10, %vm7679_vm8 }
 0x1c0   : > { %vm968_vm0 = vmand %vm935_vm12, %vm7680_vm9  ;;  %vm7693_vm9 = vcmp.lt.s32.totalorder %v4291_v21, 29  ;;  %3331 = vset.pattern.permute.xlu1 %v7699_v40 }
 0x1c1   : > { %v1000_v36 = vsel %vm968_vm0, 1.0, %v773_v49  ;;  %vm5621_vm14 = vmand %vm450_vm11, %vm7683_vm6  ;;  %vm1356_vm11 = vcmp.eq.s32.totalorder %v4503_v33, %v1292_v27  ;;  %419 = vperm.xlu1 %3331, %v7704_v58   ;;  %v841_v49 = vpop.permute.xlu1 %840 }
 0x1c2   : > { %v1227_v7 = vsel %vm1195_vm13, 1.0, %v1000_v36  ;;  %vm1161_vm2 = vmand %vm1128_vm7, %vm7687_vm1 }
 0x1c3   : > { %vm1388_vm3 = vmand %vm1355_vm15, %vm7688_vm4 }
 0x1c4   : > { %vm7689_vm13 = vmmov %vm7679_vm8  ;;  %vm7692_vm8 = vcmp.lt.s32.totalorder %v4291_v21, 27 }
 0x1c5   : > { %vm5635_vm10 = vmand %vm904_vm5, %vm7689_vm13  ;;  %3332 = vset.pattern.permute.xlu1 %v7325_v9  ;;  %v1068_v19 = vpop.permute.xlu1 %1067 }
 0x1c6   : > { %vm1194_vm12 = vmand %vm1161_vm2, %vm7692_vm8  ;;  %vm7696_vm2 = vcmp.lt.s32.totalorder %v4291_v21, 16  ;;  %vm7705_vm8 = vcmp.ge.s32.totalorder %v4291_v21, 16  ;;  %643 = vperm.xlu1 %3332, %v7710_v35  }
 0x1c7   : > { %vm1421_vm0 = vmand %vm1388_vm3, %vm7693_vm9  ;;  %v1226_v3 = vsel %vm1194_vm12, 1.0, %v999_v50  ;;  %vm7701_vm3 = vcmp.lt.s32.totalorder %v4291_v21, 25 }
 0x1c8   : > { %vm7694_vm7 = vmmov %vm7688_vm4  ;;  %v1453_v11 = vsel %vm1421_vm0, 1.0, %v1226_v3  ;;  %vm7700_vm4 = vcmp.lt.s32.totalorder %v4291_v21, 5 }
 0x1c9   : > { %vm1389_vm6 = vmand %vm1356_vm11, %vm7694_vm7  ;;  %v257_v25 = vsel %vm7700_vm4, %v3874_v1, 0.0  ;;  %vm449_vm7 = vcmp.eq.s32.totalorder %v4301_v26, %v7709_v22  ;;  %vm903_vm4 = vcmp.eq.s32.totalorder %v4495_v34, %v841_v49  ;;  %v1071_v51 = vpop.permute.xlu1 %1070  ;;  %v7744_v1 = vld [vmem:[#allocation21_spill] sm:$0xff] }
 0x1ca   : > { %vm7695_vm5 = vmmov %vm7693_vm9  ;;  %vm7706_vm9 = vcmask 261120   ;;  %3333 = vset.pattern.permute.xlu1 %v7327_v32 }
 0x1cb   : > { %vm1422_vm1 = vmand %vm1389_vm6, %vm7695_vm5  ;;  %vm676_vm6 = vcmp.eq.s32.totalorder %v4392_v48, %v5189_v4  ;;  %vm7711_vm5 = vcmp.ge.s32.totalorder %v4291_v21, 5  ;;  %870 = vperm.xlu1 %3333, %v7710_v35  }
 0x1cc   : > { %v1454_v6 = vsel %vm1422_vm1, 1.0, %v1227_v7  ;;  %vm5656_vm15 = vmand %vm5621_vm14, %vm7696_vm2  ;;  %vm677_vm14 = vcmp.eq.s32.totalorder %v4392_v48, %v617_v8  ;;  %v1295_v7 = vpop.permute.xlu0 %1294 }
 0x1cd   : > { %v5660_v10 = vpack.c.bf16 %v1454_v6, %v1453_v11  ;;  %vm5670_vm13 = vmand %vm5635_vm10, %vm7701_vm3  ;;  %v548_v43 = vsel %vm5656_vm15, 1.0, %v257_v25  ;;  %vm7708_vm10 = vcmp.lt.s32.totalorder %v4291_v21, 18  ;;  %vm7713_vm3 = vcmp.lt.s32.totalorder %v4291_v21, 16  ;;  %v1298_v42 = vpop.permute.xlu1 %1297  ;;  %v7732_v11 = vld [vmem:[#allocation18_spill] sm:$0xff]  ;;  %v7746_v25 = vld [vmem:[#allocation19_spill] sm:$0xff] }
 0x1ce   : > { %vm710_vm12 = vmand %vm677_vm14, %vm7705_vm8 }
 0x1cf   : > { %3112 = vmatmul.mubr.msk.bf16.gmra.mxu0 %vm7706_vm9, %v5660_v10  ;;  %vm7707_vm0 = vmmov %vm7706_vm9  ;;  %vm1130_vm9 = vcmp.eq.s32.totalorder %v4528_v5, %v1068_v19  ;;  %873 = vperm.xlu1 %3333, %v7704_v58  }
 0x1d0   : > { %3128 = vmatmul.mubr.msk.bf16.gmra.mxu1 %vm7707_vm0, %v5660_v10  ;;  %vm743_vm11 = vmand %vm710_vm12, %vm7708_vm10  ;;  %1786 = vmatprep.mubr.bf16.mxu0 %v7496_v24  ;;  %vm7719_vm0 = vcmp.lt.s32.totalorder %v4291_v21, 5 }
 0x1d1   : > { %1979 = vmatprep.mubr.bf16.mxu1 %v7496_v24  ;;  %v775_v61 = vsel %vm743_vm11, 1.0, %v548_v43  ;;  %vm482_vm1 = vmand %vm449_vm7, %vm7711_vm5  ;;  %v256_v17 = vsel %vm7719_vm0, %v3875_v20, 0.0  ;;  %vm7721_vm7 = vcmp.ge.s32.totalorder %v4291_v21, 27  ;;  %vm7724_vm5 = vcmp.ge.s32.totalorder %v4291_v21, 25  ;;  %v620_v3 = vpop.permute.xlu1 %619  ;;  %v1493_v20 = vld [vmem:[#allocation2 + $0x30] sm:$0xff] }
 0x1d2   : > { %v1002_v36 = vsel %vm5670_vm13, 1.0, %v775_v61  ;;  %vm7712_vm2 = vmmov %vm7705_vm8  ;;  %vm1357_vm13 = vcmp.eq.s32.totalorder %v4503_v33, %v1295_v7  ;;  %v3093_v60 = vcombine.low %v1489_v28, %v1493_v20 }
 0x1d3   : > { %vm709_vm15 = vmand %vm676_vm6, %vm7712_vm2  ;;  %vm7725_vm2 = vcmp.lt.s32.totalorder %v4291_v21, 25  ;;  %3335 = vset.pattern.permute.xlu1 %v7329_v57 }
 0x1d4   : > { %vm5705_vm14 = vmand %vm482_vm1, %vm7713_vm3  ;;  %vm1131_vm3 = vcmp.eq.s32.totalorder %v4528_v5, %v1071_v51  ;;  %1100 = vperm.xlu1 %3335, %v7704_v58   ;;  %v1304_v58 = vpop.permute.xlu0 %1303  ;;  %v3094_v51 = vcombine.high %v1489_v28, %v1493_v20  ;;  %v3877_v20 = vld [vmem:[%s4049_s6 + $0xa8] sm:$0xff] }
 0x1d5   : > { %vm7716_vm8 = vmmov %vm7708_vm10  ;;  %vm7720_vm10 = vcmp.ge.s32.totalorder %v4291_v21, 18  ;;  %v547_v14 = vsel %vm5705_vm14, 1.0, %v256_v17  ;;  %v847_v6 = vpop.permute.xlu1 %846  ;;  %v7764_v17 = vld [vmem:[#allocation30_spill] sm:$0xff] }
 0x1d6   : > { %vm5713_vm12 = vmand %vm709_vm15, %vm7716_vm8  ;;  %vm7727_vm8 = vcmp.lt.s32.totalorder %v4291_v21, 27  ;;  %2074 = vmatprep.subr.bf16.mxu0 %v3094_v51 }
 0x1d7   : > { %vm936_vm11 = vmand %vm903_vm4, %vm7720_vm10  ;;  %v774_v29 = vsel %vm5713_vm12, 1.0, %v547_v14  ;;  %vm7729_vm10 = vcmp.lt.s32.totalorder %v4291_v21, 29  ;;  %v1490_v14 = vld [vmem:[#allocation2 + $0x18] sm:$0xff]  ;;  %2075 = vmatpush1.bf16.msra.mxu0 %v3093_v60 }
 0x1d8   : > { %vm5726_vm6 = vmand %vm1357_vm13, %vm7721_vm7  ;;  %vm1358_vm7 = vcmp.eq.s32.totalorder %v4503_v33, %v1298_v42  ;;  %3336 = vset.pattern.permute.xlu1 %v7328_v47 }
 0x1d9   : > { %vm1163_vm1 = vmand %vm1130_vm9, %vm7724_vm5  ;;  %1324 = vperm.xlu1 %3336, %v7710_v35   ;;  %v850_v22 = vpop.permute.xlu1 %849 }
 0x1da   : > { %vm969_vm15 = vmand %vm936_vm11, %vm7725_vm2 }
 0x1db   : > { %vm7726_vm4 = vmmov %vm7724_vm5  ;;  %v1001_v15 = vsel %vm969_vm15, 1.0, %v774_v29  ;;  %vm7730_vm5 = vcmp.ge.s32.totalorder %v4291_v21, 27  ;;  %vm1132_vm15 = vcmp.eq.s32.totalorder %v4528_v5, %v5056_v39  ;;  %v1494_v29 = vld [vmem:[#allocation2 + $0x38] sm:$0xff] }
 0x1dc   : > { %vm1164_vm13 = vmand %vm1131_vm3, %vm7726_vm4  ;;  %vm678_vm3 = vcmp.eq.s32.totalorder %v4392_v48, %v620_v3  ;;  %vm7733_vm4 = vcmp.ge.s32.totalorder %v4291_v21, 16  ;;  %v3095_v42 = vcombine.low %v1490_v14, %v1494_v29 }
 0x1dd   : > { %vm1196_vm0 = vmand %vm1163_vm1, %vm7727_vm8  ;;  %3337 = vset.pattern.permute.xlu1 %v7699_v40 }
 0x1de   : > { %vm7728_vm9 = vmmov %vm7727_vm8  ;;  %v1228_v23 = vsel %vm1196_vm0, 1.0, %v1001_v15  ;;  %vm7734_vm8 = vcmask 261120   ;;  %422 = vperm.xlu1 %3337, %v7742_v45   ;;  %v1077_v7 = vpop.permute.xlu1 %1076 }
 0x1df   : > { %vm1197_vm14 = vmand %vm1164_vm13, %vm7728_vm9  ;;  %vm7736_vm9 = vcmp.ge.s32.totalorder %v4291_v21, 25 }
 0x1e0   : > { %vm1423_vm11 = vmand %vm5726_vm6, %vm7729_vm10  ;;  %v1229_v44 = vsel %vm1197_vm14, 1.0, %v1002_v36  ;;  %vm452_vm6 = vcmp.eq.s32.totalorder %v4301_v26, %v7732_v11  ;;  %v3876_v36 = vld [vmem:[%s4049_s6 + $0x98] sm:$0xff] }
 0x1e1   : > { %vm1391_vm12 = vmand %vm1358_vm7, %vm7730_vm5  ;;  %v1455_v38 = vsel %vm1423_vm11, 1.0, %v1228_v23  ;;  %vm7740_vm7 = vcmp.lt.s32.totalorder %v4291_v21, 18  ;;  %v3096_v23 = vcombine.high %v1490_v14, %v1494_v29 }
 0x1e2   : > { %vm7731_vm1 = vmmov %vm7729_vm10  ;;  %vm7737_vm10 = vcmp.ge.s32.totalorder %v4291_v21, 5  ;;  %425 = vperm.xlu1 %3337, %v5213_v31  }
 0x1e3   : > { %vm1424_vm2 = vmand %vm1391_vm12, %vm7731_vm1  ;;  %vm7741_vm12 = vcmp.lt.s32.totalorder %v4291_v21, 27  ;;  %v1301_v3 = vpop.permute.xlu1 %1300  ;;  %2267 = vmatprep.subr.bf16.mxu1 %v3096_v23 }
 0x1e4   : > { %v1456_v56 = vsel %vm1424_vm2, 1.0, %v1229_v44  ;;  %vm711_vm13 = vmand %vm678_vm3, %vm7733_vm4  ;;  %vm905_vm2 = vcmp.eq.s32.totalorder %v4495_v34, %v847_v6  ;;  %vm7745_vm4 = vnez %v7744_v1  ;;  %2268 = vmatpush1.bf16.msra.mxu1 %v3095_v42 }
 0x1e5   : > { %v5759_v27 = vpack.c.bf16 %v1456_v56, %v1455_v38  ;;  %vm7735_vm0 = vmmov %vm7734_vm8  ;;  %v7747_v8 = vsel %vm7745_vm4, 1.0, %v7746_v25 }
 0x1e6   : > { %vm1165_vm14 = vmand %vm1132_vm15, %vm7736_vm9  ;;  %vm679_vm15 = vcmp.eq.s32.totalorder %v4392_v48, %v5217_v13  ;;  %3339 = vset.pattern.permute.xlu1 %v7325_v9 }
 0x1e7   : > { %3113 = vmatmul.mubr.msk.bf16.gmra.mxu0 %vm7734_vm8, %v5759_v27  ;;  %3129 = vmatmul.mubr.msk.bf16.gmra.mxu1 %vm7735_vm0, %v5759_v27  ;;  %vm5778_vm11 = vmand %vm452_vm6, %vm7737_vm10  ;;  %vm7743_vm6 = vcmp.ge.s32.totalorder %v4291_v21, 18  ;;  %vm7749_vm0 = vcmp.ge.s32.totalorder %v4291_v21, 16  ;;  %vm7750_vm10 = vcmp.lt.s32.totalorder %v4291_v21, 16 }
 0x1e8   : > { %1796 = vmatprep.mubr.bf16.mxu0 %v7496_v24  ;;  %1989 = vmatprep.mubr.bf16.mxu1 %v7496_v24  ;;  %vm744_vm5 = vmand %vm711_vm13, %vm7740_vm7  ;;  %vm7748_vm13 = vcmp.lt.s32.totalorder %v4291_v21, 25  ;;  %v626_v25 = vpop.permute.xlu1 %625 }
 0x1e9   : > { %vm1198_vm1 = vmand %vm1165_vm14, %vm7741_vm12  ;;  %v776_v50 = vsel %vm744_vm5, 1.0, %v7747_v8  ;;  %vm906_vm14 = vcmp.eq.s32.totalorder %v4495_v34, %v850_v22  ;;  %vm1360_vm5 = vcmp.eq.s32.totalorder %v4503_v33, %v1304_v58  ;;  %652 = vperm.xlu1 %3339, %v5213_v31   ;;  %v7772_v8 = vlaneseq  ;;  %v7783_v22 = vld [vmem:[#allocation22_spill] sm:$0xff] }
 0x1ea   : > { %vm938_vm3 = vmand %vm905_vm2, %vm7743_vm6 }
 0x1eb   : > { %vm971_vm8 = vmand %vm938_vm3, %vm7748_vm13 }
 0x1ec   : > { %v1003_v43 = vsel %vm971_vm8, 1.0, %v776_v50  ;;  %vm712_vm9 = vmand %vm679_vm15, %vm7749_vm0  ;;  %vm7754_vm15 = vcmp.lt.s32.totalorder %v4291_v21, 18  ;;  %vm1133_vm8 = vcmp.eq.s32.totalorder %v4528_v5, %v1077_v7  ;;  %vm907_vm0 = vcmp.eq.s32.totalorder %v4495_v34, %v7764_v17  ;;  %v629_v49 = vpop.permute.xlu1 %628  ;;  %v1503_v7 = vld [vmem:[#allocation4] sm:$0xff] }
 0x1ed   : > { %v1230_v13 = vsel %vm1198_vm1, 1.0, %v1003_v43  ;;  %vm5807_vm7 = vmand %vm5778_vm11, %vm7750_vm10  ;;  %vm7757_vm1 = vcmp.lt.s32.totalorder %v4291_v21, 5  ;;  %vm7758_vm11 = vcmp.ge.s32.totalorder %v4291_v21, 27  ;;  %vm7766_vm10 = vcmp.lt.s32.totalorder %v4291_v21, 27  ;;  %3340 = vset.pattern.permute.xlu1 %v7327_v32  ;;  %v7776_v43 = vld [vmem:[#allocation20_spill] sm:$0xff] }
 0x1ee   : > { %vm7753_vm12 = vmmov %vm7743_vm6  ;;  %v259_v35 = vsel %vm7757_vm1, %v3876_v36, 0.0  ;;  %876 = vperm.xlu1 %3340, %v7742_v45   ;;  %v5871_v50 = vshrl.u32 %v7772_v8, 7 }
 0x1ef   : > { %vm939_vm2 = vmand %vm906_vm14, %vm7753_vm12  ;;  %v550_v15 = vsel %vm5807_vm7, 1.0, %v259_v35  ;;  %vm7769_vm7 = vcmp.lt.s32.totalorder %v4291_v21, 29 }
 0x1f0   : > { %vm5816_vm6 = vmand %vm712_vm9, %vm7754_vm15  ;;  %vm7765_vm9 = vcmp.ge.s32.totalorder %v4291_v21, 25  ;;  %v1507_v36 = vsub.s32 0, %v5871_v50  ;;  %v1515_v35 = vsub.s32 2, %v5871_v50  ;;  %v1511_v4 = vsub.s32 1, %v5871_v50 }
 0x1f1   : > { %vm5826_vm3 = vmand %vm1360_vm5, %vm7758_vm11  ;;  %v777_v44 = vsel %vm5816_vm6, 1.0, %v550_v15  ;;  %vm1359_vm6 = vcmp.eq.s32.totalorder %v4503_v33, %v1301_v3  ;;  %v1519_v19 = vsub.s32 3, %v5871_v50  ;;  %v856_v14 = vpop.permute.xlu1 %855 }
 0x1f2   : > { %vm7761_vm4 = vmmov %vm7748_vm13  ;;  %3341 = vset.pattern.permute.xlu1 %v7329_v57  ;;  %v5927_v60 = vrot.slane %v1503_v7, %v1507_v36  ;;  %v5929_v51 = vrot.slane %v1503_v7, %v1515_v35  ;;  %v5942_v15 = vrot.slane %v1503_v7, %v1511_v4 }
 0x1f3   : > { %vm5832_vm13 = vmand %vm939_vm2, %vm7761_vm4  ;;  %1103 = vperm.xlu1 %3341, %v7742_v45   ;;  %v7781_v45 = vld [vmem:[#allocation24_spill] sm:$0xff]  ;;  %v5944_v42 = vrot.slane %v1503_v7, %v1519_v19  ;;  %v7798_v19 = vld [vmem:[#allocation23_spill] sm:$0xff] }
 0x1f4   : > { %vm1166_vm14 = vmand %vm1133_vm8, %vm7765_vm9  ;;  %v1004_v56 = vsel %vm5832_vm13, 1.0, %v777_v44  ;;  %vm454_vm9 = vcmp.eq.s32.totalorder %v4301_v26, %v7776_v43 }
 0x1f5   : > { %vm1199_vm5 = vmand %vm1166_vm14, %vm7766_vm10  ;;  %vm7777_vm14 = vcmp.ge.s32.totalorder %v4291_v21, 16 }
 0x1f6   : > { %vm5850_vm2 = vmand %vm907_vm0, %vm7753_vm12  ;;  %v1231_v11 = vsel %vm1199_vm5, 1.0, %v1004_v56  ;;  %vm680_vm0 = vcmp.eq.s32.totalorder %v4392_v48, %v626_v25  ;;  %vm7778_vm5 = vcmask 261120   ;;  %v1080_v43 = vpop.permute.xlu1 %1079 }
 0x1f7   : > { %vm1426_vm15 = vmand %vm5826_vm3, %vm7769_vm7  ;;  %vm7773_vm3 = vcmp.lt.s32.totalorder %v4291_v21, 25  ;;  %1106 = vperm.xlu1 %3341, %v5213_v31  }
 0x1f8   : > { %vm7770_vm1 = vmmov %vm7758_vm11  ;;  %v1458_v39 = vsel %vm1426_vm15, 1.0, %v1231_v11  ;;  %vm1135_vm15 = vcmp.eq.s32.totalorder %v4528_v5, %v5087_v52 }
 0x1f9   : > { %vm1392_vm11 = vmand %vm1359_vm6, %vm7770_vm1  ;;  %vm7782_vm6 = vnez %v7781_v45  ;;  %vm7785_vm1 = vcmp.ge.s32.totalorder %v4291_v21, 5 }
 0x1fa   : > { %vm7771_vm4 = vmmov %vm7769_vm7 }
 0x1fb   : > { %vm1425_vm13 = vmand %vm1392_vm11, %vm7771_vm4  ;;  %vm681_vm4 = vcmp.eq.s32.totalorder %v4392_v48, %v629_v49  ;;  %3343 = vset.pattern.permute.xlu1 %v7328_v47  ;;  %v1307_v28 = vpop.permute.xlu1 %1306 }
 0x1fc   : > { %v1457_v6 = vsel %vm1425_vm13, 1.0, %v1230_v13  ;;  %vm5877_vm8 = vmand %vm5850_vm2, %vm7773_vm3  ;;  %vm7780_vm2 = vcmp.lt.s32.totalorder %v4291_v21, 18  ;;  %v7784_v13 = vsel %vm7782_vm6, 1.0, %v7783_v22  ;;  %vm908_vm6 = vcmp.eq.s32.totalorder %v4495_v34, %v856_v14  ;;  %1333 = vperm.xlu1 %3343, %v5213_v31  }
 0x1fd   : > { %v5867_v1 = vpack.c.bf16 %v1458_v39, %v1457_v6  ;;  %vm713_vm10 = vmand %vm680_vm0, %vm7777_vm14  ;;  %vm7787_vm0 = vcmp.ge.s32.totalorder %v4291_v21, 25 }
 0x1fe   : > { %vm7779_vm12 = vmmov %vm7778_vm5 }
 0x1ff   : > { %3114 = vmatmul.mubr.msk.bf16.gmra.mxu0 %vm7778_vm5, %v5867_v1  ;;  %3130 = vmatmul.mubr.msk.bf16.gmra.mxu1 %vm7779_vm12, %v5867_v1  ;;  %vm746_vm7 = vmand %vm713_vm10, %vm7780_vm2  ;;  %vm7791_vm5 = vcmp.lt.s32.totalorder %v4291_v21, 5 }
 0x200   : > { %1806 = vmatprep.mubr.bf16.mxu0 %v7496_v24  ;;  %1999 = vmatprep.mubr.bf16.mxu1 %v7496_v24  ;;  %v5901_v61 = vsel %vm746_vm7, 1.0, %v7784_v13  ;;  %vm487_vm11 = vmand %vm454_vm9, %vm7785_vm1  ;;  %vm7788_vm9 = vcmp.lt.s32.totalorder %v4291_v21, 16  ;;  %v261_v17 = vsel %vm7791_vm5, %v3877_v20, 0.0  ;;  %vm7793_vm7 = vcmp.lt.s32.totalorder %v4291_v21, 27  ;;  %v1708_v44 = vpop.f32.mrf.mxu0  ;;  %v1901_v38 = vpop.f32.mrf.mxu1 }
 0x201   : > { %v1005_v52 = vsel %vm5877_vm8, 1.0, %v5901_v61  ;;  %vm7786_vm13 = vmmov %vm7777_vm14  ;;  %vm7796_vm1 = vcmp.ge.s32.totalorder %v4291_v21, 18  ;;  %v1709_v3 = vadd.f32 %v1708_v44, %v5927_v60  ;;  %v1902_v31 = vadd.f32 %v1901_v38, %v5929_v51  ;;  %3344 = vset.pattern.permute.xlu1 %v7699_v40 }
 0x202   : > { %vm714_vm3 = vmand %vm681_vm4, %vm7786_vm13  ;;  %vm7797_vm4 = vcmp.lt.s32.totalorder %v4291_v21, 25  ;;  %v1710_v39 = vpop.f32.mrf.mxu0  ;;  %v1903_v6 = vpop.f32.mrf.mxu1  ;;  %428 = vperm.xlu1 %3344, %v5376_v37   ;;  %vm7802_vm5 = vcmp.ge.s32.totalorder %v4291_v21, 27  ;;  %vm7815_vm8 = vcmp.lt.s32.totalorder %v4291_v21, 16 }
 0x203   : > { %vm1168_vm14 = vmand %vm1135_vm15, %vm7787_vm0  ;;  %3352 = vtanh.f32 %v1709_v3  ;;  %v1711_v25 = vadd.f32 %v1710_v39, %v5942_v15  ;;  %v1904_v8 = vadd.f32 %v1903_v6, %v5944_v42  ;;  %vm456_vm0 = vcmp.eq.s32.totalorder %v4301_v26, %v7798_v19 }
 0x204   : > { %vm5920_vm10 = vmand %vm487_vm11, %vm7788_vm9  ;;  %3354 = vtanh.f32 %v1902_v31  ;;  %v1712_v22 = vpop.f32.mrf.mxu0  ;;  %v1905_v13 = vpop.f32.mrf.mxu1 }
 0x205   : > { %vm7792_vm12 = vmmov %vm7780_vm2  ;;  %v552_v23 = vsel %vm5920_vm10, 1.0, %v261_v17  ;;  %3356 = vtanh.f32 %v1711_v25  ;;  %v1713_v49 = vadd.f32 %v1712_v22, %v5927_v60  ;;  %v1906_v36 = vadd.f32 %v1905_v13, %v5929_v51  ;;  %v7813_v13 = vld [vmem:[#allocation31_spill] sm:$0xff] }
 0x206   : > { %vm747_vm2 = vmand %vm714_vm3, %vm7792_vm12  ;;  %3358 = vtanh.f32 %v1904_v8  ;;  %vm1134_vm3 = vcmp.eq.s32.totalorder %v4528_v5, %v1080_v43  ;;  %v1714_v35 = vpop.f32.mrf.mxu0  ;;  %v1907_v40 = vpop.f32.mrf.mxu1  ;;  %3346 = vset.pattern.permute.xlu1 %v7325_v9  ;;  %vm1361_vm10 = vcmp.eq.s32.totalorder %v4503_v33, %v1307_v28 }
 0x207   : > { %vm5936_vm15 = vmand %vm1168_vm14, %vm7793_vm7  ;;  %v779_v56 = vsel %vm747_vm2, 1.0, %v552_v23  ;;  %3360 = vtanh.f32 %v1713_v49  ;;  %v1715_v7 = vadd.f32 %v1714_v35, %v5942_v15  ;;  %v1908_v4 = vadd.f32 %v1907_v40, %v5944_v42  ;;  %655 = vperm.xlu1 %3346, %v5376_v37  }
 0x208   : > { %vm941_vm11 = vmand %vm908_vm6, %vm7796_vm1  ;;  %3362 = vtanh.f32 %v1906_v36  ;;  %v1718_v20 = vpop.f32.mrf.mxu0  ;;  %vm7799_vm14 = vcmp.ge.s32.totalorder %v4291_v21, 25  ;;  %v1911_v29 = vpop.f32.mrf.mxu1  ;;  %vm7803_vm2 = vcmp.ge.s32.totalorder %v4291_v21, 5  ;;  %vm7809_vm1 = vcmp.lt.s32.totalorder %v4291_v21, 29 }
 0x209   : > { %vm974_vm13 = vmand %vm941_vm11, %vm7797_vm4  ;;  %3364 = vtanh.f32 %v1715_v7  ;;  %v1719_v14 = vadd.f32 %v1718_v20, %v5927_v60  ;;  %v1912_v9 = vadd.f32 %v1911_v29, %v5929_v51 }
 0x20a   : > { %v1006_v11 = vsel %vm974_vm13, 1.0, %v779_v56  ;;  %vm5972_vm9 = vmand %vm1134_vm3, %vm7799_vm14  ;;  %3366 = vtanh.f32 %v1908_v4  ;;  %v1720_v23 = vpop.f32.mrf.mxu0  ;;  %v1913_v56 = vpop.f32.mrf.mxu1 }
 0x20b   : > { %v5959_v45 = vsel %vm5936_vm15, 1.0, %v1006_v11  ;;  %vm1394_vm12 = vmand %vm1361_vm10, %vm7802_vm5  ;;  %3368 = vtanh.f32 %v1719_v14  ;;  %v1721_v38 = vadd.f32 %v1720_v23, %v5942_v15  ;;  %vm7806_vm15 = vcmp.lt.s32.totalorder %v4291_v21, 27  ;;  %v1310_v11 = vpop.permute.xlu1 %1309  ;;  %658 = vperm.xlu1 %3346, %v5175_v62   ;;  %v3878_v14 = vld [vmem:[%s4049_s6 + $0xb8] sm:$0xff] }
 0x20c   : > { %vm5988_vm7 = vmand %vm456_vm0, %vm7803_vm2  ;;  %3370 = vtanh.f32 %v1912_v9  ;;  %v1914_v31 = vadd.f32 %v1913_v56, %v5944_v42  ;;  %v1722_v39 = vpop.f32.mrf.mxu0  ;;  %vm1362_vm4 = vcmp.eq.s32.totalorder %v4503_v33, %v1310_v11  ;;  %v1915_v8 = vpop.f32.mrf.mxu1  ;;  %vm910_vm0 = vcmp.eq.s32.totalorder %v4495_v34, %v7813_v13 }
 0x20d   : > { %vm5997_vm6 = vmand %vm5972_vm9, %vm7806_vm15  ;;  %3372 = vtanh.f32 %v1721_v38  ;;  %v1723_v25 = vadd.f32 %v1722_v39, %v5927_v60  ;;  %v1916_v43 = vadd.f32 %v1915_v8, %v5929_v51  ;;  %vm7822_vm15 = vcmp.ge.s32.totalorder %v4291_v21, 16 }
 0x20e   : > { %vm6004_vm11 = vmand %vm1394_vm12, %vm7809_vm1  ;;  %3374 = vtanh.f32 %v1914_v31  ;;  %v1724_v22 = vpop.f32.mrf.mxu0  ;;  %v1232_v49 = vsel %vm5997_vm6, 1.0, %v1005_v52  ;;  %v1917_v35 = vpop.f32.mrf.mxu1  ;;  %vm7819_vm12 = vcmp.ge.s32.totalorder %v4291_v21, 18 }
 0x20f   : > { %vm7812_vm13 = vmmov %vm7802_vm5  ;;  %3376 = vtanh.f32 %v1723_v25  ;;  %v1725_v36 = vadd.f32 %v1724_v22, %v5942_v15  ;;  %v1459_v7 = vsel %vm6004_vm11, 1.0, %v1232_v49  ;;  %v1918_v58 = vadd.f32 %v1917_v35, %v5944_v42  ;;  %v6034_v52 = vpop.permute.xlu0 %1312  ;;  %3347 = vset.pattern.permute.xlu1 %v7327_v32  ;;  %v635_v9 = vpop.permute.xlu1 %634 }
 0x210   : > { %vm1395_vm3 = vmand %vm1362_vm4, %vm7812_vm13  ;;  %v3353_v40 = vpop.eup %3352  ;;  %3378 = vtanh.f32 %v1916_v43  ;;  %v1728_v61 = vpop.f32.mrf.mxu0  ;;  %vm7818_vm5 = vcmp.lt.s32.totalorder %v4291_v21, 5  ;;  %885 = vperm.xlu1 %3347, %v5175_v62   ;;  %vm7825_vm4 = vcmp.lt.s32.totalorder %v4291_v21, 18 }
 0x211   : > { %vm7814_vm14 = vmmov %vm7809_vm1  ;;  %v3355_v19 = vpop.eup %3354  ;;  %2702 = vst [vmem:[%s6014_s10] sm:$0xff] %v3353_v40  ;;  %3380 = vtanh.f32 %v1725_v36  ;;  %v1921_v17 = vpop.f32.mrf.mxu1  ;;  %v263_v29 = vsel %vm7818_vm5, %v3878_v14, 0.0  ;;  %vm7823_vm1 = vcmask 261120  }
 0x212   : > { %vm1428_vm9 = vmand %vm1395_vm3, %vm7814_vm14  ;;  %v3357_v23 = vpop.eup %3356  ;;  %2704 = vst [vmem:[%s6014_s10 + $0x10] sm:$0xff] %v3355_v19  ;;  %3382 = vtanh.f32 %v1918_v58  ;;  %v1922_v32 = vadd.f32 %v1921_v17, %v5929_v51  ;;  %v1730_v38 = vpop.f32.mrf.mxu0  ;;  %vm7826_vm3 = vcmp.lt.s32.totalorder %v4291_v21, 25 }
 0x213   : > { %v1460_v4 = vsel %vm1428_vm9, 1.0, %v5959_v45  ;;  %vm6040_vm10 = vmand %vm5988_vm7, %vm7815_vm8  ;;  %v1729_v45 = vadd.f32 %v1728_v61, %v5927_v60  ;;  %vm683_vm7 = vcmp.eq.s32.totalorder %v4392_v48, %v635_v9  ;;  %v3359_v56 = vpop.eup %3358  ;;  %2703 = vst [vmem:[%s6014_s10 + $0x8] sm:$0xff] %v3357_v23  ;;  %v1731_v3 = vadd.f32 %v1730_v38, %v5942_v15  ;;  %v1923_v31 = vpop.f32.mrf.mxu1 }
 0x214   : > { %v6045_v20 = vpack.c.bf16 %v1460_v4, %v1459_v7  ;;  %vm6057_vm2 = vmand %vm910_vm0, %vm7819_vm12  ;;  %v3361_v11 = vpop.eup %3360  ;;  %2705 = vst [vmem:[%s6014_s10 + $0x18] sm:$0xff] %v3359_v56  ;;  %v554_v39 = vsel %vm6040_vm10, 1.0, %v263_v29  ;;  %v1924_v6 = vadd.f32 %v1923_v31, %v5944_v42  ;;  %v1732_v25 = vpop.f32.mrf.mxu0  ;;  %3348 = vset.pattern.permute.xlu1 %v7329_v57  ;;  %vm1363_vm9 = vcmp.eq.s32.totalorder %v4503_v33, %v6034_v52 }
 0x215   : > { %3384 = vtanh.f32 %v1729_v45  ;;  %vm716_vm6 = vmand %vm683_vm7, %vm7822_vm15  ;;  %v3363_v8 = vpop.eup %3362  ;;  %2710 = vst [vmem:[%s6014_s10 + $0x40] sm:$0xff] %v3361_v11  ;;  %v1733_v13 = vadd.f32 %v1732_v25, %v5927_v60  ;;  %v1925_v49 = vpop.f32.mrf.mxu1  ;;  %1109 = vperm.xlu1 %3348, %v5376_v37   ;;  %vm7835_vm7 = vcmp.ge.s32.totalorder %v4291_v21, 25 }
 0x216   : > { %3115 = vmatmul.mubr.msk.bf16.gmra.mxu0 %vm7823_vm1, %v6045_v20  ;;  %vm7824_vm11 = vmmov %vm7823_vm1  ;;  %3386 = vtanh.f32 %v1922_v32  ;;  %v3365_v36 = vpop.eup %3364  ;;  %2712 = vst [vmem:[%s6014_s10 + $0x50] sm:$0xff] %v3363_v8  ;;  %v1926_v35 = vadd.f32 %v1925_v49, %v5929_v51  ;;  %v859_v40 = vpop.permute.xlu1 %858 }
 0x217   : > { %3131 = vmatmul.mubr.msk.bf16.gmra.mxu1 %vm7824_vm11, %v6045_v20  ;;  %vm749_vm13 = vmand %vm716_vm6, %vm7825_vm4  ;;  %1816 = vmatprep.mubr.bf16.mxu0 %v7496_v24  ;;  %3388 = vtanh.f32 %v1731_v3  ;;  %v1734_v7 = vpop.f32.mrf.mxu0  ;;  %v3367_v58 = vpop.eup %3366  ;;  %2711 = vst [vmem:[%s6014_s10 + $0x48] sm:$0xff] %v3365_v36  ;;  %vm909_vm14 = vcmp.eq.s32.totalorder %v4495_v34, %v859_v40 }
 0x218   : > { %2009 = vmatprep.mubr.bf16.mxu1 %v7496_v24  ;;  %vm6085_vm0 = vmand %vm6057_vm2, %vm7826_vm3  ;;  %v6090_v22 = vsel %vm749_vm13, 1.0, %v554_v39  ;;  %3390 = vtanh.f32 %v1924_v6  ;;  %v1735_v61 = vadd.f32 %v1734_v7, %v5942_v15  ;;  %v1927_v19 = vpop.f32.mrf.mxu1  ;;  %v6102_v28 = vpop.permute.xlu0 %1321  ;;  %2713 = vst [vmem:[%s6014_s10 + $0x58] sm:$0xff] %v3367_v58 }
 0x219   : > { %v1008_v4 = vsel %vm6085_vm0, 1.0, %v6090_v22  ;;  %3392 = vtanh.f32 %v1733_v13  ;;  %v3369_v57 = vpop.eup %3368  ;;  %v1928_v45 = vadd.f32 %v1927_v19, %v5944_v42  ;;  %3350 = vset.pattern.permute.xlu1 %v7328_v47  ;;  %vm7829_vm10 = vmmov %vm7819_vm12  ;;  %vm7832_vm12 = vcmp.ge.s32.totalorder %v4291_v21, 27 }
 0x21a   : > { %3394 = vtanh.f32 %v1926_v35  ;;  %v3371_v17 = vpop.eup %3370  ;;  %2718 = vst [vmem:[%s6014_s10 + $0x80] sm:$0xff] %v3369_v57  ;;  %v1086_v9 = vpop.permute.xlu1 %1085  ;;  %1336 = vperm.xlu1 %3350, %v5376_v37   ;;  %vm6119_vm5 = vmand %vm909_vm14, %vm7829_vm10  ;;  %vm7850_vm10 = vcmp.lt.s32.totalorder %v4291_v21, 29  ;;  %vm7855_vm0 = vcmask 261120  }
 0x21b   : > { %3396 = vtanh.f32 %v1735_v61  ;;  %v3373_v14 = vpop.eup %3372  ;;  %2720 = vst [vmem:[%s6014_s10 + $0x90] sm:$0xff] %v3371_v17  ;;  %vm1136_vm8 = vcmp.eq.s32.totalorder %v4528_v5, %v1086_v9  ;;  %vm6128_vm2 = vmand %vm1363_vm9, %vm7832_vm12 }
 0x21c   : > { %3398 = vtanh.f32 %v1928_v45  ;;  %v3375_v29 = vpop.eup %3374  ;;  %2719 = vst [vmem:[%s6014_s10 + $0x88] sm:$0xff] %v3373_v14  ;;  %v6123_v52 = vpop.permute.xlu0 %1327  ;;  %vm6135_vm15 = vmand %vm1136_vm8, %vm7835_vm7 }
 0x21d   : > { %v3377_v23 = vpop.eup %3376  ;;  %2721 = vst [vmem:[%s6014_s10 + $0x98] sm:$0xff] %v3375_v29  ;;  %vm7838_vm6 = vmmov %vm7826_vm3  ;;  %vm7844_vm3 = vcmp.lt.s32.totalorder %v4291_v21, 27 }
 0x21e   : > { %v3379_v44 = vpop.eup %3378  ;;  %2726 = vst [vmem:[%s6014_s10 + $0xc0] sm:$0xff] %v3377_v23  ;;  %v1089_v11 = vpop.permute.xlu1 %1088  ;;  %vm6146_vm1 = vmand %vm6119_vm5, %vm7838_vm6  ;;  %1339 = vperm.xlu1 %3350, %v5175_v62  }
 0x21f   : > { %v3381_v47 = vpop.eup %3380  ;;  %2728 = vst [vmem:[%s6014_s10 + $0xd0] sm:$0xff] %v3379_v44  ;;  %vm1137_vm11 = vcmp.eq.s32.totalorder %v4528_v5, %v1089_v11  ;;  %vm7841_vm4 = vmmov %vm7835_vm7  ;;  %v1007_v9 = vsel %vm6146_vm1, 1.0, %v5286_v53  ;;  %vm7853_vm7 = vcmp.ge.s32.totalorder %v4291_v21, 27 }
 0x220   : > { %v1738_v37 = vpop.f32.mrf.mxu0  ;;  %v1931_v56 = vpop.f32.mrf.mxu1  ;;  %2727 = vst [vmem:[%s6014_s10 + $0xc8] sm:$0xff] %v3381_v47  ;;  %vm6155_vm13 = vmand %vm1137_vm11, %vm7841_vm4  ;;  %vm1138_vm4 = vcmp.eq.s32.totalorder %v4528_v5, %v5115_v59 }
 0x221   : > { %v3383_v3 = vpop.eup %3382  ;;  %v1739_v39 = vadd.f32 %v1738_v37, %v5927_v60  ;;  %v1932_v6 = vadd.f32 %v1931_v56, %v5929_v51  ;;  %vm6166_vm14 = vmand %vm6135_vm15, %vm7844_vm3  ;;  %v6173_v14 = vpop.permute.xlu0 %1330 }
 0x222   : > { %v3385_v25 = vpop.eup %3384  ;;  %2729 = vst [vmem:[%s6014_s10 + $0xd8] sm:$0xff] %v3383_v3  ;;  %v1740_v13 = vpop.f32.mrf.mxu0  ;;  %vm7847_vm9 = vmmov %vm7844_vm3  ;;  %v1234_v37 = vsel %vm6166_vm14, 1.0, %v1007_v9  ;;  %vm7857_vm3 = vcmp.ge.s32.totalorder %v4291_v21, 5 }
 0x223   : > { %v1933_v49 = vpop.f32.mrf.mxu1  ;;  %v3387_v36 = vpop.eup %3386  ;;  %2734 = vst [vmem:[%s6014_s10 + $0x100] sm:$0xff] %v3385_v25  ;;  %3400 = vtanh.f32 %v1739_v39  ;;  %v1741_v40 = vadd.f32 %v1740_v13, %v5942_v15  ;;  %vm6183_vm8 = vmand %vm6155_vm13, %vm7847_vm9  ;;  %vm1366_vm13 = vcmp.eq.s32.totalorder %v4503_v33, %v6102_v28 }
 0x224   : > { %v1934_v7 = vadd.f32 %v1933_v49, %v5944_v42  ;;  %v3389_v58 = vpop.eup %3388  ;;  %2736 = vst [vmem:[%s6014_s10 + $0x110] sm:$0xff] %v3387_v36  ;;  %3402 = vtanh.f32 %v1932_v6  ;;  %v1742_v61 = vpop.f32.mrf.mxu0  ;;  %vm6192_vm5 = vmand %vm6128_vm2, %vm7850_vm10  ;;  %v1235_v39 = vsel %vm6183_vm8, 1.0, %v1008_v4  ;;  %vm7858_vm8 = vcmp.ge.s32.totalorder %v4291_v21, 25 }
 0x225   : > { %v1935_v19 = vpop.f32.mrf.mxu1  ;;  %v3391_v57 = vpop.eup %3390  ;;  %2735 = vst [vmem:[%s6014_s10 + $0x108] sm:$0xff] %v3389_v58  ;;  %3404 = vtanh.f32 %v1741_v40  ;;  %v1743_v45 = vadd.f32 %v1742_v61, %v5927_v60  ;;  %vm7854_vm2 = vmmov %vm7850_vm10  ;;  %v1461_v6 = vsel %vm6192_vm5, 1.0, %v1234_v37 }
 0x226   : > { %v1936_v17 = vadd.f32 %v1935_v19, %v5929_v51  ;;  %v3393_v29 = vpop.eup %3392  ;;  %2737 = vst [vmem:[%s6014_s10 + $0x118] sm:$0xff] %v3391_v57  ;;  %3406 = vtanh.f32 %v1934_v7  ;;  %v1316_v44 = vpop.permute.xlu1 %1315  ;;  %vm7856_vm1 = vmmov %vm7855_vm0  ;;  %v3879_v57 = vld [vmem:[%s4049_s6 + $0xc0] sm:$0xff] }
 0x227   : > { %v1744_v32 = vpop.f32.mrf.mxu0  ;;  %v3395_v47 = vpop.eup %3394  ;;  %2742 = vst [vmem:[%s6014_s10 + $0x140] sm:$0xff] %v3393_v29  ;;  %3408 = vtanh.f32 %v1743_v45  ;;  %vm1364_vm12 = vcmp.eq.s32.totalorder %v4503_v33, %v1316_v44  ;;  %vm6236_vm10 = vmand %vm1138_vm4, %vm7858_vm8  ;;  %vm7871_vm8 = vcmp.lt.s32.totalorder %v4291_v21, 18 }
 0x228   : > { %v1745_v56 = vadd.f32 %v1744_v32, %v5942_v15  ;;  %v1937_v3 = vpop.f32.mrf.mxu1  ;;  %v3397_v31 = vpop.eup %3396  ;;  %2744 = vst [vmem:[%s6014_s10 + $0x150] sm:$0xff] %v3395_v47  ;;  %3410 = vtanh.f32 %v1936_v17  ;;  %vm1397_vm15 = vmand %vm1364_vm12, %vm7853_vm7 }
 0x229   : > { %v1938_v38 = vadd.f32 %v1937_v3, %v5944_v42  ;;  %v3399_v11 = vpop.eup %3398  ;;  %2743 = vst [vmem:[%s6014_s10 + $0x148] sm:$0xff] %v3397_v31  ;;  %vm1430_vm6 = vmand %vm1397_vm15, %vm7854_vm2  ;;  %v411_v43 = vpop.permute.xlu0 %410  ;;  %vm7864_vm15 = vcmp.lt.s32.totalorder %v4291_v21, 16 }
 0x22a   : > { %3412 = vtanh.f32 %v1745_v56  ;;  %2745 = vst [vmem:[%s6014_s10 + $0x158] sm:$0xff] %v3399_v11  ;;  %v1462_v25 = vsel %vm1430_vm6, 1.0, %v1235_v39  ;;  %v638_v13 = vpop.permute.xlu1 %637  ;;  %vm457_vm11 = vcmp.eq.s32.totalorder %v4301_v26, %v411_v43  ;;  %vm7861_vm12 = vmmov %vm7853_vm7  ;;  %vm7867_vm6 = vcmp.ge.s32.totalorder %v4291_v21, 16 }
 0x22b   : > { %3414 = vtanh.f32 %v1938_v38  ;;  %v6216_v8 = vpack.c.bf16 %v1462_v25, %v1461_v6  ;;  %vm490_vm14 = vmand %vm457_vm11, %vm7857_vm3  ;;  %vm684_vm9 = vcmp.eq.s32.totalorder %v4392_v48, %v638_v13  ;;  %vm7868_vm11 = vcmp.ge.s32.totalorder %v4291_v21, 18 }
 0x22c   : > { %vm6244_vm7 = vmand %vm1366_vm13, %vm7861_vm12  ;;  %vm7869_vm13 = vcmp.lt.s32.totalorder %v4291_v21, 5  ;;  %vm7872_vm12 = vcmp.lt.s32.totalorder %v4291_v21, 25 }
 0x22d   : > { %3116 = vmatmul.mubr.msk.bf16.gmra.mxu0 %vm7855_vm0, %v6216_v8  ;;  %3132 = vmatmul.mubr.msk.bf16.gmra.mxu1 %vm7856_vm1, %v6216_v8  ;;  %vm6251_vm2 = vmand %vm490_vm14, %vm7864_vm15  ;;  %v264_v45 = vsel %vm7869_vm13, %v3879_v57, 0.0 }
 0x22e   : > { %1826 = vmatprep.mubr.bf16.mxu0 %v7496_v24  ;;  %2019 = vmatprep.mubr.bf16.mxu1 %v7496_v24  ;;  %v865_v4 = vpop.permute.xlu1 %864  ;;  %vm717_vm0 = vmand %vm684_vm9, %vm7867_vm6  ;;  %v555_v9 = vsel %vm6251_vm2, 1.0, %v264_v45 }
 0x22f   : > { %vm911_vm5 = vcmp.eq.s32.totalorder %v4495_v34, %v865_v4  ;;  %vm7870_vm3 = vmmov %vm7868_vm11 }
 0x230   : > { %v3401_v22 = vpop.eup %3400  ;;  %vm944_vm4 = vmand %vm911_vm5, %vm7868_vm11 }
 0x231   : > { %v3403_v49 = vpop.eup %3402  ;;  %2750 = vst [vmem:[%s6014_s10 + $0x180] sm:$0xff] %v3401_v22  ;;  %vm750_vm9 = vmand %vm717_vm0, %vm7871_vm8  ;;  %vm7878_vm0 = vcmp.ge.s32.totalorder %v4291_v21, 25 }
 0x232   : > { %v3405_v36 = vpop.eup %3404  ;;  %2752 = vst [vmem:[%s6014_s10 + $0x190] sm:$0xff] %v3403_v49  ;;  %v868_v58 = vpop.permute.xlu1 %867  ;;  %vm6273_vm15 = vmand %vm944_vm4, %vm7872_vm12  ;;  %vm7879_vm4 = vcmp.lt.s32.totalorder %v4291_v21, 27  ;;  %v782_v32 = vsel %vm750_vm9, 1.0, %v555_v9  ;;  %vm7886_vm9 = vcmp.ge.s32.totalorder %v4291_v21, 27 }
 0x233   : > { %v3407_v35 = vpop.eup %3406  ;;  %2751 = vst [vmem:[%s6014_s10 + $0x188] sm:$0xff] %v3405_v36  ;;  %vm912_vm1 = vcmp.eq.s32.totalorder %v4495_v34, %v868_v58  ;;  %vm7875_vm5 = vmmov %vm7872_vm12  ;;  %v1009_v56 = vsel %vm6273_vm15, 1.0, %v782_v32 }
 0x234   : > { %v3409_v28 = vpop.eup %3408  ;;  %2753 = vst [vmem:[%s6014_s10 + $0x198] sm:$0xff] %v3407_v35  ;;  %vm945_vm14 = vmand %vm912_vm1, %vm7870_vm3 }
 0x235   : > { %v3411_v62 = vpop.eup %3410  ;;  %2758 = vst [vmem:[%s6014_s10 + $0x1c0] sm:$0xff] %v3409_v28  ;;  %vm6281_vm6 = vmand %vm945_vm14, %vm7875_vm5  ;;  %vm7883_vm14 = vcmp.lt.s32.totalorder %v4291_v21, 29  ;;  %vm7888_vm5 = vcmask 261120  }
 0x236   : > { %2760 = vst [vmem:[%s6014_s10 + $0x1d0] sm:$0xff] %v3411_v62  ;;  %v1095_v29 = vpop.permute.xlu1 %1094  ;;  %vm7880_vm2 = vmmov %vm7879_vm4  ;;  %v1010_v3 = vsel %vm6281_vm6, 1.0, %v5326_v55 }
 0x237   : > { %v3413_v61 = vpop.eup %3412  ;;  %vm1139_vm1 = vcmp.eq.s32.totalorder %v4528_v5, %v1095_v29  ;;  %vm6295_vm3 = vmand %vm6236_vm10, %vm7880_vm2  ;;  %vm1140_vm2 = vcmp.eq.s32.totalorder %v4528_v5, %v5128_v18 }
 0x238   : > { %v3415_v19 = vpop.eup %3414  ;;  %2759 = vst [vmem:[%s6014_s10 + $0x1c8] sm:$0xff] %v3413_v61  ;;  %vm1172_vm11 = vmand %vm1139_vm1, %vm7878_vm0  ;;  %v1236_v22 = vsel %vm6295_vm3, 1.0, %v1009_v56  ;;  %vm687_vm1 = vcmp.eq.s32.totalorder %v4392_v48, %v5642_v12  ;;  %vm7891_vm3 = vcmp.ge.s32.totalorder %v4291_v21, 5 }
 0x239   : > { %2761 = vst [vmem:[%s6014_s10 + $0x1d8] sm:$0xff] %v3415_v19  ;;  %vm1205_vm13 = vmand %vm1172_vm11, %vm7879_vm4  ;;  %v417_v19 = vpop.permute.xlu0 %416  ;;  %vm7890_vm4 = vcmp.ge.s32.totalorder %v4291_v21, 16 }
 0x23a   : > { %v1319_v38 = vpop.permute.xlu1 %1318  ;;  %vm6309_vm8 = vmand %vm6244_vm7, %vm7883_vm14  ;;  %v1237_v6 = vsel %vm1205_vm13, 1.0, %v1010_v3  ;;  %vm459_vm0 = vcmp.eq.s32.totalorder %v4301_v26, %v417_v19 }
 0x23b   : > { %vm1365_vm10 = vcmp.eq.s32.totalorder %v4503_v33, %v1319_v38  ;;  %vm7887_vm7 = vmmov %vm7883_vm14  ;;  %v1464_v36 = vsel %vm6309_vm8, 1.0, %v1237_v6  ;;  %vm1368_vm8 = vcmp.eq.s32.totalorder %v4503_v33, %v6123_v52 }
 0x23c   : > { %v1748_v44 = vpop.f32.mrf.mxu0  ;;  %vm1398_vm12 = vmand %vm1365_vm10, %vm7886_vm9 }
 0x23d   : > { %v1749_v47 = vadd.f32 %v1748_v44, %v5927_v60  ;;  %vm1431_vm15 = vmand %vm1398_vm12, %vm7887_vm7  ;;  %vm7893_vm12 = vcmp.lt.s32.totalorder %v4291_v21, 18 }
 0x23e   : > { %v1750_v11 = vpop.f32.mrf.mxu0  ;;  %v1463_v35 = vsel %vm1431_vm15, 1.0, %v1236_v22  ;;  %v420_v7 = vpop.permute.xlu1 %419  ;;  %vm7889_vm6 = vmmov %vm7888_vm5 }
 0x23f   : > { %3416 = vtanh.f32 %v1749_v47  ;;  %v1751_v25 = vadd.f32 %v1750_v11, %v5942_v15  ;;  %v6326_v40 = vpack.c.bf16 %v1464_v36, %v1463_v35  ;;  %vm460_vm11 = vcmp.eq.s32.totalorder %v4301_v26, %v420_v7  ;;  %vm720_vm13 = vmand %vm687_vm1, %vm7890_vm4  ;;  %v3881_v11 = vld [vmem:[%s4049_s6 + $0xd8] sm:$0xff] }
 0x240   : > { %v1752_v13 = vpop.f32.mrf.mxu0  ;;  %vm492_vm14 = vmand %vm459_vm0, %vm7891_vm3  ;;  %vm7899_vm1 = vcmp.lt.s32.totalorder %v4291_v21, 16  ;;  %vm7902_vm4 = vcmp.ge.s32.totalorder %v4291_v21, 27 }
 0x241   : > { %v1753_v4 = vadd.f32 %v1752_v13, %v5927_v60  ;;  %3117 = vmatmul.mubr.msk.bf16.gmra.mxu0 %vm7888_vm5, %v6326_v40  ;;  %3133 = vmatmul.mubr.msk.bf16.gmra.mxu1 %vm7889_vm6, %v6326_v40  ;;  %vm7892_vm10 = vmmov %vm7891_vm3  ;;  %vm7896_vm5 = vcmp.ge.s32.totalorder %v4291_v21, 25 }
 0x242   : > { %v1941_v53 = vpop.f32.mrf.mxu1  ;;  %v1754_v28 = vpop.f32.mrf.mxu0  ;;  %1836 = vmatprep.mubr.bf16.mxu0 %v7496_v24  ;;  %2029 = vmatprep.mubr.bf16.mxu1 %v7496_v24  ;;  %vm493_vm9 = vmand %vm460_vm11, %vm7892_vm10 }
 0x243   : > { %v1942_v31 = vadd.f32 %v1941_v53, %v5929_v51  ;;  %v1755_v58 = vadd.f32 %v1754_v28, %v5942_v15  ;;  %v644_v57 = vpop.permute.xlu1 %643  ;;  %vm6354_vm7 = vmand %vm720_vm13, %vm7893_vm12 }
 0x244   : > { %v1943_v43 = vpop.f32.mrf.mxu1  ;;  %vm686_vm15 = vcmp.eq.s32.totalorder %v4392_v48, %v644_v57  ;;  %vm6362_vm6 = vmand %vm1140_vm2, %vm7896_vm5  ;;  %vm7910_vm5 = vcmp.ge.s32.totalorder %v4291_v21, 18 }
 0x245   : > { %3418 = vtanh.f32 %v1942_v31  ;;  %v1944_v55 = vadd.f32 %v1943_v43, %v5944_v42  ;;  %vm6369_vm0 = vmand %vm492_vm14, %vm7899_vm1  ;;  %vm7908_vm14 = vcmp.ge.s32.totalorder %v4291_v21, 16  ;;  %v3880_v31 = vld [vmem:[%s4049_s6 + $0xd0] sm:$0xff] }
 0x246   : > { %3420 = vtanh.f32 %v1751_v25  ;;  %v1945_v49 = vpop.f32.mrf.mxu1  ;;  %vm6376_vm13 = vmand %vm1368_vm8, %vm7902_vm4  ;;  %vm7909_vm8 = vcmp.lt.s32.totalorder %v4291_v21, 5 }
 0x247   : > { %3422 = vtanh.f32 %v1944_v55  ;;  %v1946_v59 = vadd.f32 %v1945_v49, %v5929_v51  ;;  %v871_v29 = vpop.permute.xlu1 %870  ;;  %vm7905_vm2 = vmmov %vm7899_vm1  ;;  %v266_v38 = vsel %vm7909_vm8, %v3880_v31, 0.0 }
 0x248   : > { %3424 = vtanh.f32 %v1753_v4  ;;  %v1947_v62 = vpop.f32.mrf.mxu1  ;;  %vm913_vm11 = vcmp.eq.s32.totalorder %v4495_v34, %v871_v29  ;;  %vm6383_vm3 = vmand %vm493_vm9, %vm7905_vm2  ;;  %v557_v22 = vsel %vm6369_vm0, 1.0, %v266_v38 }
 0x249   : > { %3426 = vtanh.f32 %v1946_v59  ;;  %v1948_v61 = vadd.f32 %v1947_v62, %v5944_v42  ;;  %vm719_vm10 = vmand %vm686_vm15, %vm7908_vm14  ;;  %vm7913_vm15 = vcmp.lt.s32.totalorder %v4291_v21, 18 }
 0x24a   : > { %3428 = vtanh.f32 %v1755_v58  ;;  %vm946_vm9 = vmand %vm913_vm11, %vm7910_vm5  ;;  %vm7916_vm11 = vcmp.lt.s32.totalorder %v4291_v21, 25 }
 0x24b   : > { %3430 = vtanh.f32 %v1948_v61  ;;  %v874_v37 = vpop.permute.xlu1 %873  ;;  %vm7911_vm1 = vmmov %vm7909_vm8 }
 0x24c   : > { %v3417_v45 = vpop.eup %3416  ;;  %vm914_vm12 = vcmp.eq.s32.totalorder %v4495_v34, %v874_v37  ;;  %v267_v39 = vsel %vm7911_vm1, %v3881_v11, 0.0  ;;  %vm7912_vm4 = vmmov %vm7910_vm5  ;;  %vm7922_vm5 = vcmp.ge.s32.totalorder %v4291_v21, 25 }
 0x24d   : > { %2766 = vst [vmem:[%s6014_s10 + $0x200] sm:$0xff] %v3417_v45  ;;  %vm947_vm2 = vmand %vm914_vm12, %vm7912_vm4  ;;  %v558_v35 = vsel %vm6383_vm3, 1.0, %v267_v39  ;;  %vm7923_vm3 = vcmp.lt.s32.totalorder %v4291_v21, 27 }
 0x24e   : > { %vm6405_vm14 = vmand %vm719_vm10, %vm7913_vm15 }
 0x24f   : > { %vm6415_vm8 = vmand %vm946_vm9, %vm7916_vm11  ;;  %v1101_v49 = vpop.permute.xlu1 %1100  ;;  %v784_v45 = vsel %vm6405_vm14, 1.0, %v557_v22  ;;  %vm7928_vm14 = vcmp.ge.s32.totalorder %v4291_v21, 27 }
 0x250   : > { %vm7919_vm10 = vmmov %vm7916_vm11  ;;  %vm1141_vm0 = vcmp.eq.s32.totalorder %v4528_v5, %v1101_v49 }
 0x251   : > { %vm6423_vm12 = vmand %vm947_vm2, %vm7919_vm10 }
 0x252   : > { %v3419_v17 = vpop.eup %3418  ;;  %vm1174_vm9 = vmand %vm1141_vm0, %vm7922_vm5  ;;  %vm688_vm0 = vcmp.eq.s32.totalorder %v4392_v48, %v5676_v16  ;;  %vm1369_vm5 = vcmp.eq.s32.totalorder %v4503_v33, %v6173_v14 }
 0x253   : > { %v3421_v12 = vpop.eup %3420  ;;  %2768 = vst [vmem:[%s6014_s10 + $0x210] sm:$0xff] %v3419_v17  ;;  %vm6434_vm1 = vmand %vm1174_vm9, %vm7923_vm3  ;;  %v785_v17 = vsel %vm6354_vm7, 1.0, %v558_v35  ;;  %vm7927_vm7 = vcmp.lt.s32.totalorder %v4291_v21, 29 }
 0x254   : > { %v3423_v9 = vpop.eup %3422  ;;  %2767 = vst [vmem:[%s6014_s10 + $0x208] sm:$0xff] %v3421_v12  ;;  %vm7926_vm4 = vmmov %vm7923_vm3  ;;  %v1325_v44 = vpop.permute.xlu1 %1324  ;;  %vm7932_vm3 = vcmp.ge.s32.totalorder %v4291_v21, 16 }
 0x255   : > { %v3425_v23 = vpop.eup %3424  ;;  %2769 = vst [vmem:[%s6014_s10 + $0x218] sm:$0xff] %v3423_v9  ;;  %vm1206_vm2 = vmand %vm6362_vm6, %vm7926_vm4  ;;  %v1011_v9 = vsel %vm6415_vm8, 1.0, %v784_v45  ;;  %vm1367_vm6 = vcmp.eq.s32.totalorder %v4503_v33, %v1325_v44 }
 0x256   : > { %v3427_v32 = vpop.eup %3426  ;;  %2774 = vst [vmem:[%s6014_s10 + $0x240] sm:$0xff] %v3425_v23  ;;  %v1012_v23 = vsel %vm6423_vm12, 1.0, %v785_v17  ;;  %vm1434_vm15 = vmand %vm6376_vm13, %vm7927_vm7  ;;  %v1238_v37 = vsel %vm1206_vm2, 1.0, %v1011_v9  ;;  %vm7930_vm13 = vcmask 261120  }
 0x257   : > { %v3429_v56 = vpop.eup %3428  ;;  %2776 = vst [vmem:[%s6014_s10 + $0x250] sm:$0xff] %v3427_v32  ;;  %v1758_v6 = vpop.f32.mrf.mxu0  ;;  %v1239_v52 = vsel %vm6434_vm1, 1.0, %v1012_v23  ;;  %vm1400_vm11 = vmand %vm1367_vm6, %vm7928_vm14  ;;  %vm7937_vm6 = vcmp.lt.s32.totalorder %v4291_v21, 18 }
 0x258   : > { %v3431_v3 = vpop.eup %3430  ;;  %2775 = vst [vmem:[%s6014_s10 + $0x248] sm:$0xff] %v3429_v56  ;;  %v1951_v25 = vpop.f32.mrf.mxu1  ;;  %v1759_v55 = vadd.f32 %v1758_v6, %v5927_v60  ;;  %vm7929_vm8 = vmmov %vm7927_vm7  ;;  %v1466_v47 = vsel %vm1434_vm15, 1.0, %v1239_v52  ;;  %vm7936_vm7 = vcmp.ge.s32.totalorder %v4291_v21, 5 }
 0x259   : > { %2777 = vst [vmem:[%s6014_s10 + $0x258] sm:$0xff] %v3431_v3  ;;  %v1952_v13 = vadd.f32 %v1951_v25, %v5929_v51  ;;  %v1760_v36 = vpop.f32.mrf.mxu0  ;;  %vm1433_vm10 = vmand %vm1400_vm11, %vm7929_vm8  ;;  %v423_v31 = vpop.permute.xlu1 %422  ;;  %vm7940_vm11 = vcmp.lt.s32.totalorder %v4291_v21, 5 }
 0x25a   : > { %3432 = vtanh.f32 %v1759_v55  ;;  %v1761_v28 = vadd.f32 %v1760_v36, %v5942_v15  ;;  %v1953_v7 = vpop.f32.mrf.mxu1  ;;  %v1465_v56 = vsel %vm1433_vm10, 1.0, %v1238_v37  ;;  %vm7931_vm12 = vmmov %vm7930_vm13  ;;  %v6474_v6 = vpop.permute.xlu0 %431  ;;  %vm461_vm9 = vcmp.eq.s32.totalorder %v4301_v26, %v423_v31 }
 0x25b   : > { %3434 = vtanh.f32 %v1952_v13  ;;  %v1954_v58 = vadd.f32 %v1953_v7, %v5944_v42  ;;  %v1762_v62 = vpop.f32.mrf.mxu0  ;;  %v6465_v3 = vpack.c.bf16 %v1466_v47, %v1465_v56  ;;  %vm721_vm1 = vmand %vm688_vm0, %vm7932_vm3  ;;  %vm7941_vm10 = vcmp.lt.s32.totalorder %v4291_v21, 29 }
 0x25c   : > { %3436 = vtanh.f32 %v1761_v28  ;;  %v1763_v19 = vadd.f32 %v1762_v62, %v5927_v60  ;;  %v1955_v57 = vpop.f32.mrf.mxu1  ;;  %vm7933_vm4 = vmmov %vm7928_vm14  ;;  %vm7947_vm3 = vcmp.ge.s32.totalorder %v4291_v21, 18 }
 0x25d   : > { %3438 = vtanh.f32 %v1954_v58  ;;  %v1956_v29 = vadd.f32 %v1955_v57, %v5929_v51  ;;  %v1764_v12 = vpop.f32.mrf.mxu0  ;;  %3118 = vmatmul.mubr.msk.bf16.gmra.mxu0 %vm7930_vm13, %v6465_v3  ;;  %3134 = vmatmul.mubr.msk.bf16.gmra.mxu1 %vm7931_vm12, %v6465_v3  ;;  %v426_v11 = vpop.permute.xlu1 %425  ;;  %vm6490_vm2 = vmand %vm1369_vm5, %vm7933_vm4  ;;  %v3882_v58 = vld [vmem:[%s4049_s6 + $0xe0] sm:$0xff]  ;;  %vm7944_vm12 = vcmp.lt.s32.totalorder %v4291_v21, 16 }
 0x25e   : > { %3440 = vtanh.f32 %v1763_v19  ;;  %v1765_v18 = vadd.f32 %v1764_v12, %v5942_v15  ;;  %v1957_v32 = vpop.f32.mrf.mxu1  ;;  %1846 = vmatprep.mubr.bf16.mxu0 %v7496_v24  ;;  %2039 = vmatprep.mubr.bf16.mxu1 %v7496_v24  ;;  %v880_v14 = vpop.permute.xlu0 %879  ;;  %vm494_vm15 = vmand %vm461_vm9, %vm7936_vm7  ;;  %v268_v62 = vsel %vm7940_vm11, %v3882_v58, 0.0  ;;  %vm462_vm5 = vcmp.eq.s32.totalorder %v4301_v26, %v426_v11 }
 0x25f   : > { %3442 = vtanh.f32 %v1956_v29  ;;  %v1958_v53 = vadd.f32 %v1957_v32, %v5944_v42  ;;  %vm6502_vm14 = vmand %vm721_vm1, %vm7937_vm6  ;;  %vm916_vm8 = vcmp.eq.s32.totalorder %v4495_v34, %v880_v14  ;;  %vm7954_vm11 = vcmp.lt.s32.totalorder %v4291_v21, 25 }
 0x260   : > { %3444 = vtanh.f32 %v1765_v18  ;;  %vm6514_vm13 = vmand %vm6490_vm2, %vm7941_vm10  ;;  %vm7957_vm10 = vcmp.ge.s32.totalorder %v4291_v21, 16 }
 0x261   : > { %3446 = vtanh.f32 %v1958_v53  ;;  %vm6520_vm0 = vmand %vm494_vm15, %vm7944_vm12  ;;  %vm7951_vm15 = vcmp.ge.s32.totalorder %v4291_v21, 5 }
 0x262   : > { %vm7948_vm2 = vmmov %vm7947_vm3  ;;  %v559_v32 = vsel %vm6520_vm0, 1.0, %v268_v62  ;;  %v883_v23 = vpop.permute.xlu0 %882 }
 0x263   : > { %vm6535_vm7 = vmand %vm916_vm8, %vm7948_vm2  ;;  %vm7963_vm2 = vcmp.lt.s32.totalorder %v4291_v21, 16 }
 0x264   : > { %v653_v22 = vpop.permute.xlu1 %652  ;;  %vm6546_vm6 = vmand %vm462_vm5, %vm7951_vm15  ;;  %vm7960_vm5 = vcmp.ge.s32.totalorder %v4291_v21, 25  ;;  %vm7964_vm15 = vcmp.lt.s32.totalorder %v4291_v21, 18 }
 0x265   : > { %vm689_vm4 = vcmp.eq.s32.totalorder %v4392_v48, %v653_v22 }
 0x266   : > { %vm6562_vm12 = vmand %vm689_vm4, %vm7957_vm10  ;;  %vm7962_vm4 = vcmp.lt.s32.totalorder %v4291_v21, 5 }
 0x267   : > { %v3433_v38 = vpop.eup %3432  ;;  %vm7965_vm10 = vmmov %vm7960_vm5 }
 0x268   : > { %v3435_v39 = vpop.eup %3434  ;;  %2782 = vst [vmem:[%s6014_s10 + $0x280] sm:$0xff] %v3433_v38 }
 0x269   : > { %v3437_v25 = vpop.eup %3436  ;;  %2784 = vst [vmem:[%s6014_s10 + $0x290] sm:$0xff] %v3435_v39  ;;  %v877_v61 = vpop.permute.xlu1 %876 }
 0x26a   : > { %v3439_v43 = vpop.eup %3438  ;;  %2783 = vst [vmem:[%s6014_s10 + $0x288] sm:$0xff] %v3437_v25  ;;  %vm915_vm9 = vcmp.eq.s32.totalorder %v4495_v34, %v877_v61  ;;  %v786_v25 = vsel %vm6502_vm14, 1.0, %v559_v32  ;;  %vm528_vm14 = vmand %vm6546_vm6, %vm7963_vm2  ;;  %vm7966_vm6 = vcmp.lt.s32.totalorder %v4291_v21, 25  ;;  %vm7970_vm2 = vcmask 261120  }
 0x26b   : > { %v3441_v55 = vpop.eup %3440  ;;  %2785 = vst [vmem:[%s6014_s10 + $0x298] sm:$0xff] %v3439_v43  ;;  %vm948_vm1 = vmand %vm915_vm9, %vm7947_vm3  ;;  %vm7961_vm3 = vcmp.lt.s32.totalorder %v4291_v21, 27 }
 0x26c   : > { %v3443_v13 = vpop.eup %3442  ;;  %2790 = vst [vmem:[%s6014_s10 + $0x2c0] sm:$0xff] %v3441_v55  ;;  %vm6553_vm8 = vmand %vm948_vm1, %vm7954_vm11  ;;  %v3883_v55 = vld [vmem:[%s4049_s6 + $0xe8] sm:$0xff] }
 0x26d   : > { %v3445_v4 = vpop.eup %3444  ;;  %2792 = vst [vmem:[%s6014_s10 + $0x2d0] sm:$0xff] %v3443_v13  ;;  %v1013_v43 = vsel %vm6553_vm8, 1.0, %v786_v25  ;;  %v269_v13 = vsel %vm7962_vm4, %v3883_v55, 0.0  ;;  %vm755_vm11 = vmand %vm6562_vm12, %vm7964_vm15  ;;  %vm464_vm15 = vcmp.eq.s32.totalorder %v4301_v26, %v6474_v6 }
 0x26e   : > { %v3447_v49 = vpop.eup %3446  ;;  %2791 = vst [vmem:[%s6014_s10 + $0x2c8] sm:$0xff] %v3445_v4  ;;  %v1104_v56 = vpop.permute.xlu1 %1103  ;;  %v560_v16 = vsel %vm528_vm14, 1.0, %v269_v13  ;;  %vm7967_vm12 = vmmov %vm7961_vm3 }
 0x26f   : > { %2793 = vst [vmem:[%s6014_s10 + $0x2d8] sm:$0xff] %v3447_v49  ;;  %vm1142_vm0 = vcmp.eq.s32.totalorder %v4528_v5, %v1104_v56  ;;  %v787_v14 = vsel %vm755_vm11, 1.0, %v560_v16  ;;  %vm7971_vm14 = vmmov %vm7970_vm2  ;;  %vm7972_vm11 = vcmp.ge.s32.totalorder %v4291_v21, 5 }
 0x270   : > { %vm1175_vm9 = vmand %vm1142_vm0, %vm7960_vm5 }
 0x271   : > { %vm1208_vm1 = vmand %vm1175_vm9, %vm7961_vm3  ;;  %vm7968_vm3 = vcmp.ge.s32.totalorder %v4291_v21, 27 }
 0x272   : > { %v1240_v22 = vsel %vm1208_vm1, 1.0, %v1013_v43  ;;  %v1107_v4 = vpop.permute.xlu1 %1106  ;;  %vm982_vm5 = vmand %vm6535_vm7, %vm7966_vm6  ;;  %vm7969_vm7 = vcmp.lt.s32.totalorder %v4291_v21, 29 }
 0x273   : > { %v1467_v49 = vsel %vm6514_vm13, 1.0, %v1240_v22  ;;  %vm1143_vm8 = vcmp.eq.s32.totalorder %v4528_v5, %v1107_v4  ;;  %v1014_v7 = vsel %vm982_vm5, 1.0, %v787_v14  ;;  %vm7973_vm5 = vcmp.lt.s32.totalorder %v4291_v21, 16 }
 0x274   : > { %vm1176_vm0 = vmand %vm1143_vm8, %vm7965_vm10 }
 0x275   : > { %v1768_v36 = vpop.f32.mrf.mxu0  ;;  %vm1209_vm9 = vmand %vm1176_vm0, %vm7967_vm12  ;;  %vm917_vm0 = vcmp.eq.s32.totalorder %v4495_v34, %v883_v23 }
 0x276   : > { %v1961_v35 = vpop.f32.mrf.mxu1  ;;  %v1769_v59 = vadd.f32 %v1768_v36, %v5927_v60  ;;  %v1241_v62 = vsel %vm1209_vm9, 1.0, %v1014_v7  ;;  %vm497_vm8 = vmand %vm464_vm15, %vm7972_vm11 }
 0x277   : > { %v1962_v28 = vadd.f32 %v1961_v35, %v5929_v51  ;;  %v1770_v19 = vpop.f32.mrf.mxu0  ;;  %v1334_v35 = vpop.permute.xlu1 %1333  ;;  %vm6634_vm12 = vmand %vm497_vm8, %vm7973_vm5 }
 0x278   : > { %3448 = vtanh.f32 %v1769_v59  ;;  %v1771_v17 = vadd.f32 %v1770_v19, %v5942_v15  ;;  %v1963_v29 = vpop.f32.mrf.mxu1  ;;  %vm1370_vm13 = vcmp.eq.s32.totalorder %v4503_v33, %v1334_v35  ;;  %vm7976_vm9 = vmmov %vm7972_vm11 }
 0x279   : > { %3450 = vtanh.f32 %v1962_v28  ;;  %v1964_v12 = vadd.f32 %v1963_v29, %v5944_v42  ;;  %v1772_v9 = vpop.f32.mrf.mxu0  ;;  %vm1403_vm1 = vmand %vm1370_vm13, %vm7968_vm3 }
 0x27a   : > { %3452 = vtanh.f32 %v1771_v17  ;;  %v1773_v44 = vadd.f32 %v1772_v9, %v5927_v60  ;;  %v1965_v18 = vpop.f32.mrf.mxu1  ;;  %vm1436_vm4 = vmand %vm1403_vm1, %vm7969_vm7  ;;  %vm7977_vm1 = vcmp.ge.s32.totalorder %v4291_v21, 18 }
 0x27b   : > { %3454 = vtanh.f32 %v1964_v12  ;;  %v1966_v53 = vadd.f32 %v1965_v18, %v5929_v51  ;;  %v1774_v37 = vpop.f32.mrf.mxu0  ;;  %v1468_v19 = vsel %vm1436_vm4, 1.0, %v1241_v62  ;;  %vm950_vm7 = vmand %vm917_vm0, %vm7977_vm1 }
 0x27c   : > { %3456 = vtanh.f32 %v1773_v44  ;;  %v1775_v31 = vadd.f32 %v1774_v37, %v5942_v15  ;;  %v1967_v38 = vpop.f32.mrf.mxu1  ;;  %v6608_v45 = vpack.c.bf16 %v1468_v19, %v1467_v49  ;;  %v7979_v49 = vmov 0  ;;  %vm7981_vm15 = vmmov %vm7973_vm5 }
 0x27d   : > { %3458 = vtanh.f32 %v1966_v53  ;;  %v1968_v39 = vadd.f32 %v1967_v38, %v5944_v42  ;;  %v429_v17 = vpop.permute.xlu1 %428  ;;  %v1113_v38 = vpop.permute.xlu0 %1112  ;;  %vm7985_vm5 = vcmp.lt.s32.totalorder %v4291_v21, 25 }
 0x27e   : > { %3460 = vtanh.f32 %v1775_v31  ;;  %3119 = vmatmul.mubr.msk.bf16.gmra.mxu0 %vm7970_vm2, %v6608_v45  ;;  %3135 = vmatmul.mubr.msk.bf16.gmra.mxu1 %vm7971_vm14, %v6608_v45  ;;  %vm463_vm10 = vcmp.eq.s32.totalorder %v4301_v26, %v429_v17  ;;  %vm1145_vm6 = vcmp.eq.s32.totalorder %v4528_v5, %v1113_v38  ;;  %vm7978_vm2 = vcmp.ge.s32.totalorder %v4291_v21, 25 }
 0x27f   : > { %3462 = vtanh.f32 %v1968_v39  ;;  %1856 = vmatprep.mubr.bf16.mxu0 %v7496_v24  ;;  %2049 = vmatprep.mubr.bf16.mxu1 %v7496_v24  ;;  %vm496_vm13 = vmand %vm463_vm10, %vm7976_vm9  ;;  %vm7984_vm10 = vcmp.ge.s32.totalorder %v4291_v21, 16 }
 0x280   : > { %vm6648_vm14 = vmand %vm1145_vm6, %vm7978_vm2 }
 0x281   : > { %v7980_v49 = vsel %vm6648_vm14, 4294967295, %v7979_v49  ;;  %vm6654_vm11 = vmand %vm496_vm13, %vm7981_vm15  ;;  %vm7989_vm15 = vcmp.lt.s32.totalorder %v4291_v21, 18 }
 0x282   : > { %v656_v9 = vpop.permute.xlu1 %655  ;;  %vm6663_vm9 = vmand %vm950_vm7, %vm7985_vm5  ;;  %vm7992_vm7 = vcmp.lt.s32.totalorder %v4291_v21, 5 }
 0x283   : > { %vm690_vm3 = vcmp.eq.s32.totalorder %v4392_v48, %v656_v9  ;;  %vm7988_vm6 = vmmov %vm7984_vm10 }
 0x284   : > { %vm723_vm0 = vmand %vm690_vm3, %vm7984_vm10 }
 0x285   : > { %v3449_v36 = vpop.eup %3448  ;;  %vm6673_vm14 = vmand %vm723_vm0, %vm7989_vm15 }
 0x286   : > { %v3451_v59 = vpop.eup %3450  ;;  %2798 = vst [vmem:[%s6014_s10 + $0x300] sm:$0xff] %v3449_v36  ;;  %v659_v53 = vpop.permute.xlu1 %658  ;;  %v3884_v36 = vld [vmem:[%s4049_s6 + $0xf8] sm:$0xff]  ;;  %vm7993_vm10 = vmmov %vm7992_vm7 }
 0x287   : > { %v3453_v28 = vpop.eup %3452  ;;  %2800 = vst [vmem:[%s6014_s10 + $0x310] sm:$0xff] %v3451_v59  ;;  %vm691_vm4 = vcmp.eq.s32.totalorder %v4392_v48, %v659_v53  ;;  %v271_v35 = vsel %vm7992_vm7, %v3884_v36, 0.0  ;;  %v3885_v59 = vld [vmem:[%s4049_s6 + $0xf0] sm:$0xff]  ;;  %vm7995_vm0 = vmmov %vm7985_vm5  ;;  %vm8003_vm7 = vnez %v7980_v49 }
 0x288   : > { %v3455_v58 = vpop.eup %3454  ;;  %2799 = vst [vmem:[%s6014_s10 + $0x308] sm:$0xff] %v3453_v28  ;;  %vm724_vm13 = vmand %vm691_vm4, %vm7988_vm6  ;;  %v270_v28 = vsel %vm7993_vm10, %v3885_v59, 0.0  ;;  %vm7998_vm6 = vcmp.ge.s32.totalorder %v4291_v21, 25  ;;  %vm8007_vm10 = vcmp.lt.s32.totalorder %v4291_v21, 29 }
 0x289   : > { %v3457_v61 = vpop.eup %3456  ;;  %2801 = vst [vmem:[%s6014_s10 + $0x318] sm:$0xff] %v3455_v58  ;;  %vm7994_vm4 = vmmov %vm7989_vm15  ;;  %v561_v17 = vsel %vm6654_vm11, 1.0, %v270_v28 }
 0x28a   : > { %v3459_v57 = vpop.eup %3458  ;;  %2806 = vst [vmem:[%s6014_s10 + $0x340] sm:$0xff] %v3457_v61 }
 0x28b   : > { %v3461_v29 = vpop.eup %3460  ;;  %2808 = vst [vmem:[%s6014_s10 + $0x350] sm:$0xff] %v3459_v57  ;;  %v886_v43 = vpop.permute.xlu1 %885  ;;  %v562_v57 = vsel %vm6634_vm12, 1.0, %v271_v35 }
 0x28c   : > { %v3463_v12 = vpop.eup %3462  ;;  %2807 = vst [vmem:[%s6014_s10 + $0x348] sm:$0xff] %v3461_v29  ;;  %vm918_vm8 = vcmp.eq.s32.totalorder %v4495_v34, %v886_v43 }
 0x28d   : > { %2809 = vst [vmem:[%s6014_s10 + $0x358] sm:$0xff] %v3463_v12  ;;  %vm951_vm2 = vmand %vm918_vm8, %vm7977_vm1  ;;  %v788_v12 = vsel %vm6673_vm14, 1.0, %v561_v17 }
 0x28e   : > { %vm757_vm8 = vmand %vm724_vm13, %vm7994_vm4 }
 0x28f   : > { %v1778_v44 = vpop.f32.mrf.mxu0  ;;  %vm6688_vm5 = vmand %vm951_vm2, %vm7995_vm0  ;;  %vm8001_vm2 = vcmp.ge.s32.totalorder %v4291_v21, 27  ;;  %v789_v9 = vsel %vm757_vm8, 1.0, %v562_v57 }
 0x290   : > { %v1971_v18 = vpop.f32.mrf.mxu1  ;;  %v1779_v32 = vadd.f32 %v1778_v44, %v5927_v60  ;;  %v1110_v14 = vpop.permute.xlu1 %1109  ;;  %vm8010_vm0 = vmmov %vm8001_vm2 }
 0x291   : > { %v1972_v52 = vadd.f32 %v1971_v18, %v5929_v51  ;;  %v1780_v37 = vpop.f32.mrf.mxu0  ;;  %vm1144_vm3 = vcmp.eq.s32.totalorder %v4528_v5, %v1110_v14  ;;  %v1016_v18 = vsel %vm6688_vm5, 1.0, %v789_v9 }
 0x292   : > { %v1973_v47 = vpop.f32.mrf.mxu1  ;;  %3464 = vtanh.f32 %v1779_v32  ;;  %v1781_v56 = vadd.f32 %v1780_v37, %v5942_v15  ;;  %vm6695_vm1 = vmand %vm1144_vm3, %vm7998_vm6  ;;  %vm8002_vm3 = vcmp.lt.s32.totalorder %v4291_v21, 27 }
 0x293   : > { %v1974_v31 = vadd.f32 %v1973_v47, %v5944_v42  ;;  %3466 = vtanh.f32 %v1972_v52  ;;  %v1782_v6 = vpop.f32.mrf.mxu0  ;;  %vm6714_vm12 = vmand %vm8003_vm7, %vm8002_vm3  ;;  %v1015_v47 = vsel %vm6663_vm9, 1.0, %v788_v12  ;;  %vm8012_vm9 = vcmask 261120  }
 0x294   : > { %v1975_v11 = vpop.f32.mrf.mxu1  ;;  %3468 = vtanh.f32 %v1781_v56  ;;  %v1783_v39 = vadd.f32 %v1782_v6, %v5927_v60  ;;  %vm8006_vm11 = vmmov %vm8002_vm3 }
 0x295   : > { %v1976_v25 = vadd.f32 %v1975_v11, %v5929_v51  ;;  %3470 = vtanh.f32 %v1974_v31  ;;  %v1784_v55 = vpop.f32.mrf.mxu0  ;;  %v1337_v5 = vpop.permute.xlu1 %1336  ;;  %vm1210_vm14 = vmand %vm6695_vm1, %vm8006_vm11  ;;  %v1243_v31 = vsel %vm6714_vm12, 1.0, %v1016_v18 }
 0x296   : > { %3472 = vtanh.f32 %v1783_v39  ;;  %v1785_v26 = vadd.f32 %v1784_v55, %v5942_v15  ;;  %v1977_v22 = vpop.f32.mrf.mxu1  ;;  %vm1371_vm13 = vcmp.eq.s32.totalorder %v4503_v33, %v1337_v5  ;;  %v1242_v38 = vsel %vm1210_vm14, 1.0, %v1015_v47  ;;  %vm8011_vm6 = vmmov %vm8007_vm10 }
 0x297   : > { %3474 = vtanh.f32 %v1976_v25  ;;  %v1978_v4 = vadd.f32 %v1977_v22, %v5944_v42  ;;  %vm1404_vm15 = vmand %vm1371_vm13, %vm8001_vm2 }
 0x298   : > { %3476 = vtanh.f32 %v1785_v26  ;;  %vm6728_vm4 = vmand %vm1404_vm15, %vm8007_vm10 }
 0x299   : > { %3478 = vtanh.f32 %v1978_v4  ;;  %v1340_v32 = vpop.permute.xlu1 %1339  ;;  %vm8013_vm13 = vmmov %vm8012_vm9 }
 0x29a   : > { %vm1372_vm8 = vcmp.eq.s32.totalorder %v4503_v33, %v1340_v32  ;;  %v1469_v33 = vsel %vm6728_vm4, 1.0, %v1242_v38  ;;  %vm8014_vm2 = vmmov %vm8012_vm9 }
 0x29b   : > { %vm1405_vm5 = vmand %vm1372_vm8, %vm8010_vm0 }
 0x29c   : > { %vm1438_vm1 = vmand %vm1405_vm5, %vm8011_vm6 }
 0x29d   : > { %v1470_v6 = vsel %vm1438_vm1, 1.0, %v1243_v31  ;;  %vm8015_vm15 = vmmov %vm8014_vm2 }
 0x29e   : > { %v6746_v25 = vpack.c.bf16 %v1470_v6, %v1469_v33  ;;  %vm8016_vm3 = vmmov %vm8014_vm2 }
 0x29f   : > { %v3465_v7 = vpop.eup %3464  ;;  %vm8017_vm7 = vmmov %vm8014_vm2 }
 0x2a0   : > { %v3467_v62 = vpop.eup %3466  ;;  %2814 = vst [vmem:[%s6014_s10 + $0x380] sm:$0xff] %v3465_v7  ;;  %3120 = vmatmul.mubr.msk.bf16.gmra.mxu0 %vm8012_vm9, %v6746_v25  ;;  %3136 = vmatmul.mubr.msk.bf16.gmra.mxu1 %vm8013_vm13, %v6746_v25  ;;  %vm8018_vm12 = vmmov %vm8014_vm2 }
 0x2a1   : > { %v3469_v19 = vpop.eup %3468  ;;  %2816 = vst [vmem:[%s6014_s10 + $0x390] sm:$0xff] %v3467_v62  ;;  %2092 = vmatprep.mubr.bf16.mxu0 %v7496_v24  ;;  %2285 = vmatprep.mubr.bf16.mxu1 %v7496_v24  ;;  %vm8019_vm11 = vmmov %vm8014_vm2 }
 0x2a2   : > { %v3471_v29 = vpop.eup %3470  ;;  %2815 = vst [vmem:[%s6014_s10 + $0x388] sm:$0xff] %v3469_v19  ;;  %vm8020_vm14 = vmmov %vm8014_vm2 }
 0x2a3   : > { %v3473_v44 = vpop.eup %3472  ;;  %2817 = vst [vmem:[%s6014_s10 + $0x398] sm:$0xff] %v3471_v29  ;;  %vm8021_vm10 = vmmov %vm8014_vm2 }
 0x2a4   : > { %v3475_v52 = vpop.eup %3474  ;;  %2822 = vst [vmem:[%s6014_s10 + $0x3c0] sm:$0xff] %v3473_v44  ;;  %vm8022_vm4 = vmmov %vm8014_vm2 }
 0x2a5   : > { %v3477_v37 = vpop.eup %3476  ;;  %2824 = vst [vmem:[%s6014_s10 + $0x3d0] sm:$0xff] %v3475_v52  ;;  %vm8023_vm8 = vmmov %vm8014_vm2 }
 0x2a6   : > { %v3479_v56 = vpop.eup %3478  ;;  %2823 = vst [vmem:[%s6014_s10 + $0x3c8] sm:$0xff] %v3477_v37  ;;  %vm8024_vm0 = vmmov %vm8014_vm2 }
 0x2a7   : > { %2825 = vst [vmem:[%s6014_s10 + $0x3d8] sm:$0xff] %v3479_v56  ;;  %v1788_v11 = vpop.f32.mrf.mxu0  ;;  %v1981_v39 = vpop.f32.mrf.mxu1  ;;  %vm8025_vm5 = vmmov %vm8024_vm0 }
 0x2a8   : > { %v1789_v43 = vadd.f32 %v1788_v11, %v5927_v60  ;;  %v1982_v55 = vadd.f32 %v1981_v39, %v5929_v51  ;;  %3137 = vmatmul.mubr.msk.bf16.vlgmr.msra.gmra.mxu0 %vm8014_vm2, %v4958_v30  ;;  %3153 = vmatmul.mubr.msk.bf16.vlgmr.msra.gmra.mxu1 %vm8015_vm15, %v4958_v30  ;;  %vm8026_vm6 = vmmov %vm8024_vm0 }
 0x2a9   : > { %v1790_v13 = vpop.f32.mrf.mxu0  ;;  %v1983_v26 = vpop.f32.mrf.mxu1  ;;  %2102 = vmatprep.mubr.bf16.mxu0 %v7496_v24  ;;  %2295 = vmatprep.mubr.bf16.mxu1 %v7496_v24  ;;  %vm8027_vm1 = vmmov %vm8024_vm0 }
 0x2aa   : > { %3480 = vtanh.f32 %v1789_v43  ;;  %v1791_v22 = vadd.f32 %v1790_v13, %v5942_v15  ;;  %v1984_v21 = vadd.f32 %v1983_v26, %v5944_v42  ;;  %vm8028_vm9 = vmmov %vm8024_vm0 }
 0x2ab   : > { %3482 = vtanh.f32 %v1982_v55  ;;  %v1792_v4 = vpop.f32.mrf.mxu0  ;;  %v1985_v49 = vpop.f32.mrf.mxu1  ;;  %vm8029_vm13 = vmmov %vm8024_vm0 }
 0x2ac   : > { %3484 = vtanh.f32 %v1791_v22  ;;  %v1793_v16 = vadd.f32 %v1792_v4, %v5927_v60  ;;  %v1986_v48 = vadd.f32 %v1985_v49, %v5929_v51  ;;  %vm8030_vm2 = vmmov %vm8024_vm0 }
 0x2ad   : > { %3486 = vtanh.f32 %v1984_v21  ;;  %v1794_v14 = vpop.f32.mrf.mxu0  ;;  %v1987_v34 = vpop.f32.mrf.mxu1  ;;  %vm8031_vm15 = vmmov %vm8024_vm0 }
 0x2ae   : > { %3488 = vtanh.f32 %v1793_v16  ;;  %v1795_v36 = vadd.f32 %v1794_v14, %v5942_v15  ;;  %v1988_v35 = vadd.f32 %v1987_v34, %v5944_v42 }
 0x2af   : > { %3490 = vtanh.f32 %v1986_v48 }
 0x2b0   : > { %3492 = vtanh.f32 %v1795_v36  ;;  %3138 = vmatmul.mubr.msk.bf16.gmra.mxu0 %vm8016_vm3, %v4990_v63  ;;  %3154 = vmatmul.mubr.msk.bf16.gmra.mxu1 %vm8017_vm7, %v4990_v63  ;;  %vm8032_vm3 = vmmov %vm8024_vm0 }
 0x2b1   : > { %3494 = vtanh.f32 %v1988_v35  ;;  %2112 = vmatprep.mubr.bf16.mxu0 %v7496_v24  ;;  %2305 = vmatprep.mubr.bf16.mxu1 %v7496_v24  ;;  %vm8033_vm7 = vmmov %vm8024_vm0 }
 0x2b7   : > { %v3481_v59 = vpop.eup %3480 }
 0x2b8   : > { %v3483_v28 = vpop.eup %3482  ;;  %2830 = vst [vmem:[%s6014_s10 + $0x400] sm:$0xff] %v3481_v59  ;;  %3139 = vmatmul.mubr.msk.bf16.gmra.mxu0 %vm8018_vm12, %v4999_v0  ;;  %3155 = vmatmul.mubr.msk.bf16.gmra.mxu1 %vm8019_vm11, %v4999_v0  ;;  %vm8034_vm12 = vmmov %vm8024_vm0 }
 0x2b9   : > { %v3485_v7 = vpop.eup %3484  ;;  %2832 = vst [vmem:[%s6014_s10 + $0x410] sm:$0xff] %v3483_v28  ;;  %2122 = vmatprep.mubr.bf16.mxu0 %v7496_v24  ;;  %2315 = vmatprep.mubr.bf16.mxu1 %v7496_v24  ;;  %vm8035_vm11 = vmmov %vm8024_vm0 }
 0x2ba   : > { %v3487_v58 = vpop.eup %3486  ;;  %2831 = vst [vmem:[%s6014_s10 + $0x408] sm:$0xff] %v3485_v7 }
 0x2bb   : > { %v3489_v30 = vpop.eup %3488  ;;  %2833 = vst [vmem:[%s6014_s10 + $0x418] sm:$0xff] %v3487_v58 }
 0x2bc   : > { %v3491_v5 = vpop.eup %3490  ;;  %2838 = vst [vmem:[%s6014_s10 + $0x440] sm:$0xff] %v3489_v30 }
 0x2bd   : > { %v3493_v62 = vpop.eup %3492  ;;  %2840 = vst [vmem:[%s6014_s10 + $0x450] sm:$0xff] %v3491_v5 }
 0x2be   : > { %v3495_v61 = vpop.eup %3494  ;;  %2839 = vst [vmem:[%s6014_s10 + $0x448] sm:$0xff] %v3493_v62 }
 0x2bf   : > { %2841 = vst [vmem:[%s6014_s10 + $0x458] sm:$0xff] %v3495_v61  ;;  %v1798_v19 = vpop.f32.mrf.mxu0  ;;  %v1991_v57 = vpop.f32.mrf.mxu1 }
 0x2c0   : > { %v1799_v17 = vadd.f32 %v1798_v19, %v5927_v60  ;;  %v1992_v29 = vadd.f32 %v1991_v57, %v5929_v51  ;;  %3140 = vmatmul.mubr.msk.bf16.gmra.mxu0 %vm8020_vm14, %v5130_v2  ;;  %3156 = vmatmul.mubr.msk.bf16.gmra.mxu1 %vm8021_vm10, %v5130_v2  ;;  %vm8036_vm14 = vmmov %vm8024_vm0 }
 0x2c1   : > { %v1800_v63 = vpop.f32.mrf.mxu0  ;;  %v1993_v12 = vpop.f32.mrf.mxu1  ;;  %2132 = vmatprep.mubr.bf16.mxu0 %v7496_v24  ;;  %2325 = vmatprep.mubr.bf16.mxu1 %v7496_v24  ;;  %vm8037_vm10 = vmmov %vm8024_vm0 }
 0x2c2   : > { %3496 = vtanh.f32 %v1799_v17  ;;  %v1801_v9 = vadd.f32 %v1800_v63, %v5942_v15  ;;  %v1994_v23 = vadd.f32 %v1993_v12, %v5944_v42 }
 0x2c3   : > { %3498 = vtanh.f32 %v1992_v29  ;;  %v1802_v44 = vpop.f32.mrf.mxu0  ;;  %v1995_v18 = vpop.f32.mrf.mxu1 }
 0x2c4   : > { %3500 = vtanh.f32 %v1801_v9  ;;  %v1803_v32 = vadd.f32 %v1802_v44, %v5927_v60  ;;  %v1996_v52 = vadd.f32 %v1995_v18, %v5929_v51 }
 0x2c5   : > { %3502 = vtanh.f32 %v1994_v23  ;;  %v1804_v53 = vpop.f32.mrf.mxu0  ;;  %v1997_v37 = vpop.f32.mrf.mxu1 }
 0x2c6   : > { %3504 = vtanh.f32 %v1803_v32  ;;  %v1805_v0 = vadd.f32 %v1804_v53, %v5942_v15  ;;  %v1998_v47 = vadd.f32 %v1997_v37, %v5944_v42 }
 0x2c7   : > { %3506 = vtanh.f32 %v1996_v52 }
 0x2c8   : > { %3508 = vtanh.f32 %v1805_v0  ;;  %3141 = vmatmul.mubr.msk.bf16.gmra.mxu0 %vm8022_vm4, %v5312_v54  ;;  %3157 = vmatmul.mubr.msk.bf16.gmra.mxu1 %vm8023_vm8, %v5312_v54  ;;  %vm8038_vm4 = vmmov %vm8024_vm0 }
 0x2c9   : > { %3510 = vtanh.f32 %v1998_v47  ;;  %2142 = vmatprep.mubr.bf16.mxu0 %v7496_v24  ;;  %2335 = vmatprep.mubr.bf16.mxu1 %v7496_v24  ;;  %vm8039_vm8 = vmmov %vm8024_vm0 }
 0x2cf   : > { %v3497_v56 = vpop.eup %3496 }
 0x2d0   : > { %v3499_v31 = vpop.eup %3498  ;;  %2846 = vst [vmem:[%s6014_s10 + $0x480] sm:$0xff] %v3497_v56  ;;  %3142 = vmatmul.mubr.msk.bf16.gmra.mxu0 %vm8024_vm0, %v5414_v41  ;;  %3158 = vmatmul.mubr.msk.bf16.gmra.mxu1 %vm8025_vm5, %v5414_v41  ;;  %vm8040_vm5 = vmmov %vm8024_vm0 }
 0x2d1   : > { %v3501_v38 = vpop.eup %3500  ;;  %2848 = vst [vmem:[%s6014_s10 + $0x490] sm:$0xff] %v3499_v31  ;;  %2152 = vmatprep.mubr.bf16.mxu0 %v7496_v24  ;;  %2345 = vmatprep.mubr.bf16.mxu1 %v7496_v24 }
 0x2d2   : > { %v3503_v33 = vpop.eup %3502  ;;  %2847 = vst [vmem:[%s6014_s10 + $0x488] sm:$0xff] %v3501_v38 }
 0x2d3   : > { %v3505_v2 = vpop.eup %3504  ;;  %2849 = vst [vmem:[%s6014_s10 + $0x498] sm:$0xff] %v3503_v33 }
 0x2d4   : > { %v3507_v6 = vpop.eup %3506  ;;  %2854 = vst [vmem:[%s6014_s10 + $0x4c0] sm:$0xff] %v3505_v2 }
 0x2d5   : > { %v3509_v11 = vpop.eup %3508  ;;  %2856 = vst [vmem:[%s6014_s10 + $0x4d0] sm:$0xff] %v3507_v6 }
 0x2d6   : > { %v3511_v39 = vpop.eup %3510  ;;  %2855 = vst [vmem:[%s6014_s10 + $0x4c8] sm:$0xff] %v3509_v11  ;;  %v1808_v54 = vpop.f32.mrf.mxu0 }
 0x2d7   : > { %2857 = vst [vmem:[%s6014_s10 + $0x4d8] sm:$0xff] %v3511_v39  ;;  %v2001_v43 = vpop.f32.mrf.mxu1  ;;  %v1809_v55 = vadd.f32 %v1808_v54, %v5927_v60 }
 0x2d8   : > { %v2002_v13 = vadd.f32 %v2001_v43, %v5929_v51  ;;  %v1810_v26 = vpop.f32.mrf.mxu0  ;;  %3143 = vmatmul.mubr.msk.bf16.gmra.mxu0 %vm8026_vm6, %v5560_v46  ;;  %3159 = vmatmul.mubr.msk.bf16.gmra.mxu1 %vm8027_vm1, %v5560_v46  ;;  %vm8041_vm6 = vmmov %vm8024_vm0 }
 0x2d9   : > { %v2003_v22 = vpop.f32.mrf.mxu1  ;;  %3512 = vtanh.f32 %v1809_v55  ;;  %v1811_v21 = vadd.f32 %v1810_v26, %v5942_v15  ;;  %2162 = vmatprep.mubr.bf16.mxu0 %v7496_v24  ;;  %2355 = vmatprep.mubr.bf16.mxu1 %v7496_v24  ;;  %vm8042_vm1 = vmmov %vm8024_vm0 }
 0x2da   : > { %v2004_v4 = vadd.f32 %v2003_v22, %v5944_v42  ;;  %3514 = vtanh.f32 %v2002_v13  ;;  %v1812_v49 = vpop.f32.mrf.mxu0 }
 0x2db   : > { %v2005_v41 = vpop.f32.mrf.mxu1  ;;  %3516 = vtanh.f32 %v1811_v21  ;;  %v1813_v16 = vadd.f32 %v1812_v49, %v5927_v60 }
 0x2dc   : > { %v2006_v48 = vadd.f32 %v2005_v41, %v5929_v51  ;;  %3518 = vtanh.f32 %v2004_v4  ;;  %v1814_v14 = vpop.f32.mrf.mxu0 }
 0x2dd   : > { %v2007_v34 = vpop.f32.mrf.mxu1  ;;  %3520 = vtanh.f32 %v1813_v16  ;;  %v1815_v36 = vadd.f32 %v1814_v14, %v5942_v15 }
 0x2de   : > { %v2008_v35 = vadd.f32 %v2007_v34, %v5944_v42  ;;  %3522 = vtanh.f32 %v2006_v48 }
 0x2df   : > { %3524 = vtanh.f32 %v1815_v36 }
 0x2e0   : > { %3526 = vtanh.f32 %v2008_v35  ;;  %3144 = vmatmul.mubr.msk.bf16.gmra.mxu0 %vm8028_vm9, %v5660_v10  ;;  %3160 = vmatmul.mubr.msk.bf16.gmra.mxu1 %vm8029_vm13, %v5660_v10  ;;  %vm8043_vm9 = vmmov %vm8024_vm0 }
 0x2e1   : > { %2172 = vmatprep.mubr.bf16.mxu0 %v7496_v24  ;;  %2365 = vmatprep.mubr.bf16.mxu1 %v7496_v24  ;;  %vm8044_vm13 = vmmov %vm8024_vm0 }
 0x2e6   : > { %v3513_v59 = vpop.eup %3512 }
 0x2e7   : > { %v3515_v46 = vpop.eup %3514  ;;  %2862 = vst [vmem:[%s6014_s10 + $0x500] sm:$0xff] %v3513_v59 }
 0x2e8   : > { %v3517_v28 = vpop.eup %3516  ;;  %2864 = vst [vmem:[%s6014_s10 + $0x510] sm:$0xff] %v3515_v46  ;;  %3145 = vmatmul.mubr.msk.bf16.gmra.mxu0 %vm8030_vm2, %v5759_v27  ;;  %3161 = vmatmul.mubr.msk.bf16.gmra.mxu1 %vm8031_vm15, %v5759_v27 }
 0x2e9   : > { %v3519_v7 = vpop.eup %3518  ;;  %2863 = vst [vmem:[%s6014_s10 + $0x508] sm:$0xff] %v3517_v28  ;;  %2182 = vmatprep.mubr.bf16.mxu0 %v7496_v24  ;;  %2375 = vmatprep.mubr.bf16.mxu1 %v7496_v24 }
 0x2ea   : > { %v3521_v58 = vpop.eup %3520  ;;  %2865 = vst [vmem:[%s6014_s10 + $0x518] sm:$0xff] %v3519_v7 }
 0x2eb   : > { %v3523_v30 = vpop.eup %3522  ;;  %2870 = vst [vmem:[%s6014_s10 + $0x540] sm:$0xff] %v3521_v58 }
 0x2ec   : > { %v3525_v5 = vpop.eup %3524  ;;  %2872 = vst [vmem:[%s6014_s10 + $0x550] sm:$0xff] %v3523_v30 }
 0x2ed   : > { %v3527_v10 = vpop.eup %3526  ;;  %2871 = vst [vmem:[%s6014_s10 + $0x548] sm:$0xff] %v3525_v5  ;;  %v1818_v62 = vpop.f32.mrf.mxu0 }
 0x2ee   : > { %2873 = vst [vmem:[%s6014_s10 + $0x558] sm:$0xff] %v3527_v10  ;;  %v2011_v61 = vpop.f32.mrf.mxu1  ;;  %v1819_v19 = vadd.f32 %v1818_v62, %v5927_v60 }
 0x2ef   : > { %v2012_v57 = vadd.f32 %v2011_v61, %v5929_v51  ;;  %v1820_v17 = vpop.f32.mrf.mxu0 }
 0x2f0   : > { %v2013_v29 = vpop.f32.mrf.mxu1  ;;  %3528 = vtanh.f32 %v1819_v19  ;;  %v1821_v63 = vadd.f32 %v1820_v17, %v5942_v15  ;;  %3146 = vmatmul.mubr.msk.bf16.gmra.mxu0 %vm8032_vm3, %v5867_v1  ;;  %3162 = vmatmul.mubr.msk.bf16.gmra.mxu1 %vm8033_vm7, %v5867_v1 }
 0x2f1   : > { %v2014_v12 = vadd.f32 %v2013_v29, %v5944_v42  ;;  %3530 = vtanh.f32 %v2012_v57  ;;  %v1822_v27 = vpop.f32.mrf.mxu0  ;;  %2192 = vmatprep.mubr.bf16.mxu0 %v7496_v24  ;;  %2385 = vmatprep.mubr.bf16.mxu1 %v7496_v24 }
 0x2f2   : > { %v2015_v9 = vpop.f32.mrf.mxu1  ;;  %3532 = vtanh.f32 %v1821_v63  ;;  %v1823_v23 = vadd.f32 %v1822_v27, %v5927_v60 }
 0x2f3   : > { %v2016_v44 = vadd.f32 %v2015_v9, %v5929_v51  ;;  %3534 = vtanh.f32 %v2014_v12  ;;  %v1824_v18 = vpop.f32.mrf.mxu0 }
 0x2f4   : > { %v2017_v32 = vpop.f32.mrf.mxu1  ;;  %3536 = vtanh.f32 %v1823_v23  ;;  %v1825_v52 = vadd.f32 %v1824_v18, %v5942_v15 }
 0x2f5   : > { %v2018_v53 = vadd.f32 %v2017_v32, %v5944_v42  ;;  %3538 = vtanh.f32 %v2016_v44 }
 0x2f6   : > { %3540 = vtanh.f32 %v1825_v52 }
 0x2f7   : > { %3542 = vtanh.f32 %v2018_v53 }
 0x2f8   : > { %3147 = vmatmul.mubr.msk.bf16.gmra.mxu0 %vm8034_vm12, %v6045_v20  ;;  %3163 = vmatmul.mubr.msk.bf16.gmra.mxu1 %vm8035_vm11, %v6045_v20 }
 0x2f9   : > { %2202 = vmatprep.mubr.bf16.mxu0 %v7496_v24  ;;  %2395 = vmatprep.mubr.bf16.mxu1 %v7496_v24 }
 0x2fd   : > { %v3529_v37 = vpop.eup %3528 }
 0x2fe   : > { %v3531_v1 = vpop.eup %3530  ;;  %2878 = vst [vmem:[%s6014_s10 + $0x580] sm:$0xff] %v3529_v37 }
 0x2ff   : > { %v3533_v0 = vpop.eup %3532  ;;  %2880 = vst [vmem:[%s6014_s10 + $0x590] sm:$0xff] %v3531_v1 }
 0x300   : > { %v3535_v47 = vpop.eup %3534  ;;  %2879 = vst [vmem:[%s6014_s10 + $0x588] sm:$0xff] %v3533_v0  ;;  %3148 = vmatmul.mubr.msk.bf16.gmra.mxu0 %vm8036_vm14, %v6216_v8  ;;  %3164 = vmatmul.mubr.msk.bf16.gmra.mxu1 %vm8037_vm10, %v6216_v8 }
 0x301   : > { %v3537_v56 = vpop.eup %3536  ;;  %2881 = vst [vmem:[%s6014_s10 + $0x598] sm:$0xff] %v3535_v47  ;;  %v1828_v33 = vpop.f32.mrf.mxu0  ;;  %2212 = vmatprep.mubr.bf16.mxu0 %v7496_v24  ;;  %2405 = vmatprep.mubr.bf16.mxu1 %v7496_v24 }
 0x302   : > { %v3539_v31 = vpop.eup %3538  ;;  %2886 = vst [vmem:[%s6014_s10 + $0x5c0] sm:$0xff] %v3537_v56  ;;  %v2021_v2 = vpop.f32.mrf.mxu1  ;;  %v1829_v6 = vadd.f32 %v1828_v33, %v5927_v60 }
 0x303   : > { %v3541_v38 = vpop.eup %3540  ;;  %2888 = vst [vmem:[%s6014_s10 + $0x5d0] sm:$0xff] %v3539_v31  ;;  %v2022_v11 = vadd.f32 %v2021_v2, %v5929_v51  ;;  %v1830_v39 = vpop.f32.mrf.mxu0 }
 0x304   : > { %v3543_v20 = vpop.eup %3542  ;;  %2887 = vst [vmem:[%s6014_s10 + $0x5c8] sm:$0xff] %v3541_v38  ;;  %v2023_v54 = vpop.f32.mrf.mxu1  ;;  %3544 = vtanh.f32 %v1829_v6  ;;  %v1831_v43 = vadd.f32 %v1830_v39, %v5942_v15 }
 0x305   : > { %2889 = vst [vmem:[%s6014_s10 + $0x5d8] sm:$0xff] %v3543_v20  ;;  %v2024_v55 = vadd.f32 %v2023_v54, %v5944_v42  ;;  %3546 = vtanh.f32 %v2022_v11  ;;  %v1832_v8 = vpop.f32.mrf.mxu0 }
 0x306   : > { %v2025_v13 = vpop.f32.mrf.mxu1  ;;  %3548 = vtanh.f32 %v1831_v43  ;;  %v1833_v26 = vadd.f32 %v1832_v8, %v5927_v60 }
 0x307   : > { %v2026_v22 = vadd.f32 %v2025_v13, %v5929_v51  ;;  %3550 = vtanh.f32 %v2024_v55  ;;  %v1834_v21 = vpop.f32.mrf.mxu0 }
 0x308   : > { %v2027_v4 = vpop.f32.mrf.mxu1  ;;  %3552 = vtanh.f32 %v1833_v26  ;;  %v1835_v49 = vadd.f32 %v1834_v21, %v5942_v15  ;;  %3149 = vmatmul.mubr.msk.bf16.gmra.mxu0 %vm8038_vm4, %v6326_v40  ;;  %3165 = vmatmul.mubr.msk.bf16.gmra.mxu1 %vm8039_vm8, %v6326_v40 }
 0x309   : > { %v2028_v41 = vadd.f32 %v2027_v4, %v5944_v42  ;;  %3554 = vtanh.f32 %v2026_v22  ;;  %2222 = vmatprep.mubr.bf16.mxu0 %v7496_v24  ;;  %2415 = vmatprep.mubr.bf16.mxu1 %v7496_v24 }
 0x30a   : > { %3556 = vtanh.f32 %v1835_v49 }
 0x30b   : > { %3558 = vtanh.f32 %v2028_v41  ;;  %v1523_v41 = vsub.s32 4, %v5871_v50 }
 0x310   : > { %3150 = vmatmul.mubr.msk.bf16.gmra.mxu0 %vm8024_vm0, %v6465_v3  ;;  %3166 = vmatmul.mubr.msk.bf16.gmra.mxu1 %vm8040_vm5, %v6465_v3 }
 0x311   : > { %v3545_v16 = vpop.eup %3544  ;;  %2232 = vmatprep.mubr.bf16.mxu0 %v7496_v24  ;;  %2425 = vmatprep.mubr.bf16.mxu1 %v7496_v24 }
 0x312   : > { %v3547_v40 = vpop.eup %3546  ;;  %2894 = vst [vmem:[%s6014_s10 + $0x600] sm:$0xff] %v3545_v16 }
 0x313   : > { %v3549_v48 = vpop.eup %3548  ;;  %2896 = vst [vmem:[%s6014_s10 + $0x610] sm:$0xff] %v3547_v40 }
 0x314   : > { %v3551_v14 = vpop.eup %3550  ;;  %2895 = vst [vmem:[%s6014_s10 + $0x608] sm:$0xff] %v3549_v48  ;;  %v1531_v48 = vsub.s32 6, %v5871_v50 }
 0x315   : > { %v3553_v34 = vpop.eup %3552  ;;  %2897 = vst [vmem:[%s6014_s10 + $0x618] sm:$0xff] %v3551_v14 }
 0x316   : > { %v3555_v36 = vpop.eup %3554  ;;  %2902 = vst [vmem:[%s6014_s10 + $0x640] sm:$0xff] %v3553_v34 }
 0x317   : > { %v3557_v35 = vpop.eup %3556  ;;  %2904 = vst [vmem:[%s6014_s10 + $0x650] sm:$0xff] %v3555_v36  ;;  %v1527_v36 = vsub.s32 5, %v5871_v50 }
 0x318   : > { %v3559_v3 = vpop.eup %3558  ;;  %2903 = vst [vmem:[%s6014_s10 + $0x648] sm:$0xff] %v3557_v35  ;;  %3151 = vmatmul.mubr.msk.bf16.gmra.mxu0 %vm8041_vm6, %v6608_v45  ;;  %3167 = vmatmul.mubr.msk.bf16.gmra.mxu1 %vm8042_vm1, %v6608_v45 }
 0x319   : > { %2905 = vst [vmem:[%s6014_s10 + $0x658] sm:$0xff] %v3559_v3  ;;  %2242 = vmatprep.mubr.bf16.mxu0 %v7496_v24  ;;  %2435 = vmatprep.mubr.bf16.mxu1 %v7496_v24 }
 0x31d   : > { %v1838_v59 = vpop.f32.mrf.mxu0  ;;  %v2031_v46 = vpop.f32.mrf.mxu1 }
 0x31e   : > { %v1839_v28 = vadd.f32 %v1838_v59, %v5927_v60  ;;  %v2032_v7 = vadd.f32 %v2031_v46, %v5929_v51  ;;  %v1535_v59 = vsub.s32 7, %v5871_v50 }
 0x31f   : > { %v1840_v58 = vpop.f32.mrf.mxu0  ;;  %v2033_v30 = vpop.f32.mrf.mxu1 }
 0x320   : > { %3152 = vmatmul.mubr.msk.bf16.gmra.mxu0 %vm8043_vm9, %v6746_v25  ;;  %3168 = vmatmul.mubr.msk.bf16.gmra.mxu1 %vm8044_vm13, %v6746_v25  ;;  %3560 = vtanh.f32 %v1839_v28  ;;  %v1841_v45 = vadd.f32 %v1840_v58, %v5942_v15  ;;  %v2034_v5 = vadd.f32 %v2033_v30, %v5944_v42 }
 0x321   : > { %3562 = vtanh.f32 %v2032_v7  ;;  %v1842_v24 = vpop.f32.mrf.mxu0  ;;  %v2035_v10 = vpop.f32.mrf.mxu1  ;;  %v3886_v7 = vld [vmem:[#allocation4] sm:$0xff] }
 0x322   : > { %3564 = vtanh.f32 %v1841_v45  ;;  %v1843_v62 = vadd.f32 %v1842_v24, %v5927_v60  ;;  %v2036_v61 = vadd.f32 %v2035_v10, %v5929_v51  ;;  %v6968_v58 = vrot.slane %v3886_v7, %v1523_v41 }
 0x323   : > { %3566 = vtanh.f32 %v2034_v5  ;;  %v1844_v19 = vpop.f32.mrf.mxu0  ;;  %v2037_v25 = vpop.f32.mrf.mxu1  ;;  %v6972_v5 = vrot.slane %v3886_v7, %v1531_v48 }
 0x324   : > { %3568 = vtanh.f32 %v1843_v62  ;;  %v1845_v57 = vadd.f32 %v1844_v19, %v5942_v15  ;;  %v2038_v17 = vadd.f32 %v2037_v25, %v5944_v42  ;;  %v6974_v62 = vrot.slane %v3886_v7, %v1527_v36 }
 0x325   : > { %3570 = vtanh.f32 %v2036_v61  ;;  %v6978_v19 = vrot.slane %v3886_v7, %v1535_v59 }
 0x326   : > { %3572 = vtanh.f32 %v1845_v57 }
 0x327   : > { %3574 = vtanh.f32 %v2038_v17 }
 0x32d   : > { %v3561_v29 = vpop.eup %3560 }
 0x32e   : > { %v3563_v63 = vpop.eup %3562  ;;  %2910 = vst [vmem:[%s6014_s10 + $0x680] sm:$0xff] %v3561_v29 }
 0x32f   : > { %v3565_v12 = vpop.eup %3564  ;;  %2912 = vst [vmem:[%s6014_s10 + $0x690] sm:$0xff] %v3563_v63 }
 0x330   : > { %v3567_v27 = vpop.eup %3566  ;;  %2911 = vst [vmem:[%s6014_s10 + $0x688] sm:$0xff] %v3565_v12 }
 0x331   : > { %v3569_v9 = vpop.eup %3568  ;;  %2913 = vst [vmem:[%s6014_s10 + $0x698] sm:$0xff] %v3567_v27 }
 0x332   : > { %v3571_v23 = vpop.eup %3570  ;;  %2918 = vst [vmem:[%s6014_s10 + $0x6c0] sm:$0xff] %v3569_v9 }
 0x333   : > { %v3573_v44 = vpop.eup %3572  ;;  %2920 = vst [vmem:[%s6014_s10 + $0x6d0] sm:$0xff] %v3571_v23 }
 0x334   : > { %v3575_v18 = vpop.eup %3574  ;;  %2919 = vst [vmem:[%s6014_s10 + $0x6c8] sm:$0xff] %v3573_v44 }
 0x335   : > { %2921 = vst [vmem:[%s6014_s10 + $0x6d8] sm:$0xff] %v3575_v18 }
 0x33e   : > { %v1848_v32 = vpop.f32.mrf.mxu0  ;;  %v2041_v52 = vpop.f32.mrf.mxu1 }
 0x33f   : > { %v1849_v53 = vadd.f32 %v1848_v32, %v5927_v60  ;;  %v2042_v37 = vadd.f32 %v2041_v52, %v5929_v51 }
 0x340   : > { %v1850_v1 = vpop.f32.mrf.mxu0  ;;  %v2043_v0 = vpop.f32.mrf.mxu1 }
 0x341   : > { %3576 = vtanh.f32 %v1849_v53  ;;  %v1851_v47 = vadd.f32 %v1850_v1, %v5942_v15  ;;  %v2044_v56 = vadd.f32 %v2043_v0, %v5944_v42 }
 0x342   : > { %3578 = vtanh.f32 %v2042_v37  ;;  %v1852_v31 = vpop.f32.mrf.mxu0  ;;  %v2045_v38 = vpop.f32.mrf.mxu1 }
 0x343   : > { %3580 = vtanh.f32 %v1851_v47  ;;  %v1853_v20 = vadd.f32 %v1852_v31, %v5927_v60  ;;  %v2046_v33 = vadd.f32 %v2045_v38, %v5929_v51 }
 0x344   : > { %3582 = vtanh.f32 %v2044_v56  ;;  %v1854_v2 = vpop.f32.mrf.mxu0  ;;  %v2047_v6 = vpop.f32.mrf.mxu1 }
 0x345   : > { %3584 = vtanh.f32 %v1853_v20  ;;  %v1855_v11 = vadd.f32 %v1854_v2, %v5942_v15  ;;  %v2048_v39 = vadd.f32 %v2047_v6, %v5944_v42 }
 0x346   : > { %3586 = vtanh.f32 %v2046_v33 }
 0x347   : > { %3588 = vtanh.f32 %v1855_v11 }
 0x348   : > { %3590 = vtanh.f32 %v2048_v39 }
 0x34e   : > { %v3577_v54 = vpop.eup %3576 }
 0x34f   : > { %v3579_v43 = vpop.eup %3578  ;;  %2926 = vst [vmem:[%s6014_s10 + $0x700] sm:$0xff] %v3577_v54 }
 0x350   : > { %v3581_v55 = vpop.eup %3580  ;;  %2928 = vst [vmem:[%s6014_s10 + $0x710] sm:$0xff] %v3579_v43 }
 0x351   : > { %v3583_v8 = vpop.eup %3582  ;;  %2927 = vst [vmem:[%s6014_s10 + $0x708] sm:$0xff] %v3581_v55 }
 0x352   : > { %v3585_v13 = vpop.eup %3584  ;;  %2929 = vst [vmem:[%s6014_s10 + $0x718] sm:$0xff] %v3583_v8 }
 0x353   : > { %v3587_v26 = vpop.eup %3586  ;;  %2934 = vst [vmem:[%s6014_s10 + $0x740] sm:$0xff] %v3585_v13 }
 0x354   : > { %v3589_v22 = vpop.eup %3588  ;;  %2936 = vst [vmem:[%s6014_s10 + $0x750] sm:$0xff] %v3587_v26 }
 0x355   : > { %v3591_v21 = vpop.eup %3590  ;;  %2935 = vst [vmem:[%s6014_s10 + $0x748] sm:$0xff] %v3589_v22 }
 0x356   : > { %2937 = vst [vmem:[%s6014_s10 + $0x758] sm:$0xff] %v3591_v21 }
 0x360   : > { %v1858_v4 = vpop.f32.mrf.mxu0  ;;  %v2051_v49 = vpop.f32.mrf.mxu1 }
 0x361   : > { %v1859_v16 = vadd.f32 %v1858_v4, %v5927_v60  ;;  %v2052_v40 = vadd.f32 %v2051_v49, %v5929_v51 }
 0x362   : > { %v1860_v14 = vpop.f32.mrf.mxu0  ;;  %v2053_v34 = vpop.f32.mrf.mxu1 }
 0x363   : > { %3592 = vtanh.f32 %v1859_v16  ;;  %v1861_v35 = vadd.f32 %v1860_v14, %v5942_v15  ;;  %v2054_v3 = vadd.f32 %v2053_v34, %v5944_v42 }
 0x364   : > { %3594 = vtanh.f32 %v2052_v40  ;;  %v1862_v46 = vpop.f32.mrf.mxu0  ;;  %v2055_v28 = vpop.f32.mrf.mxu1 }
 0x365   : > { %3596 = vtanh.f32 %v1861_v35  ;;  %v1863_v30 = vadd.f32 %v1862_v46, %v5927_v60  ;;  %v2056_v45 = vadd.f32 %v2055_v28, %v5929_v51 }
 0x366   : > { %3598 = vtanh.f32 %v2054_v3  ;;  %v1864_v24 = vpop.f32.mrf.mxu0  ;;  %v2057_v10 = vpop.f32.mrf.mxu1 }
 0x367   : > { %3600 = vtanh.f32 %v1863_v30  ;;  %v1865_v50 = vadd.f32 %v1864_v24, %v5942_v15  ;;  %v2058_v61 = vadd.f32 %v2057_v10, %v5944_v42 }
 0x368   : > { %3602 = vtanh.f32 %v2056_v45  ;;  %v2094_v25 = vpop.f32.mrf.mxu0  ;;  %v2287_v57 = vpop.f32.mrf.mxu1 }
 0x369   : > { %3604 = vtanh.f32 %v1865_v50  ;;  %v2095_v60 = vadd.f32 %v2094_v25, %v6968_v58  ;;  %v2288_v51 = vadd.f32 %v2287_v57, %v6972_v5 }
 0x36a   : > { %3606 = vtanh.f32 %v2058_v61  ;;  %v2096_v17 = vpop.f32.mrf.mxu0  ;;  %v2289_v29 = vpop.f32.mrf.mxu1 }
 0x36b   : > { %3608 = vtanh.f32 %v2095_v60  ;;  %v2097_v63 = vadd.f32 %v2096_v17, %v6974_v62  ;;  %v2290_v15 = vadd.f32 %v2289_v29, %v6978_v19 }
 0x36c   : > { %3610 = vtanh.f32 %v2288_v51  ;;  %v2098_v42 = vpop.f32.mrf.mxu0  ;;  %v2291_v12 = vpop.f32.mrf.mxu1 }
 0x36d   : > { %3612 = vtanh.f32 %v2097_v63  ;;  %v2099_v27 = vadd.f32 %v2098_v42, %v6968_v58  ;;  %v2292_v9 = vadd.f32 %v2291_v12, %v6972_v5 }
 0x36e   : > { %3614 = vtanh.f32 %v2290_v15  ;;  %v2100_v23 = vpop.f32.mrf.mxu0  ;;  %v2293_v44 = vpop.f32.mrf.mxu1 }
 0x36f   : > { %3616 = vtanh.f32 %v2099_v27  ;;  %v2101_v18 = vadd.f32 %v2100_v23, %v6974_v62  ;;  %v2294_v32 = vadd.f32 %v2293_v44, %v6978_v19 }
 0x370   : > { %v3593_v52 = vpop.eup %3592  ;;  %3618 = vtanh.f32 %v2292_v9  ;;  %v2104_v53 = vpop.f32.mrf.mxu0 }
 0x371   : > { %v2297_v37 = vpop.f32.mrf.mxu1  ;;  %v3595_v1 = vpop.eup %3594  ;;  %2942 = vst [vmem:[%s6014_s10 + $0x780] sm:$0xff] %v3593_v52  ;;  %3620 = vtanh.f32 %v2101_v18  ;;  %v2105_v0 = vadd.f32 %v2104_v53, %v6968_v58 }
 0x372   : > { %v2298_v47 = vadd.f32 %v2297_v37, %v6972_v5  ;;  %v3597_v56 = vpop.eup %3596  ;;  %2944 = vst [vmem:[%s6014_s10 + $0x790] sm:$0xff] %v3595_v1  ;;  %3622 = vtanh.f32 %v2294_v32  ;;  %v2106_v31 = vpop.f32.mrf.mxu0 }
 0x373   : > { %v2299_v38 = vpop.f32.mrf.mxu1  ;;  %v3599_v20 = vpop.eup %3598  ;;  %2943 = vst [vmem:[%s6014_s10 + $0x788] sm:$0xff] %v3597_v56  ;;  %3624 = vtanh.f32 %v2105_v0  ;;  %v2107_v33 = vadd.f32 %v2106_v31, %v6974_v62 }
 0x374   : > { %v2300_v2 = vadd.f32 %v2299_v38, %v6978_v19  ;;  %v3601_v6 = vpop.eup %3600  ;;  %2945 = vst [vmem:[%s6014_s10 + $0x798] sm:$0xff] %v3599_v20  ;;  %3626 = vtanh.f32 %v2298_v47  ;;  %v2108_v11 = vpop.f32.mrf.mxu0 }
 0x375   : > { %v2301_v39 = vpop.f32.mrf.mxu1  ;;  %v3603_v54 = vpop.eup %3602  ;;  %2950 = vst [vmem:[%s6014_s10 + $0x7c0] sm:$0xff] %v3601_v6  ;;  %3628 = vtanh.f32 %v2107_v33  ;;  %v2109_v43 = vadd.f32 %v2108_v11, %v6968_v58 }
 0x376   : > { %v2302_v55 = vadd.f32 %v2301_v39, %v6972_v5  ;;  %v3605_v8 = vpop.eup %3604  ;;  %2952 = vst [vmem:[%s6014_s10 + $0x7d0] sm:$0xff] %v3603_v54  ;;  %3630 = vtanh.f32 %v2300_v2  ;;  %v2110_v13 = vpop.f32.mrf.mxu0 }
 0x377   : > { %v2303_v26 = vpop.f32.mrf.mxu1  ;;  %v3607_v22 = vpop.eup %3606  ;;  %2951 = vst [vmem:[%s6014_s10 + $0x7c8] sm:$0xff] %v3605_v8  ;;  %3632 = vtanh.f32 %v2109_v43  ;;  %v2111_v21 = vadd.f32 %v2110_v13, %v6974_v62 }
 0x378   : > { %v2304_v4 = vadd.f32 %v2303_v26, %v6978_v19  ;;  %v3609_v49 = vpop.eup %3608  ;;  %2953 = vst [vmem:[%s6014_s10 + $0x7d8] sm:$0xff] %v3607_v22  ;;  %3634 = vtanh.f32 %v2302_v55  ;;  %v2114_v41 = vpop.f32.mrf.mxu0 }
 0x379   : > { %v2307_v16 = vpop.f32.mrf.mxu1  ;;  %v3611_v40 = vpop.eup %3610  ;;  %2706 = vst [vmem:[%s6014_s10 + $0x20] sm:$0xff] %v3609_v49  ;;  %3636 = vtanh.f32 %v2111_v21  ;;  %v2115_v48 = vadd.f32 %v2114_v41, %v6968_v58 }
 0x37a   : > { %v2308_v14 = vadd.f32 %v2307_v16, %v6972_v5  ;;  %v3613_v34 = vpop.eup %3612  ;;  %2708 = vst [vmem:[%s6014_s10 + $0x30] sm:$0xff] %v3611_v40  ;;  %3638 = vtanh.f32 %v2304_v4  ;;  %v2116_v36 = vpop.f32.mrf.mxu0 }
 0x37b   : > { %v2309_v35 = vpop.f32.mrf.mxu1  ;;  %v3615_v3 = vpop.eup %3614  ;;  %2707 = vst [vmem:[%s6014_s10 + $0x28] sm:$0xff] %v3613_v34  ;;  %3640 = vtanh.f32 %v2115_v48  ;;  %v2117_v59 = vadd.f32 %v2116_v36, %v6974_v62 }
 0x37c   : > { %v2310_v46 = vadd.f32 %v2309_v35, %v6978_v19  ;;  %v3617_v28 = vpop.eup %3616  ;;  %2709 = vst [vmem:[%s6014_s10 + $0x38] sm:$0xff] %v3615_v3  ;;  %3642 = vtanh.f32 %v2308_v14  ;;  %v2118_v7 = vpop.f32.mrf.mxu0 }
 0x37d   : > { %v2311_v30 = vpop.f32.mrf.mxu1  ;;  %v3619_v45 = vpop.eup %3618  ;;  %2714 = vst [vmem:[%s6014_s10 + $0x60] sm:$0xff] %v3617_v28  ;;  %3644 = vtanh.f32 %v2117_v59  ;;  %v2119_v24 = vadd.f32 %v2118_v7, %v6968_v58 }
 0x37e   : > { %v2312_v10 = vadd.f32 %v2311_v30, %v6972_v5  ;;  %v3621_v50 = vpop.eup %3620  ;;  %2716 = vst [vmem:[%s6014_s10 + $0x70] sm:$0xff] %v3619_v45  ;;  %3646 = vtanh.f32 %v2310_v46  ;;  %v2120_v61 = vpop.f32.mrf.mxu0 }
 0x37f   : > { %v2313_v25 = vpop.f32.mrf.mxu1  ;;  %v3623_v57 = vpop.eup %3622  ;;  %2715 = vst [vmem:[%s6014_s10 + $0x68] sm:$0xff] %v3621_v50  ;;  %3648 = vtanh.f32 %v2119_v24  ;;  %v2121_v60 = vadd.f32 %v2120_v61, %v6974_v62 }
 0x380   : > { %v2314_v51 = vadd.f32 %v2313_v25, %v6978_v19  ;;  %v3625_v17 = vpop.eup %3624  ;;  %2717 = vst [vmem:[%s6014_s10 + $0x78] sm:$0xff] %v3623_v57  ;;  %3650 = vtanh.f32 %v2312_v10  ;;  %v2124_v29 = vpop.f32.mrf.mxu0 }
 0x381   : > { %v2317_v63 = vpop.f32.mrf.mxu1  ;;  %v3627_v15 = vpop.eup %3626  ;;  %2722 = vst [vmem:[%s6014_s10 + $0xa0] sm:$0xff] %v3625_v17  ;;  %3652 = vtanh.f32 %v2121_v60  ;;  %v2125_v42 = vadd.f32 %v2124_v29, %v6968_v58 }
 0x382   : > { %v2318_v12 = vadd.f32 %v2317_v63, %v6972_v5  ;;  %v3629_v27 = vpop.eup %3628  ;;  %2724 = vst [vmem:[%s6014_s10 + $0xb0] sm:$0xff] %v3627_v15  ;;  %3654 = vtanh.f32 %v2314_v51  ;;  %v2126_v9 = vpop.f32.mrf.mxu0 }
 0x383   : > { %v2319_v23 = vpop.f32.mrf.mxu1  ;;  %v3631_v44 = vpop.eup %3630  ;;  %2723 = vst [vmem:[%s6014_s10 + $0xa8] sm:$0xff] %v3629_v27  ;;  %3656 = vtanh.f32 %v2125_v42  ;;  %v2127_v18 = vadd.f32 %v2126_v9, %v6974_v62 }
 0x384   : > { %v2320_v32 = vadd.f32 %v2319_v23, %v6978_v19  ;;  %v3633_v52 = vpop.eup %3632  ;;  %2725 = vst [vmem:[%s6014_s10 + $0xb8] sm:$0xff] %v3631_v44  ;;  %3658 = vtanh.f32 %v2318_v12  ;;  %v2128_v53 = vpop.f32.mrf.mxu0 }
 0x385   : > { %v2321_v37 = vpop.f32.mrf.mxu1  ;;  %v3635_v1 = vpop.eup %3634  ;;  %2730 = vst [vmem:[%s6014_s10 + $0xe0] sm:$0xff] %v3633_v52  ;;  %3660 = vtanh.f32 %v2127_v18  ;;  %v2129_v0 = vadd.f32 %v2128_v53, %v6968_v58 }
 0x386   : > { %v2322_v47 = vadd.f32 %v2321_v37, %v6972_v5  ;;  %v3637_v56 = vpop.eup %3636  ;;  %2732 = vst [vmem:[%s6014_s10 + $0xf0] sm:$0xff] %v3635_v1  ;;  %3662 = vtanh.f32 %v2320_v32  ;;  %v2130_v31 = vpop.f32.mrf.mxu0 }
 0x387   : > { %v2323_v38 = vpop.f32.mrf.mxu1  ;;  %v3639_v20 = vpop.eup %3638  ;;  %2731 = vst [vmem:[%s6014_s10 + $0xe8] sm:$0xff] %v3637_v56  ;;  %3664 = vtanh.f32 %v2129_v0  ;;  %v2131_v33 = vadd.f32 %v2130_v31, %v6974_v62 }
 0x388   : > { %v2324_v2 = vadd.f32 %v2323_v38, %v6978_v19  ;;  %v3641_v6 = vpop.eup %3640  ;;  %2733 = vst [vmem:[%s6014_s10 + $0xf8] sm:$0xff] %v3639_v20  ;;  %3666 = vtanh.f32 %v2322_v47  ;;  %v2134_v11 = vpop.f32.mrf.mxu0 }
 0x389   : > { %v2327_v39 = vpop.f32.mrf.mxu1  ;;  %v3643_v54 = vpop.eup %3642  ;;  %2738 = vst [vmem:[%s6014_s10 + $0x120] sm:$0xff] %v3641_v6  ;;  %3668 = vtanh.f32 %v2131_v33  ;;  %v2135_v43 = vadd.f32 %v2134_v11, %v6968_v58 }
 0x38a   : > { %v2328_v55 = vadd.f32 %v2327_v39, %v6972_v5  ;;  %v3645_v8 = vpop.eup %3644  ;;  %2740 = vst [vmem:[%s6014_s10 + $0x130] sm:$0xff] %v3643_v54  ;;  %3670 = vtanh.f32 %v2324_v2  ;;  %v2136_v13 = vpop.f32.mrf.mxu0 }
 0x38b   : > { %v2329_v26 = vpop.f32.mrf.mxu1  ;;  %v3647_v22 = vpop.eup %3646  ;;  %2739 = vst [vmem:[%s6014_s10 + $0x128] sm:$0xff] %v3645_v8  ;;  %3672 = vtanh.f32 %v2135_v43  ;;  %v2137_v21 = vadd.f32 %v2136_v13, %v6974_v62 }
 0x38c   : > { %v2330_v4 = vadd.f32 %v2329_v26, %v6978_v19  ;;  %v3649_v49 = vpop.eup %3648  ;;  %2741 = vst [vmem:[%s6014_s10 + $0x138] sm:$0xff] %v3647_v22  ;;  %3674 = vtanh.f32 %v2328_v55  ;;  %v2138_v41 = vpop.f32.mrf.mxu0 }
 0x38d   : > { %v2331_v16 = vpop.f32.mrf.mxu1  ;;  %v3651_v40 = vpop.eup %3650  ;;  %2746 = vst [vmem:[%s6014_s10 + $0x160] sm:$0xff] %v3649_v49  ;;  %3676 = vtanh.f32 %v2137_v21  ;;  %v2139_v48 = vadd.f32 %v2138_v41, %v6968_v58 }
 0x38e   : > { %v2332_v14 = vadd.f32 %v2331_v16, %v6972_v5  ;;  %v3653_v34 = vpop.eup %3652  ;;  %2748 = vst [vmem:[%s6014_s10 + $0x170] sm:$0xff] %v3651_v40  ;;  %3678 = vtanh.f32 %v2330_v4  ;;  %v2140_v36 = vpop.f32.mrf.mxu0 }
 0x38f   : > { %v2333_v35 = vpop.f32.mrf.mxu1  ;;  %v3655_v3 = vpop.eup %3654  ;;  %2747 = vst [vmem:[%s6014_s10 + $0x168] sm:$0xff] %v3653_v34  ;;  %3680 = vtanh.f32 %v2139_v48  ;;  %v2141_v59 = vadd.f32 %v2140_v36, %v6974_v62 }
 0x390   : > { %v2334_v46 = vadd.f32 %v2333_v35, %v6978_v19  ;;  %v3657_v28 = vpop.eup %3656  ;;  %2749 = vst [vmem:[%s6014_s10 + $0x178] sm:$0xff] %v3655_v3  ;;  %3682 = vtanh.f32 %v2332_v14  ;;  %v2144_v7 = vpop.f32.mrf.mxu0 }
 0x391   : > { %v2337_v30 = vpop.f32.mrf.mxu1  ;;  %v3659_v45 = vpop.eup %3658  ;;  %2754 = vst [vmem:[%s6014_s10 + $0x1a0] sm:$0xff] %v3657_v28  ;;  %3684 = vtanh.f32 %v2141_v59  ;;  %v2145_v24 = vadd.f32 %v2144_v7, %v6968_v58 }
 0x392   : > { %v2338_v10 = vadd.f32 %v2337_v30, %v6972_v5  ;;  %v3661_v50 = vpop.eup %3660  ;;  %2756 = vst [vmem:[%s6014_s10 + $0x1b0] sm:$0xff] %v3659_v45  ;;  %3686 = vtanh.f32 %v2334_v46  ;;  %v2146_v61 = vpop.f32.mrf.mxu0 }
 0x393   : > { %v2339_v25 = vpop.f32.mrf.mxu1  ;;  %v3663_v57 = vpop.eup %3662  ;;  %2755 = vst [vmem:[%s6014_s10 + $0x1a8] sm:$0xff] %v3661_v50  ;;  %3688 = vtanh.f32 %v2145_v24  ;;  %v2147_v60 = vadd.f32 %v2146_v61, %v6974_v62 }
 0x394   : > { %v2340_v51 = vadd.f32 %v2339_v25, %v6978_v19  ;;  %v3665_v17 = vpop.eup %3664  ;;  %2757 = vst [vmem:[%s6014_s10 + $0x1b8] sm:$0xff] %v3663_v57  ;;  %3690 = vtanh.f32 %v2338_v10  ;;  %v2148_v29 = vpop.f32.mrf.mxu0 }
 0x395   : > { %v2341_v63 = vpop.f32.mrf.mxu1  ;;  %v3667_v15 = vpop.eup %3666  ;;  %2762 = vst [vmem:[%s6014_s10 + $0x1e0] sm:$0xff] %v3665_v17  ;;  %3692 = vtanh.f32 %v2147_v60  ;;  %v2149_v42 = vadd.f32 %v2148_v29, %v6968_v58 }
 0x396   : > { %v2342_v12 = vadd.f32 %v2341_v63, %v6972_v5  ;;  %v3669_v27 = vpop.eup %3668  ;;  %2764 = vst [vmem:[%s6014_s10 + $0x1f0] sm:$0xff] %v3667_v15  ;;  %3694 = vtanh.f32 %v2340_v51  ;;  %v2150_v9 = vpop.f32.mrf.mxu0 }
 0x397   : > { %v2343_v23 = vpop.f32.mrf.mxu1  ;;  %v3671_v44 = vpop.eup %3670  ;;  %2763 = vst [vmem:[%s6014_s10 + $0x1e8] sm:$0xff] %v3669_v27  ;;  %3696 = vtanh.f32 %v2149_v42  ;;  %v2151_v18 = vadd.f32 %v2150_v9, %v6974_v62 }
 0x398   : > { %v2344_v32 = vadd.f32 %v2343_v23, %v6978_v19  ;;  %v3673_v52 = vpop.eup %3672  ;;  %2765 = vst [vmem:[%s6014_s10 + $0x1f8] sm:$0xff] %v3671_v44  ;;  %3698 = vtanh.f32 %v2342_v12  ;;  %v2154_v53 = vpop.f32.mrf.mxu0 }
 0x399   : > { %v2347_v37 = vpop.f32.mrf.mxu1  ;;  %v3675_v1 = vpop.eup %3674  ;;  %2770 = vst [vmem:[%s6014_s10 + $0x220] sm:$0xff] %v3673_v52  ;;  %3700 = vtanh.f32 %v2151_v18  ;;  %v2155_v0 = vadd.f32 %v2154_v53, %v6968_v58 }
 0x39a   : > { %v2348_v47 = vadd.f32 %v2347_v37, %v6972_v5  ;;  %v3677_v56 = vpop.eup %3676  ;;  %2772 = vst [vmem:[%s6014_s10 + $0x230] sm:$0xff] %v3675_v1  ;;  %3702 = vtanh.f32 %v2344_v32  ;;  %v2156_v31 = vpop.f32.mrf.mxu0 }
 0x39b   : > { %v2349_v38 = vpop.f32.mrf.mxu1  ;;  %v3679_v20 = vpop.eup %3678  ;;  %2771 = vst [vmem:[%s6014_s10 + $0x228] sm:$0xff] %v3677_v56  ;;  %3704 = vtanh.f32 %v2155_v0  ;;  %v2157_v33 = vadd.f32 %v2156_v31, %v6974_v62 }
 0x39c   : > { %v2350_v2 = vadd.f32 %v2349_v38, %v6978_v19  ;;  %v3681_v6 = vpop.eup %3680  ;;  %2773 = vst [vmem:[%s6014_s10 + $0x238] sm:$0xff] %v3679_v20  ;;  %3706 = vtanh.f32 %v2348_v47  ;;  %v2158_v11 = vpop.f32.mrf.mxu0 }
 0x39d   : > { %v2351_v39 = vpop.f32.mrf.mxu1  ;;  %v3683_v54 = vpop.eup %3682  ;;  %2778 = vst [vmem:[%s6014_s10 + $0x260] sm:$0xff] %v3681_v6  ;;  %3708 = vtanh.f32 %v2157_v33  ;;  %v2159_v43 = vadd.f32 %v2158_v11, %v6968_v58 }
 0x39e   : > { %v2352_v55 = vadd.f32 %v2351_v39, %v6972_v5  ;;  %v3685_v8 = vpop.eup %3684  ;;  %2780 = vst [vmem:[%s6014_s10 + $0x270] sm:$0xff] %v3683_v54  ;;  %3710 = vtanh.f32 %v2350_v2  ;;  %v2160_v13 = vpop.f32.mrf.mxu0 }
 0x39f   : > { %v2353_v26 = vpop.f32.mrf.mxu1  ;;  %v3687_v22 = vpop.eup %3686  ;;  %2779 = vst [vmem:[%s6014_s10 + $0x268] sm:$0xff] %v3685_v8  ;;  %3712 = vtanh.f32 %v2159_v43  ;;  %v2161_v21 = vadd.f32 %v2160_v13, %v6974_v62 }
 0x3a0   : > { %v2354_v4 = vadd.f32 %v2353_v26, %v6978_v19  ;;  %v3689_v49 = vpop.eup %3688  ;;  %2781 = vst [vmem:[%s6014_s10 + $0x278] sm:$0xff] %v3687_v22  ;;  %3714 = vtanh.f32 %v2352_v55  ;;  %v2164_v41 = vpop.f32.mrf.mxu0 }
 0x3a1   : > { %v2357_v16 = vpop.f32.mrf.mxu1  ;;  %v3691_v40 = vpop.eup %3690  ;;  %2786 = vst [vmem:[%s6014_s10 + $0x2a0] sm:$0xff] %v3689_v49  ;;  %3716 = vtanh.f32 %v2161_v21  ;;  %v2165_v48 = vadd.f32 %v2164_v41, %v6968_v58 }
 0x3a2   : > { %v2358_v14 = vadd.f32 %v2357_v16, %v6972_v5  ;;  %v3693_v34 = vpop.eup %3692  ;;  %2788 = vst [vmem:[%s6014_s10 + $0x2b0] sm:$0xff] %v3691_v40  ;;  %3718 = vtanh.f32 %v2354_v4  ;;  %v2166_v36 = vpop.f32.mrf.mxu0 }
 0x3a3   : > { %v2359_v35 = vpop.f32.mrf.mxu1  ;;  %v3695_v3 = vpop.eup %3694  ;;  %2787 = vst [vmem:[%s6014_s10 + $0x2a8] sm:$0xff] %v3693_v34  ;;  %3720 = vtanh.f32 %v2165_v48  ;;  %v2167_v59 = vadd.f32 %v2166_v36, %v6974_v62 }
 0x3a4   : > { %v2360_v46 = vadd.f32 %v2359_v35, %v6978_v19  ;;  %v3697_v28 = vpop.eup %3696  ;;  %2789 = vst [vmem:[%s6014_s10 + $0x2b8] sm:$0xff] %v3695_v3  ;;  %3722 = vtanh.f32 %v2358_v14  ;;  %v2168_v7 = vpop.f32.mrf.mxu0 }
 0x3a5   : > { %v2361_v30 = vpop.f32.mrf.mxu1  ;;  %v3699_v45 = vpop.eup %3698  ;;  %2794 = vst [vmem:[%s6014_s10 + $0x2e0] sm:$0xff] %v3697_v28  ;;  %3724 = vtanh.f32 %v2167_v59  ;;  %v2169_v24 = vadd.f32 %v2168_v7, %v6968_v58 }
 0x3a6   : > { %v2362_v10 = vadd.f32 %v2361_v30, %v6972_v5  ;;  %v3701_v50 = vpop.eup %3700  ;;  %2796 = vst [vmem:[%s6014_s10 + $0x2f0] sm:$0xff] %v3699_v45  ;;  %3726 = vtanh.f32 %v2360_v46  ;;  %v2170_v61 = vpop.f32.mrf.mxu0 }
 0x3a7   : > { %v2363_v25 = vpop.f32.mrf.mxu1  ;;  %v3703_v57 = vpop.eup %3702  ;;  %2795 = vst [vmem:[%s6014_s10 + $0x2e8] sm:$0xff] %v3701_v50  ;;  %3728 = vtanh.f32 %v2169_v24  ;;  %v2171_v60 = vadd.f32 %v2170_v61, %v6974_v62 }
 0x3a8   : > { %v2364_v51 = vadd.f32 %v2363_v25, %v6978_v19  ;;  %v3705_v17 = vpop.eup %3704  ;;  %2797 = vst [vmem:[%s6014_s10 + $0x2f8] sm:$0xff] %v3703_v57  ;;  %3730 = vtanh.f32 %v2362_v10  ;;  %v2174_v29 = vpop.f32.mrf.mxu0 }
 0x3a9   : > { %v2367_v63 = vpop.f32.mrf.mxu1  ;;  %v3707_v15 = vpop.eup %3706  ;;  %2802 = vst [vmem:[%s6014_s10 + $0x320] sm:$0xff] %v3705_v17  ;;  %3732 = vtanh.f32 %v2171_v60  ;;  %v2175_v42 = vadd.f32 %v2174_v29, %v6968_v58 }
 0x3aa   : > { %v2368_v12 = vadd.f32 %v2367_v63, %v6972_v5  ;;  %v3709_v27 = vpop.eup %3708  ;;  %2804 = vst [vmem:[%s6014_s10 + $0x330] sm:$0xff] %v3707_v15  ;;  %3734 = vtanh.f32 %v2364_v51  ;;  %v2176_v9 = vpop.f32.mrf.mxu0 }
 0x3ab   : > { %v2369_v23 = vpop.f32.mrf.mxu1  ;;  %v3711_v44 = vpop.eup %3710  ;;  %2803 = vst [vmem:[%s6014_s10 + $0x328] sm:$0xff] %v3709_v27  ;;  %3736 = vtanh.f32 %v2175_v42  ;;  %v2177_v18 = vadd.f32 %v2176_v9, %v6974_v62 }
 0x3ac   : > { %v2370_v32 = vadd.f32 %v2369_v23, %v6978_v19  ;;  %v3713_v52 = vpop.eup %3712  ;;  %2805 = vst [vmem:[%s6014_s10 + $0x338] sm:$0xff] %v3711_v44  ;;  %3738 = vtanh.f32 %v2368_v12  ;;  %v2178_v53 = vpop.f32.mrf.mxu0 }
 0x3ad   : > { %v2371_v37 = vpop.f32.mrf.mxu1  ;;  %v3715_v1 = vpop.eup %3714  ;;  %2810 = vst [vmem:[%s6014_s10 + $0x360] sm:$0xff] %v3713_v52  ;;  %3740 = vtanh.f32 %v2177_v18  ;;  %v2179_v0 = vadd.f32 %v2178_v53, %v6968_v58 }
 0x3ae   : > { %v2372_v47 = vadd.f32 %v2371_v37, %v6972_v5  ;;  %v3717_v56 = vpop.eup %3716  ;;  %2812 = vst [vmem:[%s6014_s10 + $0x370] sm:$0xff] %v3715_v1  ;;  %3742 = vtanh.f32 %v2370_v32  ;;  %v2180_v31 = vpop.f32.mrf.mxu0 }
 0x3af   : > { %v2373_v38 = vpop.f32.mrf.mxu1  ;;  %v3719_v20 = vpop.eup %3718  ;;  %2811 = vst [vmem:[%s6014_s10 + $0x368] sm:$0xff] %v3717_v56  ;;  %3744 = vtanh.f32 %v2179_v0  ;;  %v2181_v33 = vadd.f32 %v2180_v31, %v6974_v62 }
 0x3b0   : > { %v2374_v2 = vadd.f32 %v2373_v38, %v6978_v19  ;;  %v3721_v6 = vpop.eup %3720  ;;  %2813 = vst [vmem:[%s6014_s10 + $0x378] sm:$0xff] %v3719_v20  ;;  %3746 = vtanh.f32 %v2372_v47  ;;  %v2184_v11 = vpop.f32.mrf.mxu0 }
 0x3b1   : > { %v2377_v39 = vpop.f32.mrf.mxu1  ;;  %v3723_v54 = vpop.eup %3722  ;;  %2818 = vst [vmem:[%s6014_s10 + $0x3a0] sm:$0xff] %v3721_v6  ;;  %3748 = vtanh.f32 %v2181_v33  ;;  %v2185_v43 = vadd.f32 %v2184_v11, %v6968_v58 }
 0x3b2   : > { %v2378_v55 = vadd.f32 %v2377_v39, %v6972_v5  ;;  %v3725_v8 = vpop.eup %3724  ;;  %2820 = vst [vmem:[%s6014_s10 + $0x3b0] sm:$0xff] %v3723_v54  ;;  %3750 = vtanh.f32 %v2374_v2  ;;  %v2186_v13 = vpop.f32.mrf.mxu0 }
 0x3b3   : > { %v2379_v26 = vpop.f32.mrf.mxu1  ;;  %v3727_v22 = vpop.eup %3726  ;;  %2819 = vst [vmem:[%s6014_s10 + $0x3a8] sm:$0xff] %v3725_v8  ;;  %3752 = vtanh.f32 %v2185_v43  ;;  %v2187_v21 = vadd.f32 %v2186_v13, %v6974_v62 }
 0x3b4   : > { %v2380_v4 = vadd.f32 %v2379_v26, %v6978_v19  ;;  %v3729_v49 = vpop.eup %3728  ;;  %2821 = vst [vmem:[%s6014_s10 + $0x3b8] sm:$0xff] %v3727_v22  ;;  %3754 = vtanh.f32 %v2378_v55  ;;  %v2188_v41 = vpop.f32.mrf.mxu0 }
 0x3b5   : > { %v2381_v16 = vpop.f32.mrf.mxu1  ;;  %v3731_v40 = vpop.eup %3730  ;;  %2826 = vst [vmem:[%s6014_s10 + $0x3e0] sm:$0xff] %v3729_v49  ;;  %3756 = vtanh.f32 %v2187_v21  ;;  %v2189_v48 = vadd.f32 %v2188_v41, %v6968_v58 }
 0x3b6   : > { %v2382_v14 = vadd.f32 %v2381_v16, %v6972_v5  ;;  %v3733_v34 = vpop.eup %3732  ;;  %2828 = vst [vmem:[%s6014_s10 + $0x3f0] sm:$0xff] %v3731_v40  ;;  %3758 = vtanh.f32 %v2380_v4  ;;  %v2190_v36 = vpop.f32.mrf.mxu0 }
 0x3b7   : > { %v2383_v35 = vpop.f32.mrf.mxu1  ;;  %v3735_v3 = vpop.eup %3734  ;;  %2827 = vst [vmem:[%s6014_s10 + $0x3e8] sm:$0xff] %v3733_v34  ;;  %3760 = vtanh.f32 %v2189_v48  ;;  %v2191_v59 = vadd.f32 %v2190_v36, %v6974_v62 }
 0x3b8   : > { %v2384_v46 = vadd.f32 %v2383_v35, %v6978_v19  ;;  %v3737_v28 = vpop.eup %3736  ;;  %2829 = vst [vmem:[%s6014_s10 + $0x3f8] sm:$0xff] %v3735_v3  ;;  %3762 = vtanh.f32 %v2382_v14  ;;  %v2194_v7 = vpop.f32.mrf.mxu0 }
 0x3b9   : > { %v2387_v30 = vpop.f32.mrf.mxu1  ;;  %v3739_v45 = vpop.eup %3738  ;;  %2834 = vst [vmem:[%s6014_s10 + $0x420] sm:$0xff] %v3737_v28  ;;  %3764 = vtanh.f32 %v2191_v59  ;;  %v2195_v24 = vadd.f32 %v2194_v7, %v6968_v58 }
 0x3ba   : > { %v2388_v10 = vadd.f32 %v2387_v30, %v6972_v5  ;;  %v3741_v50 = vpop.eup %3740  ;;  %2836 = vst [vmem:[%s6014_s10 + $0x430] sm:$0xff] %v3739_v45  ;;  %3766 = vtanh.f32 %v2384_v46  ;;  %v2196_v61 = vpop.f32.mrf.mxu0 }
 0x3bb   : > { %v2389_v25 = vpop.f32.mrf.mxu1  ;;  %v3743_v57 = vpop.eup %3742  ;;  %2835 = vst [vmem:[%s6014_s10 + $0x428] sm:$0xff] %v3741_v50  ;;  %3768 = vtanh.f32 %v2195_v24  ;;  %v2197_v60 = vadd.f32 %v2196_v61, %v6974_v62 }
 0x3bc   : > { %v2390_v51 = vadd.f32 %v2389_v25, %v6978_v19  ;;  %v3745_v17 = vpop.eup %3744  ;;  %2837 = vst [vmem:[%s6014_s10 + $0x438] sm:$0xff] %v3743_v57  ;;  %3770 = vtanh.f32 %v2388_v10  ;;  %v2198_v29 = vpop.f32.mrf.mxu0 }
 0x3bd   : > { %v2391_v63 = vpop.f32.mrf.mxu1  ;;  %v3747_v15 = vpop.eup %3746  ;;  %2842 = vst [vmem:[%s6014_s10 + $0x460] sm:$0xff] %v3745_v17  ;;  %3772 = vtanh.f32 %v2197_v60  ;;  %v2199_v42 = vadd.f32 %v2198_v29, %v6968_v58 }
 0x3be   : > { %v2392_v12 = vadd.f32 %v2391_v63, %v6972_v5  ;;  %v3749_v27 = vpop.eup %3748  ;;  %2844 = vst [vmem:[%s6014_s10 + $0x470] sm:$0xff] %v3747_v15  ;;  %3774 = vtanh.f32 %v2390_v51  ;;  %v2200_v9 = vpop.f32.mrf.mxu0 }
 0x3bf   : > { %v2393_v23 = vpop.f32.mrf.mxu1  ;;  %v3751_v44 = vpop.eup %3750  ;;  %2843 = vst [vmem:[%s6014_s10 + $0x468] sm:$0xff] %v3749_v27  ;;  %3776 = vtanh.f32 %v2199_v42  ;;  %v2201_v18 = vadd.f32 %v2200_v9, %v6974_v62 }
 0x3c0   : > { %v2394_v32 = vadd.f32 %v2393_v23, %v6978_v19  ;;  %v3753_v52 = vpop.eup %3752  ;;  %2845 = vst [vmem:[%s6014_s10 + $0x478] sm:$0xff] %v3751_v44  ;;  %3778 = vtanh.f32 %v2392_v12  ;;  %v2204_v53 = vpop.f32.mrf.mxu0 }
 0x3c1   : > { %v2397_v37 = vpop.f32.mrf.mxu1  ;;  %v3755_v1 = vpop.eup %3754  ;;  %2850 = vst [vmem:[%s6014_s10 + $0x4a0] sm:$0xff] %v3753_v52  ;;  %3780 = vtanh.f32 %v2201_v18  ;;  %v2205_v0 = vadd.f32 %v2204_v53, %v6968_v58 }
 0x3c2   : > { %v2398_v47 = vadd.f32 %v2397_v37, %v6972_v5  ;;  %v3757_v56 = vpop.eup %3756  ;;  %2852 = vst [vmem:[%s6014_s10 + $0x4b0] sm:$0xff] %v3755_v1  ;;  %3782 = vtanh.f32 %v2394_v32  ;;  %v2206_v31 = vpop.f32.mrf.mxu0 }
 0x3c3   : > { %v2399_v38 = vpop.f32.mrf.mxu1  ;;  %v3759_v20 = vpop.eup %3758  ;;  %2851 = vst [vmem:[%s6014_s10 + $0x4a8] sm:$0xff] %v3757_v56  ;;  %3784 = vtanh.f32 %v2205_v0  ;;  %v2207_v33 = vadd.f32 %v2206_v31, %v6974_v62 }
 0x3c4   : > { %v2400_v2 = vadd.f32 %v2399_v38, %v6978_v19  ;;  %v3761_v6 = vpop.eup %3760  ;;  %2853 = vst [vmem:[%s6014_s10 + $0x4b8] sm:$0xff] %v3759_v20  ;;  %3786 = vtanh.f32 %v2398_v47  ;;  %v2208_v11 = vpop.f32.mrf.mxu0 }
 0x3c5   : > { %v2401_v39 = vpop.f32.mrf.mxu1  ;;  %v3763_v54 = vpop.eup %3762  ;;  %2858 = vst [vmem:[%s6014_s10 + $0x4e0] sm:$0xff] %v3761_v6  ;;  %3788 = vtanh.f32 %v2207_v33  ;;  %v2209_v43 = vadd.f32 %v2208_v11, %v6968_v58 }
 0x3c6   : > { %v2402_v55 = vadd.f32 %v2401_v39, %v6972_v5  ;;  %v3765_v8 = vpop.eup %3764  ;;  %2860 = vst [vmem:[%s6014_s10 + $0x4f0] sm:$0xff] %v3763_v54  ;;  %3790 = vtanh.f32 %v2400_v2  ;;  %v2210_v13 = vpop.f32.mrf.mxu0 }
 0x3c7   : > { %v2403_v26 = vpop.f32.mrf.mxu1  ;;  %v3767_v22 = vpop.eup %3766  ;;  %2859 = vst [vmem:[%s6014_s10 + $0x4e8] sm:$0xff] %v3765_v8  ;;  %3792 = vtanh.f32 %v2209_v43  ;;  %v2211_v21 = vadd.f32 %v2210_v13, %v6974_v62 }
 0x3c8   : > { %v2404_v4 = vadd.f32 %v2403_v26, %v6978_v19  ;;  %v3769_v49 = vpop.eup %3768  ;;  %2861 = vst [vmem:[%s6014_s10 + $0x4f8] sm:$0xff] %v3767_v22  ;;  %3794 = vtanh.f32 %v2402_v55  ;;  %v2214_v41 = vpop.f32.mrf.mxu0 }
 0x3c9   : > { %v2407_v16 = vpop.f32.mrf.mxu1  ;;  %v3771_v40 = vpop.eup %3770  ;;  %2866 = vst [vmem:[%s6014_s10 + $0x520] sm:$0xff] %v3769_v49  ;;  %3796 = vtanh.f32 %v2211_v21  ;;  %v2215_v48 = vadd.f32 %v2214_v41, %v6968_v58 }
 0x3ca   : > { %v2408_v14 = vadd.f32 %v2407_v16, %v6972_v5  ;;  %v3773_v34 = vpop.eup %3772  ;;  %2868 = vst [vmem:[%s6014_s10 + $0x530] sm:$0xff] %v3771_v40  ;;  %3798 = vtanh.f32 %v2404_v4  ;;  %v2216_v36 = vpop.f32.mrf.mxu0 }
 0x3cb   : > { %v2409_v35 = vpop.f32.mrf.mxu1  ;;  %v3775_v3 = vpop.eup %3774  ;;  %2867 = vst [vmem:[%s6014_s10 + $0x528] sm:$0xff] %v3773_v34  ;;  %3800 = vtanh.f32 %v2215_v48  ;;  %v2217_v59 = vadd.f32 %v2216_v36, %v6974_v62 }
 0x3cc   : > { %v2410_v46 = vadd.f32 %v2409_v35, %v6978_v19  ;;  %v3777_v28 = vpop.eup %3776  ;;  %2869 = vst [vmem:[%s6014_s10 + $0x538] sm:$0xff] %v3775_v3  ;;  %3802 = vtanh.f32 %v2408_v14  ;;  %v2218_v7 = vpop.f32.mrf.mxu0 }
 0x3cd   : > { %v2411_v30 = vpop.f32.mrf.mxu1  ;;  %v3779_v45 = vpop.eup %3778  ;;  %2874 = vst [vmem:[%s6014_s10 + $0x560] sm:$0xff] %v3777_v28  ;;  %3804 = vtanh.f32 %v2217_v59  ;;  %v2219_v24 = vadd.f32 %v2218_v7, %v6968_v58 }
 0x3ce   : > { %v2412_v10 = vadd.f32 %v2411_v30, %v6972_v5  ;;  %v3781_v50 = vpop.eup %3780  ;;  %2876 = vst [vmem:[%s6014_s10 + $0x570] sm:$0xff] %v3779_v45  ;;  %3806 = vtanh.f32 %v2410_v46  ;;  %v2220_v61 = vpop.f32.mrf.mxu0 }
 0x3cf   : > { %v2413_v25 = vpop.f32.mrf.mxu1  ;;  %v3783_v57 = vpop.eup %3782  ;;  %2875 = vst [vmem:[%s6014_s10 + $0x568] sm:$0xff] %v3781_v50  ;;  %3808 = vtanh.f32 %v2219_v24  ;;  %v2221_v60 = vadd.f32 %v2220_v61, %v6974_v62 }
 0x3d0   : > { %v2414_v51 = vadd.f32 %v2413_v25, %v6978_v19  ;;  %v3785_v17 = vpop.eup %3784  ;;  %2877 = vst [vmem:[%s6014_s10 + $0x578] sm:$0xff] %v3783_v57  ;;  %3810 = vtanh.f32 %v2412_v10  ;;  %v2224_v29 = vpop.f32.mrf.mxu0 }
 0x3d1   : > { %v2417_v63 = vpop.f32.mrf.mxu1  ;;  %v3787_v15 = vpop.eup %3786  ;;  %2882 = vst [vmem:[%s6014_s10 + $0x5a0] sm:$0xff] %v3785_v17  ;;  %3812 = vtanh.f32 %v2221_v60  ;;  %v2225_v42 = vadd.f32 %v2224_v29, %v6968_v58 }
 0x3d2   : > { %v2418_v12 = vadd.f32 %v2417_v63, %v6972_v5  ;;  %v3789_v27 = vpop.eup %3788  ;;  %2884 = vst [vmem:[%s6014_s10 + $0x5b0] sm:$0xff] %v3787_v15  ;;  %3814 = vtanh.f32 %v2414_v51  ;;  %v2226_v9 = vpop.f32.mrf.mxu0 }
 0x3d3   : > { %v2419_v23 = vpop.f32.mrf.mxu1  ;;  %v3791_v44 = vpop.eup %3790  ;;  %2883 = vst [vmem:[%s6014_s10 + $0x5a8] sm:$0xff] %v3789_v27  ;;  %3816 = vtanh.f32 %v2225_v42  ;;  %v2227_v18 = vadd.f32 %v2226_v9, %v6974_v62 }
 0x3d4   : > { %v2420_v32 = vadd.f32 %v2419_v23, %v6978_v19  ;;  %v3793_v52 = vpop.eup %3792  ;;  %2885 = vst [vmem:[%s6014_s10 + $0x5b8] sm:$0xff] %v3791_v44  ;;  %3818 = vtanh.f32 %v2418_v12  ;;  %v2228_v53 = vpop.f32.mrf.mxu0 }
 0x3d5   : > { %v2421_v37 = vpop.f32.mrf.mxu1  ;;  %v3795_v1 = vpop.eup %3794  ;;  %2890 = vst [vmem:[%s6014_s10 + $0x5e0] sm:$0xff] %v3793_v52  ;;  %3820 = vtanh.f32 %v2227_v18  ;;  %v2229_v0 = vadd.f32 %v2228_v53, %v6968_v58 }
 0x3d6   : > { %v2422_v47 = vadd.f32 %v2421_v37, %v6972_v5  ;;  %v3797_v56 = vpop.eup %3796  ;;  %2892 = vst [vmem:[%s6014_s10 + $0x5f0] sm:$0xff] %v3795_v1  ;;  %3822 = vtanh.f32 %v2420_v32  ;;  %v2230_v31 = vpop.f32.mrf.mxu0 }
 0x3d7   : > { %v2423_v38 = vpop.f32.mrf.mxu1  ;;  %v3799_v20 = vpop.eup %3798  ;;  %2891 = vst [vmem:[%s6014_s10 + $0x5e8] sm:$0xff] %v3797_v56  ;;  %3824 = vtanh.f32 %v2229_v0  ;;  %v2231_v33 = vadd.f32 %v2230_v31, %v6974_v62 }
 0x3d8   : > { %v2424_v2 = vadd.f32 %v2423_v38, %v6978_v19  ;;  %v3801_v6 = vpop.eup %3800  ;;  %2893 = vst [vmem:[%s6014_s10 + $0x5f8] sm:$0xff] %v3799_v20  ;;  %3826 = vtanh.f32 %v2422_v47  ;;  %v2234_v11 = vpop.f32.mrf.mxu0 }
 0x3d9   : > { %v2427_v39 = vpop.f32.mrf.mxu1  ;;  %v3803_v54 = vpop.eup %3802  ;;  %2898 = vst [vmem:[%s6014_s10 + $0x620] sm:$0xff] %v3801_v6  ;;  %3828 = vtanh.f32 %v2231_v33  ;;  %v2235_v43 = vadd.f32 %v2234_v11, %v6968_v58 }
 0x3da   : > { %v2428_v55 = vadd.f32 %v2427_v39, %v6972_v5  ;;  %v3805_v8 = vpop.eup %3804  ;;  %2900 = vst [vmem:[%s6014_s10 + $0x630] sm:$0xff] %v3803_v54  ;;  %3830 = vtanh.f32 %v2424_v2  ;;  %v2236_v13 = vpop.f32.mrf.mxu0 }
 0x3db   : > { %v2429_v26 = vpop.f32.mrf.mxu1  ;;  %v3807_v22 = vpop.eup %3806  ;;  %2899 = vst [vmem:[%s6014_s10 + $0x628] sm:$0xff] %v3805_v8  ;;  %3832 = vtanh.f32 %v2235_v43  ;;  %v2237_v21 = vadd.f32 %v2236_v13, %v6974_v62 }
 0x3dc   : > { %v2430_v4 = vadd.f32 %v2429_v26, %v6978_v19  ;;  %v3809_v49 = vpop.eup %3808  ;;  %2901 = vst [vmem:[%s6014_s10 + $0x638] sm:$0xff] %v3807_v22  ;;  %3834 = vtanh.f32 %v2428_v55  ;;  %v2238_v41 = vpop.f32.mrf.mxu0 }
 0x3dd   : > { %v2431_v16 = vpop.f32.mrf.mxu1  ;;  %v3811_v40 = vpop.eup %3810  ;;  %2906 = vst [vmem:[%s6014_s10 + $0x660] sm:$0xff] %v3809_v49  ;;  %3836 = vtanh.f32 %v2237_v21  ;;  %v2239_v48 = vadd.f32 %v2238_v41, %v6968_v58 }
 0x3de   : > { %v2432_v14 = vadd.f32 %v2431_v16, %v6972_v5  ;;  %v3813_v34 = vpop.eup %3812  ;;  %2908 = vst [vmem:[%s6014_s10 + $0x670] sm:$0xff] %v3811_v40  ;;  %3838 = vtanh.f32 %v2430_v4  ;;  %v2240_v36 = vpop.f32.mrf.mxu0 }
 0x3df   : > { %v2433_v35 = vpop.f32.mrf.mxu1  ;;  %v3815_v3 = vpop.eup %3814  ;;  %2907 = vst [vmem:[%s6014_s10 + $0x668] sm:$0xff] %v3813_v34  ;;  %3840 = vtanh.f32 %v2239_v48  ;;  %v2241_v59 = vadd.f32 %v2240_v36, %v6974_v62 }
 0x3e0   : > { %v2434_v46 = vadd.f32 %v2433_v35, %v6978_v19  ;;  %v3817_v28 = vpop.eup %3816  ;;  %2909 = vst [vmem:[%s6014_s10 + $0x678] sm:$0xff] %v3815_v3  ;;  %3842 = vtanh.f32 %v2432_v14  ;;  %v2244_v7 = vpop.f32.mrf.mxu0 }
 0x3e1   : > { %v2437_v30 = vpop.f32.mrf.mxu1  ;;  %v3819_v45 = vpop.eup %3818  ;;  %2914 = vst [vmem:[%s6014_s10 + $0x6a0] sm:$0xff] %v3817_v28  ;;  %3844 = vtanh.f32 %v2241_v59  ;;  %v2245_v24 = vadd.f32 %v2244_v7, %v6968_v58 }
 0x3e2   : > { %v2438_v10 = vadd.f32 %v2437_v30, %v6972_v5  ;;  %v3821_v50 = vpop.eup %3820  ;;  %2916 = vst [vmem:[%s6014_s10 + $0x6b0] sm:$0xff] %v3819_v45  ;;  %3846 = vtanh.f32 %v2434_v46  ;;  %v2246_v61 = vpop.f32.mrf.mxu0 }
 0x3e3   : > { %v2439_v25 = vpop.f32.mrf.mxu1  ;;  %v3823_v57 = vpop.eup %3822  ;;  %2915 = vst [vmem:[%s6014_s10 + $0x6a8] sm:$0xff] %v3821_v50  ;;  %3848 = vtanh.f32 %v2245_v24  ;;  %v2247_v60 = vadd.f32 %v2246_v61, %v6974_v62 }
 0x3e4   : > { %v2440_v51 = vadd.f32 %v2439_v25, %v6978_v19  ;;  %v3825_v17 = vpop.eup %3824  ;;  %2917 = vst [vmem:[%s6014_s10 + $0x6b8] sm:$0xff] %v3823_v57  ;;  %3850 = vtanh.f32 %v2438_v10  ;;  %v2248_v29 = vpop.f32.mrf.mxu0 }
 0x3e5   : > { %v2441_v63 = vpop.f32.mrf.mxu1  ;;  %v3827_v15 = vpop.eup %3826  ;;  %2922 = vst [vmem:[%s6014_s10 + $0x6e0] sm:$0xff] %v3825_v17  ;;  %3852 = vtanh.f32 %v2247_v60  ;;  %v2249_v42 = vadd.f32 %v2248_v29, %v6968_v58 }
 0x3e6   : > { %v2442_v12 = vadd.f32 %v2441_v63, %v6972_v5  ;;  %v3829_v27 = vpop.eup %3828  ;;  %2924 = vst [vmem:[%s6014_s10 + $0x6f0] sm:$0xff] %v3827_v15  ;;  %3854 = vtanh.f32 %v2440_v51  ;;  %v2250_v9 = vpop.f32.mrf.mxu0 }
 0x3e7   : > { %v2443_v23 = vpop.f32.mrf.mxu1  ;;  %v3831_v44 = vpop.eup %3830  ;;  %2923 = vst [vmem:[%s6014_s10 + $0x6e8] sm:$0xff] %v3829_v27  ;;  %3856 = vtanh.f32 %v2249_v42  ;;  %v2251_v18 = vadd.f32 %v2250_v9, %v6974_v62 }
 0x3e8   : > { %v2444_v32 = vadd.f32 %v2443_v23, %v6978_v19  ;;  %v3833_v58 = vpop.eup %3832  ;;  %2925 = vst [vmem:[%s6014_s10 + $0x6f8] sm:$0xff] %v3831_v44  ;;  %3858 = vtanh.f32 %v2442_v12 }
 0x3e9   : > { %v3835_v5 = vpop.eup %3834  ;;  %2930 = vst [vmem:[%s6014_s10 + $0x720] sm:$0xff] %v3833_v58  ;;  %3860 = vtanh.f32 %v2251_v18 }
 0x3ea   : > { %v3837_v52 = vpop.eup %3836  ;;  %2932 = vst [vmem:[%s6014_s10 + $0x730] sm:$0xff] %v3835_v5  ;;  %3862 = vtanh.f32 %v2444_v32 }
 0x3eb   : > { %v3839_v53 = vpop.eup %3838  ;;  %2931 = vst [vmem:[%s6014_s10 + $0x728] sm:$0xff] %v3837_v52 }
 0x3ec   : > { %v3841_v62 = vpop.eup %3840  ;;  %2933 = vst [vmem:[%s6014_s10 + $0x738] sm:$0xff] %v3839_v53 }
 0x3ed   : > { %v3843_v19 = vpop.eup %3842  ;;  %2938 = vst [vmem:[%s6014_s10 + $0x760] sm:$0xff] %v3841_v62 }
 0x3ee   : > { %v3845_v37 = vpop.eup %3844  ;;  %2940 = vst [vmem:[%s6014_s10 + $0x770] sm:$0xff] %v3843_v19 }
 0x3ef   : > { %v3847_v1 = vpop.eup %3846  ;;  %2939 = vst [vmem:[%s6014_s10 + $0x768] sm:$0xff] %v3845_v37 }
 0x3f0   : > { %v3849_v0 = vpop.eup %3848  ;;  %2941 = vst [vmem:[%s6014_s10 + $0x778] sm:$0xff] %v3847_v1 }
 0x3f1   : > { %v3851_v47 = vpop.eup %3850  ;;  %2946 = vst [vmem:[%s6014_s10 + $0x7a0] sm:$0xff] %v3849_v0 }
 0x3f2   : > { %v3853_v56 = vpop.eup %3852  ;;  %2948 = vst [vmem:[%s6014_s10 + $0x7b0] sm:$0xff] %v3851_v47 }
 0x3f3   : > { %v3855_v31 = vpop.eup %3854  ;;  %2947 = vst [vmem:[%s6014_s10 + $0x7a8] sm:$0xff] %v3853_v56 }
 0x3f4   : > { %v3857_v38 = vpop.eup %3856  ;;  %2949 = vst [vmem:[%s6014_s10 + $0x7b8] sm:$0xff] %v3855_v31 }
 0x3f5   : > { %v3859_v20 = vpop.eup %3858  ;;  %2954 = vst [vmem:[%s6014_s10 + $0x7e0] sm:$0xff] %v3857_v38 }
 0x3f6   : > { %v3861_v33 = vpop.eup %3860  ;;  %2956 = vst [vmem:[%s6014_s10 + $0x7f0] sm:$0xff] %v3859_v20 }
 0x3f7   : > { %v3863_v2 = vpop.eup %3862  ;;  %2955 = vst [vmem:[%s6014_s10 + $0x7e8] sm:$0xff] %v3861_v33 }
 0x3f8   : > { %2957 = vst [vmem:[%s6014_s10 + $0x7f8] sm:$0xff] %v3863_v2 }
 0x3f9 PF: > { %s15_s12 = sadd.s32 1, %s3953_s12  }
 0x3fa   : > { %p12_p3 = scmp.ge.s32.totalorder %s15_s12, 4  }
 0x3fc   :  { %14 = sbr.rel (!%p12_p3) target bundleno = 2 (0x2), region = 71 }
 0x401   :  { %2982 = vsyncpa [#allocation3], 1 }
 0x402   :  { %2984 = vsyncpa [#allocation3 + $0x1], 1 }
 0x403   :  { %2985 = vsyncpa [#allocation5], 1 }

</bundles_post_ra>
